<compile_context>
chip_gen: v7x
topology: tpu7x:2x2x1
jax: 0.10.0
libtpu: 0.0.40
codegen_flags: <defaults>
</compile_context>

<pallas_src>
import functools

import jax
import jax.numpy as jnp
from jax.experimental import pallas as pl
from jax.experimental.pallas import tpu as pltpu


def _round_up(v, m):
    return (v + m - 1) // m * m


def bayar_constraint(kernel_param, minus1, out_channels, in_channels, K):
    """Reproduce BayarConv2d.bayarConstraint exactly.

    kernel_param: (Cin, Cout, K*K - 1), minus1: (Cin, Cout, 1)
    returns real_kernel: (Cout, Cin, K, K)
    """
    k = kernel_param / jnp.sum(kernel_param, axis=2, keepdims=True)
    ctr = (K * K) // 2
    real = jnp.concatenate([k[:, :, :ctr], minus1, k[:, :, ctr:]], axis=2)  # (Cin, Cout, K*K)
    # NOTE: the PyTorch code does a raw reshape (not a transpose) here; reproduce it.
    return real.reshape(out_channels, in_channels, K, K)


def _bayar_conv_kernel(x_ref, w_ref, o_ref, *, Cin, co_blk, K, Ho):
    """One (batch, out-channel-block) grid step.

    x_ref: (1, Cin, Hp, Wp)      VMEM input block (lane-aligned, zero padded)
    w_ref: (Cout*Cin*K*K,)       SMEM constrained weights, flattened OIHW
    o_ref: (1, co_blk, Ho, Wp)   VMEM output block; valid rows only, columns
                                 stay lane-padded (wrapper crops [:Wo]).
    """
    cb = pl.program_id(1)
    Hp, Wp = x_ref.shape[2], x_ref.shape[3]

    # co_blk * K independent accumulators -> parallel mul/add chains for the
    # 4 VALU slots; the per-kj column shift is applied once at the end (rolls
    # are linear, so they commute with the weighted sum over ci, ki).
    accs = [[None] * K for _ in range(co_blk)]

    # TODO(synk): for large planes (Wp >= 512) row-chunk this loop with a
    #             lax.fori_loop so the live accumulators stay under ~48 vregs.
    for ci in range(Cin):
        # Full-plane load + f32 cast once per input channel, shared across co.
        plane = x_ref[0, ci, :, :].astype(jnp.float32)
        for ki in range(K):
            # Shift rows "up" by ki (positive-equivalent roll) so the valid
            # output region lands at row 0; wrapped rows land past Ho.
            prow = plane if ki == 0 else pltpu.roll(plane, Hp - ki, axis=0)
            for lc in range(co_blk):
                w_base = (cb * co_blk + lc) * (Cin * K * K) + (ci * K + ki) * K
                for kj in range(K):
                    contrib = w_ref[w_base + kj] * prow
                    accs[lc][kj] = contrib if accs[lc][kj] is None else accs[lc][kj] + contrib

    for lc in range(co_blk):
        # Hoisted column rolls: K-1 rolls per output channel (vs one per tap).
        parts = [p if kj == 0 else pltpu.roll(p, Wp - kj, axis=1)
                 for kj, p in enumerate(accs[lc])]
        # Pairwise tree-sum of the partial accumulators.
        while len(parts) > 1:
            nxt = [parts[i] + parts[i + 1] for i in range(0, len(parts) - 1, 2)]
            if len(parts) % 2:
                nxt.append(parts[-1])
            parts = nxt
        # Store only the Ho valid rows; columns stay 128-lane dense.
        o_ref[0, lc, :, :] = parts[0][:Ho, :].astype(o_ref.dtype)


def bayar_conv2d(x, kernel_param, minus1, *, kernel_size=5, stride=1, padding=0):
    """Forward pass of BayarConv2d. x: (N, Cin, H, W) NCHW."""
    # TODO(synk): stride > 1 (module default is 1) is not implemented in-kernel.
    assert stride == 1
    N, Cin, H, W = x.shape
    Cout = kernel_param.shape[1]
    K = kernel_size

    real_kernel = bayar_constraint(kernel_param, minus1, Cout, Cin, K)  # (Cout, Cin, K, K)

    if padding:
        x = jnp.pad(x, ((0, 0), (0, 0), (padding, padding), (padding, padding)))
        H += 2 * padding
        W += 2 * padding

    Ho = H - K + 1
    Wo = W - K + 1
    assert Ho > 0 and Wo > 0

    # Alignment padding: sublane-multiple rows, lane-dense (multiple-of-128) cols.
    Hp = _round_up(H, 8)
    Wp = _round_up(max(W, 128), 128)
    if (Hp, Wp) != (H, W):
        x = jnp.pad(x, ((0, 0), (0, 0), (0, Hp - H), (0, Wp - W)))

    # Split Cout into two blocks where possible so v7x's 2 TensorCores both
    # get work even at N == 1 (v5e/v6e have 1 TC; the split is harmless there).
    if Cout % 2 == 0:
        co_blk, n_co_blk = Cout // 2, 2
    else:
        co_blk, n_co_blk = Cout, 1

    w_flat = real_kernel.reshape(-1).astype(jnp.float32)

    kern = functools.partial(_bayar_conv_kernel, Cin=Cin, co_blk=co_blk, K=K, Ho=Ho)

    # VMEM budget from the actual block footprint, capped at ~85% of physical
    # VMEM (128 MiB on v5e/v6e, 64 MiB on v7x) so Mosaic keeps scratch headroom.
    itemsize = jnp.dtype(x.dtype).itemsize
    in_block = Cin * Hp * Wp * itemsize
    out_block = co_blk * Ho * Wp * itemsize
    vmem_needed = (2 * in_block + 2 * out_block          # double-buffered blocks
                   + (co_blk * K + 4) * Hp * Wp * 4)     # accumulator / spill headroom
    try:
        vmem_cap = int(pltpu.get_tpu_info().vmem_capacity_bytes)
    except Exception:
        vmem_cap = 64 * 1024 * 1024
    vmem_cap = int(vmem_cap * 0.85)
    vmem_limit = int(min(vmem_cap, max(vmem_needed + (2 << 20), 32 * 1024 * 1024)))

    out_rows = pl.pallas_call(
        kern,
        out_shape=jax.ShapeDtypeStruct((N, Cout, Ho, Wp), x.dtype),
        grid_spec=pltpu.PrefetchScalarGridSpec(
            num_scalar_prefetch=0,
            grid=(N, n_co_blk),
            in_specs=[
                # x block index ignores the co axis -> input stays resident across it.
                pl.BlockSpec((1, Cin, Hp, Wp), lambda n, cb: (n, 0, 0, 0)),
                pl.BlockSpec(memory_space=pltpu.MemorySpace.SMEM),  # whole weight vector
            ],
            out_specs=pl.BlockSpec((1, co_blk, Ho, Wp), lambda n, cb: (n, cb, 0, 0)),
        ),
        compiler_params=pltpu.CompilerParams(
            dimension_semantics=("parallel", "parallel"),
            vmem_limit_bytes=vmem_limit,
        ),
    )(x, w_flat)

    # Rows were already cropped in-kernel; only the lane padding remains.
    # TODO(synk): a fused consumer could take the (N, Cout, Ho, Wp) tensor
    #             directly (cols >= Wo are roll-wrap junk) and skip this pass.
    return out_rows[:, :, :, :Wo]


if __name__ == "__main__":
    N, Cin, Cout, H, W, K = 2, 4, 4, 16, 16, 5

    key = jax.random.PRNGKey(0)
    k_kernel, k_x = jax.random.split(key)

    # nn.Parameter(torch.rand(Cin, Cout, K*K - 1))  -> uniform [0, 1)
    kernel_param = jax.random.uniform(k_kernel, (Cin, Cout, K * K - 1), dtype=jnp.float32)
    # self.minus1 = torch.ones(Cin, Cout, 1) * -1.0
    minus1 = jnp.full((Cin, Cout, 1), -1.0, dtype=jnp.float32)

    x = jax.random.normal(k_x, (N, Cin, H, W), dtype=jnp.float32)

    out = bayar_conv2d(x, kernel_param, minus1, kernel_size=K, stride=1, padding=0)
    out = jax.block_until_ready(out)
    assert out.shape == (N, Cout, H - K + 1, W - K + 1)

    # Reference check against XLA's conv with the same constrained weights.
    real_kernel = bayar_constraint(kernel_param, minus1, Cout, Cin, K)
    ref = jax.lax.conv_general_dilated(
        x, real_kernel, window_strides=(1, 1), padding="VALID",
        dimension_numbers=("NCHW", "OIHW", "NCHW"))
    assert jnp.allclose(out, ref, atol=1e-4, rtol=1e-4), "mismatch vs reference conv"

    print("KERNEL_OK")
</pallas_src>

<mosaic_0001>
module attributes {stable_mosaic.version = 11 : i64} {
  func.func @_bayar_conv_kernel(%arg0: i32, %arg1: i32, %arg2: memref<1x4x16x128xf32, #tpu.memory_space<vmem>>, %arg3: memref<400xf32, #tpu.memory_space<smem>>, %arg4: memref<1x2x12x128xf32, #tpu.memory_space<vmem>>) attributes {dimension_semantics = [#tpu.dimension_semantics<parallel>, #tpu.dimension_semantics<parallel>], iteration_bounds = array<i64: 2, 2>, scalar_prefetch = 0 : i64, scratch_operands = 0 : i64, tpu.core_type = #tpu.core_type<tc>, window_params = [{transform_indices = @transform_0, window_bounds = array<i64: 1, 4, 16, 128>}, {transform_indices = @transform_1, window_bounds = array<i64: 400>}, {transform_indices = @transform_2, window_bounds = array<i64: 1, 2, 12, 128>}]} {
    %c0 = arith.constant 0 : index
    %c0_0 = arith.constant 0 : index
    %c0_1 = arith.constant 0 : index
    %c0_2 = arith.constant 0 : index
    %0 = vector.load %arg2[%c0, %c0_0, %c0_1, %c0_2] : memref<1x4x16x128xf32, #tpu.memory_space<vmem>>, vector<1x1x16x128xf32>
    %1 = vector.shape_cast %0 : vector<1x1x16x128xf32> to vector<16x128xf32>
    %c2_i32 = arith.constant 2 : i32
    %2 = arith.muli %arg1, %c2_i32 : i32
    %c0_i32 = arith.constant 0 : i32
    %3 = arith.addi %2, %c0_i32 : i32
    %c100_i32 = arith.constant 100 : i32
    %4 = arith.muli %3, %c100_i32 : i32
    %c0_i32_3 = arith.constant 0 : i32
    %5 = arith.addi %4, %c0_i32_3 : i32
    %c0_i32_4 = arith.constant 0 : i32
    %6 = arith.addi %5, %c0_i32_4 : i32
    %7 = arith.index_cast %6 : i32 to index
    %8 = memref.load %arg3[%7] : memref<400xf32, #tpu.memory_space<smem>>
    %9 = vector.broadcast %8 : f32 to vector<16x128xf32>
    %10 = arith.mulf %9, %1 : vector<16x128xf32>
    %c1_i32 = arith.constant 1 : i32
    %11 = arith.addi %5, %c1_i32 : i32
    %12 = arith.index_cast %11 : i32 to index
    %13 = memref.load %arg3[%12] : memref<400xf32, #tpu.memory_space<smem>>
    %14 = vector.broadcast %13 : f32 to vector<16x128xf32>
    %15 = arith.mulf %14, %1 : vector<16x128xf32>
    %c2_i32_5 = arith.constant 2 : i32
    %16 = arith.addi %5, %c2_i32_5 : i32
    %17 = arith.index_cast %16 : i32 to index
    %18 = memref.load %arg3[%17] : memref<400xf32, #tpu.memory_space<smem>>
    %19 = vector.broadcast %18 : f32 to vector<16x128xf32>
    %20 = arith.mulf %19, %1 : vector<16x128xf32>
    %c3_i32 = arith.constant 3 : i32
    %21 = arith.addi %5, %c3_i32 : i32
    %22 = arith.index_cast %21 : i32 to index
    %23 = memref.load %arg3[%22] : memref<400xf32, #tpu.memory_space<smem>>
    %24 = vector.broadcast %23 : f32 to vector<16x128xf32>
    %25 = arith.mulf %24, %1 : vector<16x128xf32>
    %c4_i32 = arith.constant 4 : i32
    %26 = arith.addi %5, %c4_i32 : i32
    %27 = arith.index_cast %26 : i32 to index
    %28 = memref.load %arg3[%27] : memref<400xf32, #tpu.memory_space<smem>>
    %29 = vector.broadcast %28 : f32 to vector<16x128xf32>
    %30 = arith.mulf %29, %1 : vector<16x128xf32>
    %c2_i32_6 = arith.constant 2 : i32
    %31 = arith.muli %arg1, %c2_i32_6 : i32
    %c1_i32_7 = arith.constant 1 : i32
    %32 = arith.addi %31, %c1_i32_7 : i32
    %c100_i32_8 = arith.constant 100 : i32
    %33 = arith.muli %32, %c100_i32_8 : i32
    %c0_i32_9 = arith.constant 0 : i32
    %34 = arith.addi %33, %c0_i32_9 : i32
    %c0_i32_10 = arith.constant 0 : i32
    %35 = arith.addi %34, %c0_i32_10 : i32
    %36 = arith.index_cast %35 : i32 to index
    %37 = memref.load %arg3[%36] : memref<400xf32, #tpu.memory_space<smem>>
    %38 = vector.broadcast %37 : f32 to vector<16x128xf32>
    %39 = arith.mulf %38, %1 : vector<16x128xf32>
    %c1_i32_11 = arith.constant 1 : i32
    %40 = arith.addi %34, %c1_i32_11 : i32
    %41 = arith.index_cast %40 : i32 to index
    %42 = memref.load %arg3[%41] : memref<400xf32, #tpu.memory_space<smem>>
    %43 = vector.broadcast %42 : f32 to vector<16x128xf32>
    %44 = arith.mulf %43, %1 : vector<16x128xf32>
    %c2_i32_12 = arith.constant 2 : i32
    %45 = arith.addi %34, %c2_i32_12 : i32
    %46 = arith.index_cast %45 : i32 to index
    %47 = memref.load %arg3[%46] : memref<400xf32, #tpu.memory_space<smem>>
    %48 = vector.broadcast %47 : f32 to vector<16x128xf32>
    %49 = arith.mulf %48, %1 : vector<16x128xf32>
    %c3_i32_13 = arith.constant 3 : i32
    %50 = arith.addi %34, %c3_i32_13 : i32
    %51 = arith.index_cast %50 : i32 to index
    %52 = memref.load %arg3[%51] : memref<400xf32, #tpu.memory_space<smem>>
    %53 = vector.broadcast %52 : f32 to vector<16x128xf32>
    %54 = arith.mulf %53, %1 : vector<16x128xf32>
    %c4_i32_14 = arith.constant 4 : i32
    %55 = arith.addi %34, %c4_i32_14 : i32
    %56 = arith.index_cast %55 : i32 to index
    %57 = memref.load %arg3[%56] : memref<400xf32, #tpu.memory_space<smem>>
    %58 = vector.broadcast %57 : f32 to vector<16x128xf32>
    %59 = arith.mulf %58, %1 : vector<16x128xf32>
    %c15_i32 = arith.constant 15 : i32
    %60 = tpu.dynamic_rotate %1 by %c15_i32 dim 0 : vector<16x128xf32>, i32 -> vector<16x128xf32>
    %c2_i32_15 = arith.constant 2 : i32
    %61 = arith.muli %arg1, %c2_i32_15 : i32
    %c0_i32_16 = arith.constant 0 : i32
    %62 = arith.addi %61, %c0_i32_16 : i32
    %c100_i32_17 = arith.constant 100 : i32
    %63 = arith.muli %62, %c100_i32_17 : i32
    %c5_i32 = arith.constant 5 : i32
    %64 = arith.addi %63, %c5_i32 : i32
    %c0_i32_18 = arith.constant 0 : i32
    %65 = arith.addi %64, %c0_i32_18 : i32
    %66 = arith.index_cast %65 : i32 to index
    %67 = memref.load %arg3[%66] : memref<400xf32, #tpu.memory_space<smem>>
    %68 = vector.broadcast %67 : f32 to vector<16x128xf32>
    %69 = arith.mulf %68, %60 : vector<16x128xf32>
    %70 = arith.addf %10, %69 : vector<16x128xf32>
    %c1_i32_19 = arith.constant 1 : i32
    %71 = arith.addi %64, %c1_i32_19 : i32
    %72 = arith.index_cast %71 : i32 to index
    %73 = memref.load %arg3[%72] : memref<400xf32, #tpu.memory_space<smem>>
    %74 = vector.broadcast %73 : f32 to vector<16x128xf32>
    %75 = arith.mulf %74, %60 : vector<16x128xf32>
    %76 = arith.addf %15, %75 : vector<16x128xf32>
    %c2_i32_20 = arith.constant 2 : i32
    %77 = arith.addi %64, %c2_i32_20 : i32
    %78 = arith.index_cast %77 : i32 to index
    %79 = memref.load %arg3[%78] : memref<400xf32, #tpu.memory_space<smem>>
    %80 = vector.broadcast %79 : f32 to vector<16x128xf32>
    %81 = arith.mulf %80, %60 : vector<16x128xf32>
    %82 = arith.addf %20, %81 : vector<16x128xf32>
    %c3_i32_21 = arith.constant 3 : i32
    %83 = arith.addi %64, %c3_i32_21 : i32
    %84 = arith.index_cast %83 : i32 to index
    %85 = memref.load %arg3[%84] : memref<400xf32, #tpu.memory_space<smem>>
    %86 = vector.broadcast %85 : f32 to vector<16x128xf32>
    %87 = arith.mulf %86, %60 : vector<16x128xf32>
    %88 = arith.addf %25, %87 : vector<16x128xf32>
    %c4_i32_22 = arith.constant 4 : i32
    %89 = arith.addi %64, %c4_i32_22 : i32
    %90 = arith.index_cast %89 : i32 to index
    %91 = memref.load %arg3[%90] : memref<400xf32, #tpu.memory_space<smem>>
    %92 = vector.broadcast %91 : f32 to vector<16x128xf32>
    %93 = arith.mulf %92, %60 : vector<16x128xf32>
    %94 = arith.addf %30, %93 : vector<16x128xf32>
    %c2_i32_23 = arith.constant 2 : i32
    %95 = arith.muli %arg1, %c2_i32_23 : i32
    %c1_i32_24 = arith.constant 1 : i32
    %96 = arith.addi %95, %c1_i32_24 : i32
    %c100_i32_25 = arith.constant 100 : i32
    %97 = arith.muli %96, %c100_i32_25 : i32
    %c5_i32_26 = arith.constant 5 : i32
    %98 = arith.addi %97, %c5_i32_26 : i32
    %c0_i32_27 = arith.constant 0 : i32
    %99 = arith.addi %98, %c0_i32_27 : i32
    %100 = arith.index_cast %99 : i32 to index
    %101 = memref.load %arg3[%100] : memref<400xf32, #tpu.memory_space<smem>>
    %102 = vector.broadcast %101 : f32 to vector<16x128xf32>
    %103 = arith.mulf %102, %60 : vector<16x128xf32>
    %104 = arith.addf %39, %103 : vector<16x128xf32>
    %c1_i32_28 = arith.constant 1 : i32
    %105 = arith.addi %98, %c1_i32_28 : i32
    %106 = arith.index_cast %105 : i32 to index
    %107 = memref.load %arg3[%106] : memref<400xf32, #tpu.memory_space<smem>>
    %108 = vector.broadcast %107 : f32 to vector<16x128xf32>
    %109 = arith.mulf %108, %60 : vector<16x128xf32>
    %110 = arith.addf %44, %109 : vector<16x128xf32>
    %c2_i32_29 = arith.constant 2 : i32
    %111 = arith.addi %98, %c2_i32_29 : i32
    %112 = arith.index_cast %111 : i32 to index
    %113 = memref.load %arg3[%112] : memref<400xf32, #tpu.memory_space<smem>>
    %114 = vector.broadcast %113 : f32 to vector<16x128xf32>
    %115 = arith.mulf %114, %60 : vector<16x128xf32>
    %116 = arith.addf %49, %115 : vector<16x128xf32>
    %c3_i32_30 = arith.constant 3 : i32
    %117 = arith.addi %98, %c3_i32_30 : i32
    %118 = arith.index_cast %117 : i32 to index
    %119 = memref.load %arg3[%118] : memref<400xf32, #tpu.memory_space<smem>>
    %120 = vector.broadcast %119 : f32 to vector<16x128xf32>
    %121 = arith.mulf %120, %60 : vector<16x128xf32>
    %122 = arith.addf %54, %121 : vector<16x128xf32>
    %c4_i32_31 = arith.constant 4 : i32
    %123 = arith.addi %98, %c4_i32_31 : i32
    %124 = arith.index_cast %123 : i32 to index
    %125 = memref.load %arg3[%124] : memref<400xf32, #tpu.memory_space<smem>>
    %126 = vector.broadcast %125 : f32 to vector<16x128xf32>
    %127 = arith.mulf %126, %60 : vector<16x128xf32>
    %128 = arith.addf %59, %127 : vector<16x128xf32>
    %c14_i32 = arith.constant 14 : i32
    %129 = tpu.dynamic_rotate %1 by %c14_i32 dim 0 : vector<16x128xf32>, i32 -> vector<16x128xf32>
    %c2_i32_32 = arith.constant 2 : i32
    %130 = arith.muli %arg1, %c2_i32_32 : i32
    %c0_i32_33 = arith.constant 0 : i32
    %131 = arith.addi %130, %c0_i32_33 : i32
    %c100_i32_34 = arith.constant 100 : i32
    %132 = arith.muli %131, %c100_i32_34 : i32
    %c10_i32 = arith.constant 10 : i32
    %133 = arith.addi %132, %c10_i32 : i32
    %c0_i32_35 = arith.constant 0 : i32
    %134 = arith.addi %133, %c0_i32_35 : i32
    %135 = arith.index_cast %134 : i32 to index
    %136 = memref.load %arg3[%135] : memref<400xf32, #tpu.memory_space<smem>>
    %137 = vector.broadcast %136 : f32 to vector<16x128xf32>
    %138 = arith.mulf %137, %129 : vector<16x128xf32>
    %139 = arith.addf %70, %138 : vector<16x128xf32>
    %c1_i32_36 = arith.constant 1 : i32
    %140 = arith.addi %133, %c1_i32_36 : i32
    %141 = arith.index_cast %140 : i32 to index
    %142 = memref.load %arg3[%141] : memref<400xf32, #tpu.memory_space<smem>>
    %143 = vector.broadcast %142 : f32 to vector<16x128xf32>
    %144 = arith.mulf %143, %129 : vector<16x128xf32>
    %145 = arith.addf %76, %144 : vector<16x128xf32>
    %c2_i32_37 = arith.constant 2 : i32
    %146 = arith.addi %133, %c2_i32_37 : i32
    %147 = arith.index_cast %146 : i32 to index
    %148 = memref.load %arg3[%147] : memref<400xf32, #tpu.memory_space<smem>>
    %149 = vector.broadcast %148 : f32 to vector<16x128xf32>
    %150 = arith.mulf %149, %129 : vector<16x128xf32>
    %151 = arith.addf %82, %150 : vector<16x128xf32>
    %c3_i32_38 = arith.constant 3 : i32
    %152 = arith.addi %133, %c3_i32_38 : i32
    %153 = arith.index_cast %152 : i32 to index
    %154 = memref.load %arg3[%153] : memref<400xf32, #tpu.memory_space<smem>>
    %155 = vector.broadcast %154 : f32 to vector<16x128xf32>
    %156 = arith.mulf %155, %129 : vector<16x128xf32>
    %157 = arith.addf %88, %156 : vector<16x128xf32>
    %c4_i32_39 = arith.constant 4 : i32
    %158 = arith.addi %133, %c4_i32_39 : i32
    %159 = arith.index_cast %158 : i32 to index
    %160 = memref.load %arg3[%159] : memref<400xf32, #tpu.memory_space<smem>>
    %161 = vector.broadcast %160 : f32 to vector<16x128xf32>
    %162 = arith.mulf %161, %129 : vector<16x128xf32>
    %163 = arith.addf %94, %162 : vector<16x128xf32>
    %c2_i32_40 = arith.constant 2 : i32
    %164 = arith.muli %arg1, %c2_i32_40 : i32
    %c1_i32_41 = arith.constant 1 : i32
    %165 = arith.addi %164, %c1_i32_41 : i32
    %c100_i32_42 = arith.constant 100 : i32
    %166 = arith.muli %165, %c100_i32_42 : i32
    %c10_i32_43 = arith.constant 10 : i32
    %167 = arith.addi %166, %c10_i32_43 : i32
    %c0_i32_44 = arith.constant 0 : i32
    %168 = arith.addi %167, %c0_i32_44 : i32
    %169 = arith.index_cast %168 : i32 to index
    %170 = memref.load %arg3[%169] : memref<400xf32, #tpu.memory_space<smem>>
    %171 = vector.broadcast %170 : f32 to vector<16x128xf32>
    %172 = arith.mulf %171, %129 : vector<16x128xf32>
    %173 = arith.addf %104, %172 : vector<16x128xf32>
    %c1_i32_45 = arith.constant 1 : i32
    %174 = arith.addi %167, %c1_i32_45 : i32
    %175 = arith.index_cast %174 : i32 to index
    %176 = memref.load %arg3[%175] : memref<400xf32, #tpu.memory_space<smem>>
    %177 = vector.broadcast %176 : f32 to vector<16x128xf32>
    %178 = arith.mulf %177, %129 : vector<16x128xf32>
    %179 = arith.addf %110, %178 : vector<16x128xf32>
    %c2_i32_46 = arith.constant 2 : i32
    %180 = arith.addi %167, %c2_i32_46 : i32
    %181 = arith.index_cast %180 : i32 to index
    %182 = memref.load %arg3[%181] : memref<400xf32, #tpu.memory_space<smem>>
    %183 = vector.broadcast %182 : f32 to vector<16x128xf32>
    %184 = arith.mulf %183, %129 : vector<16x128xf32>
    %185 = arith.addf %116, %184 : vector<16x128xf32>
    %c3_i32_47 = arith.constant 3 : i32
    %186 = arith.addi %167, %c3_i32_47 : i32
    %187 = arith.index_cast %186 : i32 to index
    %188 = memref.load %arg3[%187] : memref<400xf32, #tpu.memory_space<smem>>
    %189 = vector.broadcast %188 : f32 to vector<16x128xf32>
    %190 = arith.mulf %189, %129 : vector<16x128xf32>
    %191 = arith.addf %122, %190 : vector<16x128xf32>
    %c4_i32_48 = arith.constant 4 : i32
    %192 = arith.addi %167, %c4_i32_48 : i32
    %193 = arith.index_cast %192 : i32 to index
    %194 = memref.load %arg3[%193] : memref<400xf32, #tpu.memory_space<smem>>
    %195 = vector.broadcast %194 : f32 to vector<16x128xf32>
    %196 = arith.mulf %195, %129 : vector<16x128xf32>
    %197 = arith.addf %128, %196 : vector<16x128xf32>
    %c13_i32 = arith.constant 13 : i32
    %198 = tpu.dynamic_rotate %1 by %c13_i32 dim 0 : vector<16x128xf32>, i32 -> vector<16x128xf32>
    %c2_i32_49 = arith.constant 2 : i32
    %199 = arith.muli %arg1, %c2_i32_49 : i32
    %c0_i32_50 = arith.constant 0 : i32
    %200 = arith.addi %199, %c0_i32_50 : i32
    %c100_i32_51 = arith.constant 100 : i32
    %201 = arith.muli %200, %c100_i32_51 : i32
    %c15_i32_52 = arith.constant 15 : i32
    %202 = arith.addi %201, %c15_i32_52 : i32
    %c0_i32_53 = arith.constant 0 : i32
    %203 = arith.addi %202, %c0_i32_53 : i32
    %204 = arith.index_cast %203 : i32 to index
    %205 = memref.load %arg3[%204] : memref<400xf32, #tpu.memory_space<smem>>
    %206 = vector.broadcast %205 : f32 to vector<16x128xf32>
    %207 = arith.mulf %206, %198 : vector<16x128xf32>
    %208 = arith.addf %139, %207 : vector<16x128xf32>
    %c1_i32_54 = arith.constant 1 : i32
    %209 = arith.addi %202, %c1_i32_54 : i32
    %210 = arith.index_cast %209 : i32 to index
    %211 = memref.load %arg3[%210] : memref<400xf32, #tpu.memory_space<smem>>
    %212 = vector.broadcast %211 : f32 to vector<16x128xf32>
    %213 = arith.mulf %212, %198 : vector<16x128xf32>
    %214 = arith.addf %145, %213 : vector<16x128xf32>
    %c2_i32_55 = arith.constant 2 : i32
    %215 = arith.addi %202, %c2_i32_55 : i32
    %216 = arith.index_cast %215 : i32 to index
    %217 = memref.load %arg3[%216] : memref<400xf32, #tpu.memory_space<smem>>
    %218 = vector.broadcast %217 : f32 to vector<16x128xf32>
    %219 = arith.mulf %218, %198 : vector<16x128xf32>
    %220 = arith.addf %151, %219 : vector<16x128xf32>
    %c3_i32_56 = arith.constant 3 : i32
    %221 = arith.addi %202, %c3_i32_56 : i32
    %222 = arith.index_cast %221 : i32 to index
    %223 = memref.load %arg3[%222] : memref<400xf32, #tpu.memory_space<smem>>
    %224 = vector.broadcast %223 : f32 to vector<16x128xf32>
    %225 = arith.mulf %224, %198 : vector<16x128xf32>
    %226 = arith.addf %157, %225 : vector<16x128xf32>
    %c4_i32_57 = arith.constant 4 : i32
    %227 = arith.addi %202, %c4_i32_57 : i32
    %228 = arith.index_cast %227 : i32 to index
    %229 = memref.load %arg3[%228] : memref<400xf32, #tpu.memory_space<smem>>
    %230 = vector.broadcast %229 : f32 to vector<16x128xf32>
    %231 = arith.mulf %230, %198 : vector<16x128xf32>
    %232 = arith.addf %163, %231 : vector<16x128xf32>
    %c2_i32_58 = arith.constant 2 : i32
    %233 = arith.muli %arg1, %c2_i32_58 : i32
    %c1_i32_59 = arith.constant 1 : i32
    %234 = arith.addi %233, %c1_i32_59 : i32
    %c100_i32_60 = arith.constant 100 : i32
    %235 = arith.muli %234, %c100_i32_60 : i32
    %c15_i32_61 = arith.constant 15 : i32
    %236 = arith.addi %235, %c15_i32_61 : i32
    %c0_i32_62 = arith.constant 0 : i32
    %237 = arith.addi %236, %c0_i32_62 : i32
    %238 = arith.index_cast %237 : i32 to index
    %239 = memref.load %arg3[%238] : memref<400xf32, #tpu.memory_space<smem>>
    %240 = vector.broadcast %239 : f32 to vector<16x128xf32>
    %241 = arith.mulf %240, %198 : vector<16x128xf32>
    %242 = arith.addf %173, %241 : vector<16x128xf32>
    %c1_i32_63 = arith.constant 1 : i32
    %243 = arith.addi %236, %c1_i32_63 : i32
    %244 = arith.index_cast %243 : i32 to index
    %245 = memref.load %arg3[%244] : memref<400xf32, #tpu.memory_space<smem>>
    %246 = vector.broadcast %245 : f32 to vector<16x128xf32>
    %247 = arith.mulf %246, %198 : vector<16x128xf32>
    %248 = arith.addf %179, %247 : vector<16x128xf32>
    %c2_i32_64 = arith.constant 2 : i32
    %249 = arith.addi %236, %c2_i32_64 : i32
    %250 = arith.index_cast %249 : i32 to index
    %251 = memref.load %arg3[%250] : memref<400xf32, #tpu.memory_space<smem>>
    %252 = vector.broadcast %251 : f32 to vector<16x128xf32>
    %253 = arith.mulf %252, %198 : vector<16x128xf32>
    %254 = arith.addf %185, %253 : vector<16x128xf32>
    %c3_i32_65 = arith.constant 3 : i32
    %255 = arith.addi %236, %c3_i32_65 : i32
    %256 = arith.index_cast %255 : i32 to index
    %257 = memref.load %arg3[%256] : memref<400xf32, #tpu.memory_space<smem>>
    %258 = vector.broadcast %257 : f32 to vector<16x128xf32>
    %259 = arith.mulf %258, %198 : vector<16x128xf32>
    %260 = arith.addf %191, %259 : vector<16x128xf32>
    %c4_i32_66 = arith.constant 4 : i32
    %261 = arith.addi %236, %c4_i32_66 : i32
    %262 = arith.index_cast %261 : i32 to index
    %263 = memref.load %arg3[%262] : memref<400xf32, #tpu.memory_space<smem>>
    %264 = vector.broadcast %263 : f32 to vector<16x128xf32>
    %265 = arith.mulf %264, %198 : vector<16x128xf32>
    %266 = arith.addf %197, %265 : vector<16x128xf32>
    %c12_i32 = arith.constant 12 : i32
    %267 = tpu.dynamic_rotate %1 by %c12_i32 dim 0 : vector<16x128xf32>, i32 -> vector<16x128xf32>
    %c2_i32_67 = arith.constant 2 : i32
    %268 = arith.muli %arg1, %c2_i32_67 : i32
    %c0_i32_68 = arith.constant 0 : i32
    %269 = arith.addi %268, %c0_i32_68 : i32
    %c100_i32_69 = arith.constant 100 : i32
    %270 = arith.muli %269, %c100_i32_69 : i32
    %c20_i32 = arith.constant 20 : i32
    %271 = arith.addi %270, %c20_i32 : i32
    %c0_i32_70 = arith.constant 0 : i32
    %272 = arith.addi %271, %c0_i32_70 : i32
    %273 = arith.index_cast %272 : i32 to index
    %274 = memref.load %arg3[%273] : memref<400xf32, #tpu.memory_space<smem>>
    %275 = vector.broadcast %274 : f32 to vector<16x128xf32>
    %276 = arith.mulf %275, %267 : vector<16x128xf32>
    %277 = arith.addf %208, %276 : vector<16x128xf32>
    %c1_i32_71 = arith.constant 1 : i32
    %278 = arith.addi %271, %c1_i32_71 : i32
    %279 = arith.index_cast %278 : i32 to index
    %280 = memref.load %arg3[%279] : memref<400xf32, #tpu.memory_space<smem>>
    %281 = vector.broadcast %280 : f32 to vector<16x128xf32>
    %282 = arith.mulf %281, %267 : vector<16x128xf32>
    %283 = arith.addf %214, %282 : vector<16x128xf32>
    %c2_i32_72 = arith.constant 2 : i32
    %284 = arith.addi %271, %c2_i32_72 : i32
    %285 = arith.index_cast %284 : i32 to index
    %286 = memref.load %arg3[%285] : memref<400xf32, #tpu.memory_space<smem>>
    %287 = vector.broadcast %286 : f32 to vector<16x128xf32>
    %288 = arith.mulf %287, %267 : vector<16x128xf32>
    %289 = arith.addf %220, %288 : vector<16x128xf32>
    %c3_i32_73 = arith.constant 3 : i32
    %290 = arith.addi %271, %c3_i32_73 : i32
    %291 = arith.index_cast %290 : i32 to index
    %292 = memref.load %arg3[%291] : memref<400xf32, #tpu.memory_space<smem>>
    %293 = vector.broadcast %292 : f32 to vector<16x128xf32>
    %294 = arith.mulf %293, %267 : vector<16x128xf32>
    %295 = arith.addf %226, %294 : vector<16x128xf32>
    %c4_i32_74 = arith.constant 4 : i32
    %296 = arith.addi %271, %c4_i32_74 : i32
    %297 = arith.index_cast %296 : i32 to index
    %298 = memref.load %arg3[%297] : memref<400xf32, #tpu.memory_space<smem>>
    %299 = vector.broadcast %298 : f32 to vector<16x128xf32>
    %300 = arith.mulf %299, %267 : vector<16x128xf32>
    %301 = arith.addf %232, %300 : vector<16x128xf32>
    %c2_i32_75 = arith.constant 2 : i32
    %302 = arith.muli %arg1, %c2_i32_75 : i32
    %c1_i32_76 = arith.constant 1 : i32
    %303 = arith.addi %302, %c1_i32_76 : i32
    %c100_i32_77 = arith.constant 100 : i32
    %304 = arith.muli %303, %c100_i32_77 : i32
    %c20_i32_78 = arith.constant 20 : i32
    %305 = arith.addi %304, %c20_i32_78 : i32
    %c0_i32_79 = arith.constant 0 : i32
    %306 = arith.addi %305, %c0_i32_79 : i32
    %307 = arith.index_cast %306 : i32 to index
    %308 = memref.load %arg3[%307] : memref<400xf32, #tpu.memory_space<smem>>
    %309 = vector.broadcast %308 : f32 to vector<16x128xf32>
    %310 = arith.mulf %309, %267 : vector<16x128xf32>
    %311 = arith.addf %242, %310 : vector<16x128xf32>
    %c1_i32_80 = arith.constant 1 : i32
    %312 = arith.addi %305, %c1_i32_80 : i32
    %313 = arith.index_cast %312 : i32 to index
    %314 = memref.load %arg3[%313] : memref<400xf32, #tpu.memory_space<smem>>
    %315 = vector.broadcast %314 : f32 to vector<16x128xf32>
    %316 = arith.mulf %315, %267 : vector<16x128xf32>
    %317 = arith.addf %248, %316 : vector<16x128xf32>
    %c2_i32_81 = arith.constant 2 : i32
    %318 = arith.addi %305, %c2_i32_81 : i32
    %319 = arith.index_cast %318 : i32 to index
    %320 = memref.load %arg3[%319] : memref<400xf32, #tpu.memory_space<smem>>
    %321 = vector.broadcast %320 : f32 to vector<16x128xf32>
    %322 = arith.mulf %321, %267 : vector<16x128xf32>
    %323 = arith.addf %254, %322 : vector<16x128xf32>
    %c3_i32_82 = arith.constant 3 : i32
    %324 = arith.addi %305, %c3_i32_82 : i32
    %325 = arith.index_cast %324 : i32 to index
    %326 = memref.load %arg3[%325] : memref<400xf32, #tpu.memory_space<smem>>
    %327 = vector.broadcast %326 : f32 to vector<16x128xf32>
    %328 = arith.mulf %327, %267 : vector<16x128xf32>
    %329 = arith.addf %260, %328 : vector<16x128xf32>
    %c4_i32_83 = arith.constant 4 : i32
    %330 = arith.addi %305, %c4_i32_83 : i32
    %331 = arith.index_cast %330 : i32 to index
    %332 = memref.load %arg3[%331] : memref<400xf32, #tpu.memory_space<smem>>
    %333 = vector.broadcast %332 : f32 to vector<16x128xf32>
    %334 = arith.mulf %333, %267 : vector<16x128xf32>
    %335 = arith.addf %266, %334 : vector<16x128xf32>
    %c0_84 = arith.constant 0 : index
    %c1 = arith.constant 1 : index
    %c0_85 = arith.constant 0 : index
    %c0_86 = arith.constant 0 : index
    %336 = vector.load %arg2[%c0_84, %c1, %c0_85, %c0_86] : memref<1x4x16x128xf32, #tpu.memory_space<vmem>>, vector<1x1x16x128xf32>
    %337 = vector.shape_cast %336 : vector<1x1x16x128xf32> to vector<16x128xf32>
    %c2_i32_87 = arith.constant 2 : i32
    %338 = arith.muli %arg1, %c2_i32_87 : i32
    %c0_i32_88 = arith.constant 0 : i32
    %339 = arith.addi %338, %c0_i32_88 : i32
    %c100_i32_89 = arith.constant 100 : i32
    %340 = arith.muli %339, %c100_i32_89 : i32
    %c25_i32 = arith.constant 25 : i32
    %341 = arith.addi %340, %c25_i32 : i32
    %c0_i32_90 = arith.constant 0 : i32
    %342 = arith.addi %341, %c0_i32_90 : i32
    %343 = arith.index_cast %342 : i32 to index
    %344 = memref.load %arg3[%343] : memref<400xf32, #tpu.memory_space<smem>>
    %345 = vector.broadcast %344 : f32 to vector<16x128xf32>
    %346 = arith.mulf %345, %337 : vector<16x128xf32>
    %347 = arith.addf %277, %346 : vector<16x128xf32>
    %c1_i32_91 = arith.constant 1 : i32
    %348 = arith.addi %341, %c1_i32_91 : i32
    %349 = arith.index_cast %348 : i32 to index
    %350 = memref.load %arg3[%349] : memref<400xf32, #tpu.memory_space<smem>>
    %351 = vector.broadcast %350 : f32 to vector<16x128xf32>
    %352 = arith.mulf %351, %337 : vector<16x128xf32>
    %353 = arith.addf %283, %352 : vector<16x128xf32>
    %c2_i32_92 = arith.constant 2 : i32
    %354 = arith.addi %341, %c2_i32_92 : i32
    %355 = arith.index_cast %354 : i32 to index
    %356 = memref.load %arg3[%355] : memref<400xf32, #tpu.memory_space<smem>>
    %357 = vector.broadcast %356 : f32 to vector<16x128xf32>
    %358 = arith.mulf %357, %337 : vector<16x128xf32>
    %359 = arith.addf %289, %358 : vector<16x128xf32>
    %c3_i32_93 = arith.constant 3 : i32
    %360 = arith.addi %341, %c3_i32_93 : i32
    %361 = arith.index_cast %360 : i32 to index
    %362 = memref.load %arg3[%361] : memref<400xf32, #tpu.memory_space<smem>>
    %363 = vector.broadcast %362 : f32 to vector<16x128xf32>
    %364 = arith.mulf %363, %337 : vector<16x128xf32>
    %365 = arith.addf %295, %364 : vector<16x128xf32>
    %c4_i32_94 = arith.constant 4 : i32
    %366 = arith.addi %341, %c4_i32_94 : i32
    %367 = arith.index_cast %366 : i32 to index
    %368 = memref.load %arg3[%367] : memref<400xf32, #tpu.memory_space<smem>>
    %369 = vector.broadcast %368 : f32 to vector<16x128xf32>
    %370 = arith.mulf %369, %337 : vector<16x128xf32>
    %371 = arith.addf %301, %370 : vector<16x128xf32>
    %c2_i32_95 = arith.constant 2 : i32
    %372 = arith.muli %arg1, %c2_i32_95 : i32
    %c1_i32_96 = arith.constant 1 : i32
    %373 = arith.addi %372, %c1_i32_96 : i32
    %c100_i32_97 = arith.constant 100 : i32
    %374 = arith.muli %373, %c100_i32_97 : i32
    %c25_i32_98 = arith.constant 25 : i32
    %375 = arith.addi %374, %c25_i32_98 : i32
    %c0_i32_99 = arith.constant 0 : i32
    %376 = arith.addi %375, %c0_i32_99 : i32
    %377 = arith.index_cast %376 : i32 to index
    %378 = memref.load %arg3[%377] : memref<400xf32, #tpu.memory_space<smem>>
    %379 = vector.broadcast %378 : f32 to vector<16x128xf32>
    %380 = arith.mulf %379, %337 : vector<16x128xf32>
    %381 = arith.addf %311, %380 : vector<16x128xf32>
    %c1_i32_100 = arith.constant 1 : i32
    %382 = arith.addi %375, %c1_i32_100 : i32
    %383 = arith.index_cast %382 : i32 to index
    %384 = memref.load %arg3[%383] : memref<400xf32, #tpu.memory_space<smem>>
    %385 = vector.broadcast %384 : f32 to vector<16x128xf32>
    %386 = arith.mulf %385, %337 : vector<16x128xf32>
    %387 = arith.addf %317, %386 : vector<16x128xf32>
    %c2_i32_101 = arith.constant 2 : i32
    %388 = arith.addi %375, %c2_i32_101 : i32
    %389 = arith.index_cast %388 : i32 to index
    %390 = memref.load %arg3[%389] : memref<400xf32, #tpu.memory_space<smem>>
    %391 = vector.broadcast %390 : f32 to vector<16x128xf32>
    %392 = arith.mulf %391, %337 : vector<16x128xf32>
    %393 = arith.addf %323, %392 : vector<16x128xf32>
    %c3_i32_102 = arith.constant 3 : i32
    %394 = arith.addi %375, %c3_i32_102 : i32
    %395 = arith.index_cast %394 : i32 to index
    %396 = memref.load %arg3[%395] : memref<400xf32, #tpu.memory_space<smem>>
    %397 = vector.broadcast %396 : f32 to vector<16x128xf32>
    %398 = arith.mulf %397, %337 : vector<16x128xf32>
    %399 = arith.addf %329, %398 : vector<16x128xf32>
    %c4_i32_103 = arith.constant 4 : i32
    %400 = arith.addi %375, %c4_i32_103 : i32
    %401 = arith.index_cast %400 : i32 to index
    %402 = memref.load %arg3[%401] : memref<400xf32, #tpu.memory_space<smem>>
    %403 = vector.broadcast %402 : f32 to vector<16x128xf32>
    %404 = arith.mulf %403, %337 : vector<16x128xf32>
    %405 = arith.addf %335, %404 : vector<16x128xf32>
    %c15_i32_104 = arith.constant 15 : i32
    %406 = tpu.dynamic_rotate %337 by %c15_i32_104 dim 0 : vector<16x128xf32>, i32 -> vector<16x128xf32>
    %c2_i32_105 = arith.constant 2 : i32
    %407 = arith.muli %arg1, %c2_i32_105 : i32
    %c0_i32_106 = arith.constant 0 : i32
    %408 = arith.addi %407, %c0_i32_106 : i32
    %c100_i32_107 = arith.constant 100 : i32
    %409 = arith.muli %408, %c100_i32_107 : i32
    %c30_i32 = arith.constant 30 : i32
    %410 = arith.addi %409, %c30_i32 : i32
    %c0_i32_108 = arith.constant 0 : i32
    %411 = arith.addi %410, %c0_i32_108 : i32
    %412 = arith.index_cast %411 : i32 to index
    %413 = memref.load %arg3[%412] : memref<400xf32, #tpu.memory_space<smem>>
    %414 = vector.broadcast %413 : f32 to vector<16x128xf32>
    %415 = arith.mulf %414, %406 : vector<16x128xf32>
    %416 = arith.addf %347, %415 : vector<16x128xf32>
    %c1_i32_109 = arith.constant 1 : i32
    %417 = arith.addi %410, %c1_i32_109 : i32
    %418 = arith.index_cast %417 : i32 to index
    %419 = memref.load %arg3[%418] : memref<400xf32, #tpu.memory_space<smem>>
    %420 = vector.broadcast %419 : f32 to vector<16x128xf32>
    %421 = arith.mulf %420, %406 : vector<16x128xf32>
    %422 = arith.addf %353, %421 : vector<16x128xf32>
    %c2_i32_110 = arith.constant 2 : i32
    %423 = arith.addi %410, %c2_i32_110 : i32
    %424 = arith.index_cast %423 : i32 to index
    %425 = memref.load %arg3[%424] : memref<400xf32, #tpu.memory_space<smem>>
    %426 = vector.broadcast %425 : f32 to vector<16x128xf32>
    %427 = arith.mulf %426, %406 : vector<16x128xf32>
    %428 = arith.addf %359, %427 : vector<16x128xf32>
    %c3_i32_111 = arith.constant 3 : i32
    %429 = arith.addi %410, %c3_i32_111 : i32
    %430 = arith.index_cast %429 : i32 to index
    %431 = memref.load %arg3[%430] : memref<400xf32, #tpu.memory_space<smem>>
    %432 = vector.broadcast %431 : f32 to vector<16x128xf32>
    %433 = arith.mulf %432, %406 : vector<16x128xf32>
    %434 = arith.addf %365, %433 : vector<16x128xf32>
    %c4_i32_112 = arith.constant 4 : i32
    %435 = arith.addi %410, %c4_i32_112 : i32
    %436 = arith.index_cast %435 : i32 to index
    %437 = memref.load %arg3[%436] : memref<400xf32, #tpu.memory_space<smem>>
    %438 = vector.broadcast %437 : f32 to vector<16x128xf32>
    %439 = arith.mulf %438, %406 : vector<16x128xf32>
    %440 = arith.addf %371, %439 : vector<16x128xf32>
    %c2_i32_113 = arith.constant 2 : i32
    %441 = arith.muli %arg1, %c2_i32_113 : i32
    %c1_i32_114 = arith.constant 1 : i32
    %442 = arith.addi %441, %c1_i32_114 : i32
    %c100_i32_115 = arith.constant 100 : i32
    %443 = arith.muli %442, %c100_i32_115 : i32
    %c30_i32_116 = arith.constant 30 : i32
    %444 = arith.addi %443, %c30_i32_116 : i32
    %c0_i32_117 = arith.constant 0 : i32
    %445 = arith.addi %444, %c0_i32_117 : i32
    %446 = arith.index_cast %445 : i32 to index
    %447 = memref.load %arg3[%446] : memref<400xf32, #tpu.memory_space<smem>>
    %448 = vector.broadcast %447 : f32 to vector<16x128xf32>
    %449 = arith.mulf %448, %406 : vector<16x128xf32>
    %450 = arith.addf %381, %449 : vector<16x128xf32>
    %c1_i32_118 = arith.constant 1 : i32
    %451 = arith.addi %444, %c1_i32_118 : i32
    %452 = arith.index_cast %451 : i32 to index
    %453 = memref.load %arg3[%452] : memref<400xf32, #tpu.memory_space<smem>>
    %454 = vector.broadcast %453 : f32 to vector<16x128xf32>
    %455 = arith.mulf %454, %406 : vector<16x128xf32>
    %456 = arith.addf %387, %455 : vector<16x128xf32>
    %c2_i32_119 = arith.constant 2 : i32
    %457 = arith.addi %444, %c2_i32_119 : i32
    %458 = arith.index_cast %457 : i32 to index
    %459 = memref.load %arg3[%458] : memref<400xf32, #tpu.memory_space<smem>>
    %460 = vector.broadcast %459 : f32 to vector<16x128xf32>
    %461 = arith.mulf %460, %406 : vector<16x128xf32>
    %462 = arith.addf %393, %461 : vector<16x128xf32>
    %c3_i32_120 = arith.constant 3 : i32
    %463 = arith.addi %444, %c3_i32_120 : i32
    %464 = arith.index_cast %463 : i32 to index
    %465 = memref.load %arg3[%464] : memref<400xf32, #tpu.memory_space<smem>>
    %466 = vector.broadcast %465 : f32 to vector<16x128xf32>
    %467 = arith.mulf %466, %406 : vector<16x128xf32>
    %468 = arith.addf %399, %467 : vector<16x128xf32>
    %c4_i32_121 = arith.constant 4 : i32
    %469 = arith.addi %444, %c4_i32_121 : i32
    %470 = arith.index_cast %469 : i32 to index
    %471 = memref.load %arg3[%470] : memref<400xf32, #tpu.memory_space<smem>>
    %472 = vector.broadcast %471 : f32 to vector<16x128xf32>
    %473 = arith.mulf %472, %406 : vector<16x128xf32>
    %474 = arith.addf %405, %473 : vector<16x128xf32>
    %c14_i32_122 = arith.constant 14 : i32
    %475 = tpu.dynamic_rotate %337 by %c14_i32_122 dim 0 : vector<16x128xf32>, i32 -> vector<16x128xf32>
    %c2_i32_123 = arith.constant 2 : i32
    %476 = arith.muli %arg1, %c2_i32_123 : i32
    %c0_i32_124 = arith.constant 0 : i32
    %477 = arith.addi %476, %c0_i32_124 : i32
    %c100_i32_125 = arith.constant 100 : i32
    %478 = arith.muli %477, %c100_i32_125 : i32
    %c35_i32 = arith.constant 35 : i32
    %479 = arith.addi %478, %c35_i32 : i32
    %c0_i32_126 = arith.constant 0 : i32
    %480 = arith.addi %479, %c0_i32_126 : i32
    %481 = arith.index_cast %480 : i32 to index
    %482 = memref.load %arg3[%481] : memref<400xf32, #tpu.memory_space<smem>>
    %483 = vector.broadcast %482 : f32 to vector<16x128xf32>
    %484 = arith.mulf %483, %475 : vector<16x128xf32>
    %485 = arith.addf %416, %484 : vector<16x128xf32>
    %c1_i32_127 = arith.constant 1 : i32
    %486 = arith.addi %479, %c1_i32_127 : i32
    %487 = arith.index_cast %486 : i32 to index
    %488 = memref.load %arg3[%487] : memref<400xf32, #tpu.memory_space<smem>>
    %489 = vector.broadcast %488 : f32 to vector<16x128xf32>
    %490 = arith.mulf %489, %475 : vector<16x128xf32>
    %491 = arith.addf %422, %490 : vector<16x128xf32>
    %c2_i32_128 = arith.constant 2 : i32
    %492 = arith.addi %479, %c2_i32_128 : i32
    %493 = arith.index_cast %492 : i32 to index
    %494 = memref.load %arg3[%493] : memref<400xf32, #tpu.memory_space<smem>>
    %495 = vector.broadcast %494 : f32 to vector<16x128xf32>
    %496 = arith.mulf %495, %475 : vector<16x128xf32>
    %497 = arith.addf %428, %496 : vector<16x128xf32>
    %c3_i32_129 = arith.constant 3 : i32
    %498 = arith.addi %479, %c3_i32_129 : i32
    %499 = arith.index_cast %498 : i32 to index
    %500 = memref.load %arg3[%499] : memref<400xf32, #tpu.memory_space<smem>>
    %501 = vector.broadcast %500 : f32 to vector<16x128xf32>
    %502 = arith.mulf %501, %475 : vector<16x128xf32>
    %503 = arith.addf %434, %502 : vector<16x128xf32>
    %c4_i32_130 = arith.constant 4 : i32
    %504 = arith.addi %479, %c4_i32_130 : i32
    %505 = arith.index_cast %504 : i32 to index
    %506 = memref.load %arg3[%505] : memref<400xf32, #tpu.memory_space<smem>>
    %507 = vector.broadcast %506 : f32 to vector<16x128xf32>
    %508 = arith.mulf %507, %475 : vector<16x128xf32>
    %509 = arith.addf %440, %508 : vector<16x128xf32>
    %c2_i32_131 = arith.constant 2 : i32
    %510 = arith.muli %arg1, %c2_i32_131 : i32
    %c1_i32_132 = arith.constant 1 : i32
    %511 = arith.addi %510, %c1_i32_132 : i32
    %c100_i32_133 = arith.constant 100 : i32
    %512 = arith.muli %511, %c100_i32_133 : i32
    %c35_i32_134 = arith.constant 35 : i32
    %513 = arith.addi %512, %c35_i32_134 : i32
    %c0_i32_135 = arith.constant 0 : i32
    %514 = arith.addi %513, %c0_i32_135 : i32
    %515 = arith.index_cast %514 : i32 to index
    %516 = memref.load %arg3[%515] : memref<400xf32, #tpu.memory_space<smem>>
    %517 = vector.broadcast %516 : f32 to vector<16x128xf32>
    %518 = arith.mulf %517, %475 : vector<16x128xf32>
    %519 = arith.addf %450, %518 : vector<16x128xf32>
    %c1_i32_136 = arith.constant 1 : i32
    %520 = arith.addi %513, %c1_i32_136 : i32
    %521 = arith.index_cast %520 : i32 to index
    %522 = memref.load %arg3[%521] : memref<400xf32, #tpu.memory_space<smem>>
    %523 = vector.broadcast %522 : f32 to vector<16x128xf32>
    %524 = arith.mulf %523, %475 : vector<16x128xf32>
    %525 = arith.addf %456, %524 : vector<16x128xf32>
    %c2_i32_137 = arith.constant 2 : i32
    %526 = arith.addi %513, %c2_i32_137 : i32
    %527 = arith.index_cast %526 : i32 to index
    %528 = memref.load %arg3[%527] : memref<400xf32, #tpu.memory_space<smem>>
    %529 = vector.broadcast %528 : f32 to vector<16x128xf32>
    %530 = arith.mulf %529, %475 : vector<16x128xf32>
    %531 = arith.addf %462, %530 : vector<16x128xf32>
    %c3_i32_138 = arith.constant 3 : i32
    %532 = arith.addi %513, %c3_i32_138 : i32
    %533 = arith.index_cast %532 : i32 to index
    %534 = memref.load %arg3[%533] : memref<400xf32, #tpu.memory_space<smem>>
    %535 = vector.broadcast %534 : f32 to vector<16x128xf32>
    %536 = arith.mulf %535, %475 : vector<16x128xf32>
    %537 = arith.addf %468, %536 : vector<16x128xf32>
    %c4_i32_139 = arith.constant 4 : i32
    %538 = arith.addi %513, %c4_i32_139 : i32
    %539 = arith.index_cast %538 : i32 to index
    %540 = memref.load %arg3[%539] : memref<400xf32, #tpu.memory_space<smem>>
    %541 = vector.broadcast %540 : f32 to vector<16x128xf32>
    %542 = arith.mulf %541, %475 : vector<16x128xf32>
    %543 = arith.addf %474, %542 : vector<16x128xf32>
    %c13_i32_140 = arith.constant 13 : i32
    %544 = tpu.dynamic_rotate %337 by %c13_i32_140 dim 0 : vector<16x128xf32>, i32 -> vector<16x128xf32>
    %c2_i32_141 = arith.constant 2 : i32
    %545 = arith.muli %arg1, %c2_i32_141 : i32
    %c0_i32_142 = arith.constant 0 : i32
    %546 = arith.addi %545, %c0_i32_142 : i32
    %c100_i32_143 = arith.constant 100 : i32
    %547 = arith.muli %546, %c100_i32_143 : i32
    %c40_i32 = arith.constant 40 : i32
    %548 = arith.addi %547, %c40_i32 : i32
    %c0_i32_144 = arith.constant 0 : i32
    %549 = arith.addi %548, %c0_i32_144 : i32
    %550 = arith.index_cast %549 : i32 to index
    %551 = memref.load %arg3[%550] : memref<400xf32, #tpu.memory_space<smem>>
    %552 = vector.broadcast %551 : f32 to vector<16x128xf32>
    %553 = arith.mulf %552, %544 : vector<16x128xf32>
    %554 = arith.addf %485, %553 : vector<16x128xf32>
    %c1_i32_145 = arith.constant 1 : i32
    %555 = arith.addi %548, %c1_i32_145 : i32
    %556 = arith.index_cast %555 : i32 to index
    %557 = memref.load %arg3[%556] : memref<400xf32, #tpu.memory_space<smem>>
    %558 = vector.broadcast %557 : f32 to vector<16x128xf32>
    %559 = arith.mulf %558, %544 : vector<16x128xf32>
    %560 = arith.addf %491, %559 : vector<16x128xf32>
    %c2_i32_146 = arith.constant 2 : i32
    %561 = arith.addi %548, %c2_i32_146 : i32
    %562 = arith.index_cast %561 : i32 to index
    %563 = memref.load %arg3[%562] : memref<400xf32, #tpu.memory_space<smem>>
    %564 = vector.broadcast %563 : f32 to vector<16x128xf32>
    %565 = arith.mulf %564, %544 : vector<16x128xf32>
    %566 = arith.addf %497, %565 : vector<16x128xf32>
    %c3_i32_147 = arith.constant 3 : i32
    %567 = arith.addi %548, %c3_i32_147 : i32
    %568 = arith.index_cast %567 : i32 to index
    %569 = memref.load %arg3[%568] : memref<400xf32, #tpu.memory_space<smem>>
    %570 = vector.broadcast %569 : f32 to vector<16x128xf32>
    %571 = arith.mulf %570, %544 : vector<16x128xf32>
    %572 = arith.addf %503, %571 : vector<16x128xf32>
    %c4_i32_148 = arith.constant 4 : i32
    %573 = arith.addi %548, %c4_i32_148 : i32
    %574 = arith.index_cast %573 : i32 to index
    %575 = memref.load %arg3[%574] : memref<400xf32, #tpu.memory_space<smem>>
    %576 = vector.broadcast %575 : f32 to vector<16x128xf32>
    %577 = arith.mulf %576, %544 : vector<16x128xf32>
    %578 = arith.addf %509, %577 : vector<16x128xf32>
    %c2_i32_149 = arith.constant 2 : i32
    %579 = arith.muli %arg1, %c2_i32_149 : i32
    %c1_i32_150 = arith.constant 1 : i32
    %580 = arith.addi %579, %c1_i32_150 : i32
    %c100_i32_151 = arith.constant 100 : i32
    %581 = arith.muli %580, %c100_i32_151 : i32
    %c40_i32_152 = arith.constant 40 : i32
    %582 = arith.addi %581, %c40_i32_152 : i32
    %c0_i32_153 = arith.constant 0 : i32
    %583 = arith.addi %582, %c0_i32_153 : i32
    %584 = arith.index_cast %583 : i32 to index
    %585 = memref.load %arg3[%584] : memref<400xf32, #tpu.memory_space<smem>>
    %586 = vector.broadcast %585 : f32 to vector<16x128xf32>
    %587 = arith.mulf %586, %544 : vector<16x128xf32>
    %588 = arith.addf %519, %587 : vector<16x128xf32>
    %c1_i32_154 = arith.constant 1 : i32
    %589 = arith.addi %582, %c1_i32_154 : i32
    %590 = arith.index_cast %589 : i32 to index
    %591 = memref.load %arg3[%590] : memref<400xf32, #tpu.memory_space<smem>>
    %592 = vector.broadcast %591 : f32 to vector<16x128xf32>
    %593 = arith.mulf %592, %544 : vector<16x128xf32>
    %594 = arith.addf %525, %593 : vector<16x128xf32>
    %c2_i32_155 = arith.constant 2 : i32
    %595 = arith.addi %582, %c2_i32_155 : i32
    %596 = arith.index_cast %595 : i32 to index
    %597 = memref.load %arg3[%596] : memref<400xf32, #tpu.memory_space<smem>>
    %598 = vector.broadcast %597 : f32 to vector<16x128xf32>
    %599 = arith.mulf %598, %544 : vector<16x128xf32>
    %600 = arith.addf %531, %599 : vector<16x128xf32>
    %c3_i32_156 = arith.constant 3 : i32
    %601 = arith.addi %582, %c3_i32_156 : i32
    %602 = arith.index_cast %601 : i32 to index
    %603 = memref.load %arg3[%602] : memref<400xf32, #tpu.memory_space<smem>>
    %604 = vector.broadcast %603 : f32 to vector<16x128xf32>
    %605 = arith.mulf %604, %544 : vector<16x128xf32>
    %606 = arith.addf %537, %605 : vector<16x128xf32>
    %c4_i32_157 = arith.constant 4 : i32
    %607 = arith.addi %582, %c4_i32_157 : i32
    %608 = arith.index_cast %607 : i32 to index
    %609 = memref.load %arg3[%608] : memref<400xf32, #tpu.memory_space<smem>>
    %610 = vector.broadcast %609 : f32 to vector<16x128xf32>
    %611 = arith.mulf %610, %544 : vector<16x128xf32>
    %612 = arith.addf %543, %611 : vector<16x128xf32>
    %c12_i32_158 = arith.constant 12 : i32
    %613 = tpu.dynamic_rotate %337 by %c12_i32_158 dim 0 : vector<16x128xf32>, i32 -> vector<16x128xf32>
    %c2_i32_159 = arith.constant 2 : i32
    %614 = arith.muli %arg1, %c2_i32_159 : i32
    %c0_i32_160 = arith.constant 0 : i32
    %615 = arith.addi %614, %c0_i32_160 : i32
    %c100_i32_161 = arith.constant 100 : i32
    %616 = arith.muli %615, %c100_i32_161 : i32
    %c45_i32 = arith.constant 45 : i32
    %617 = arith.addi %616, %c45_i32 : i32
    %c0_i32_162 = arith.constant 0 : i32
    %618 = arith.addi %617, %c0_i32_162 : i32
    %619 = arith.index_cast %618 : i32 to index
    %620 = memref.load %arg3[%619] : memref<400xf32, #tpu.memory_space<smem>>
    %621 = vector.broadcast %620 : f32 to vector<16x128xf32>
    %622 = arith.mulf %621, %613 : vector<16x128xf32>
    %623 = arith.addf %554, %622 : vector<16x128xf32>
    %c1_i32_163 = arith.constant 1 : i32
    %624 = arith.addi %617, %c1_i32_163 : i32
    %625 = arith.index_cast %624 : i32 to index
    %626 = memref.load %arg3[%625] : memref<400xf32, #tpu.memory_space<smem>>
    %627 = vector.broadcast %626 : f32 to vector<16x128xf32>
    %628 = arith.mulf %627, %613 : vector<16x128xf32>
    %629 = arith.addf %560, %628 : vector<16x128xf32>
    %c2_i32_164 = arith.constant 2 : i32
    %630 = arith.addi %617, %c2_i32_164 : i32
    %631 = arith.index_cast %630 : i32 to index
    %632 = memref.load %arg3[%631] : memref<400xf32, #tpu.memory_space<smem>>
    %633 = vector.broadcast %632 : f32 to vector<16x128xf32>
    %634 = arith.mulf %633, %613 : vector<16x128xf32>
    %635 = arith.addf %566, %634 : vector<16x128xf32>
    %c3_i32_165 = arith.constant 3 : i32
    %636 = arith.addi %617, %c3_i32_165 : i32
    %637 = arith.index_cast %636 : i32 to index
    %638 = memref.load %arg3[%637] : memref<400xf32, #tpu.memory_space<smem>>
    %639 = vector.broadcast %638 : f32 to vector<16x128xf32>
    %640 = arith.mulf %639, %613 : vector<16x128xf32>
    %641 = arith.addf %572, %640 : vector<16x128xf32>
    %c4_i32_166 = arith.constant 4 : i32
    %642 = arith.addi %617, %c4_i32_166 : i32
    %643 = arith.index_cast %642 : i32 to index
    %644 = memref.load %arg3[%643] : memref<400xf32, #tpu.memory_space<smem>>
    %645 = vector.broadcast %644 : f32 to vector<16x128xf32>
    %646 = arith.mulf %645, %613 : vector<16x128xf32>
    %647 = arith.addf %578, %646 : vector<16x128xf32>
    %c2_i32_167 = arith.constant 2 : i32
    %648 = arith.muli %arg1, %c2_i32_167 : i32
    %c1_i32_168 = arith.constant 1 : i32
    %649 = arith.addi %648, %c1_i32_168 : i32
    %c100_i32_169 = arith.constant 100 : i32
    %650 = arith.muli %649, %c100_i32_169 : i32
    %c45_i32_170 = arith.constant 45 : i32
    %651 = arith.addi %650, %c45_i32_170 : i32
    %c0_i32_171 = arith.constant 0 : i32
    %652 = arith.addi %651, %c0_i32_171 : i32
    %653 = arith.index_cast %652 : i32 to index
    %654 = memref.load %arg3[%653] : memref<400xf32, #tpu.memory_space<smem>>
    %655 = vector.broadcast %654 : f32 to vector<16x128xf32>
    %656 = arith.mulf %655, %613 : vector<16x128xf32>
    %657 = arith.addf %588, %656 : vector<16x128xf32>
    %c1_i32_172 = arith.constant 1 : i32
    %658 = arith.addi %651, %c1_i32_172 : i32
    %659 = arith.index_cast %658 : i32 to index
    %660 = memref.load %arg3[%659] : memref<400xf32, #tpu.memory_space<smem>>
    %661 = vector.broadcast %660 : f32 to vector<16x128xf32>
    %662 = arith.mulf %661, %613 : vector<16x128xf32>
    %663 = arith.addf %594, %662 : vector<16x128xf32>
    %c2_i32_173 = arith.constant 2 : i32
    %664 = arith.addi %651, %c2_i32_173 : i32
    %665 = arith.index_cast %664 : i32 to index
    %666 = memref.load %arg3[%665] : memref<400xf32, #tpu.memory_space<smem>>
    %667 = vector.broadcast %666 : f32 to vector<16x128xf32>
    %668 = arith.mulf %667, %613 : vector<16x128xf32>
    %669 = arith.addf %600, %668 : vector<16x128xf32>
    %c3_i32_174 = arith.constant 3 : i32
    %670 = arith.addi %651, %c3_i32_174 : i32
    %671 = arith.index_cast %670 : i32 to index
    %672 = memref.load %arg3[%671] : memref<400xf32, #tpu.memory_space<smem>>
    %673 = vector.broadcast %672 : f32 to vector<16x128xf32>
    %674 = arith.mulf %673, %613 : vector<16x128xf32>
    %675 = arith.addf %606, %674 : vector<16x128xf32>
    %c4_i32_175 = arith.constant 4 : i32
    %676 = arith.addi %651, %c4_i32_175 : i32
    %677 = arith.index_cast %676 : i32 to index
    %678 = memref.load %arg3[%677] : memref<400xf32, #tpu.memory_space<smem>>
    %679 = vector.broadcast %678 : f32 to vector<16x128xf32>
    %680 = arith.mulf %679, %613 : vector<16x128xf32>
    %681 = arith.addf %612, %680 : vector<16x128xf32>
    %c0_176 = arith.constant 0 : index
    %c2 = arith.constant 2 : index
    %c0_177 = arith.constant 0 : index
    %c0_178 = arith.constant 0 : index
    %682 = vector.load %arg2[%c0_176, %c2, %c0_177, %c0_178] : memref<1x4x16x128xf32, #tpu.memory_space<vmem>>, vector<1x1x16x128xf32>
    %683 = vector.shape_cast %682 : vector<1x1x16x128xf32> to vector<16x128xf32>
    %c2_i32_179 = arith.constant 2 : i32
    %684 = arith.muli %arg1, %c2_i32_179 : i32
    %c0_i32_180 = arith.constant 0 : i32
    %685 = arith.addi %684, %c0_i32_180 : i32
    %c100_i32_181 = arith.constant 100 : i32
    %686 = arith.muli %685, %c100_i32_181 : i32
    %c50_i32 = arith.constant 50 : i32
    %687 = arith.addi %686, %c50_i32 : i32
    %c0_i32_182 = arith.constant 0 : i32
    %688 = arith.addi %687, %c0_i32_182 : i32
    %689 = arith.index_cast %688 : i32 to index
    %690 = memref.load %arg3[%689] : memref<400xf32, #tpu.memory_space<smem>>
    %691 = vector.broadcast %690 : f32 to vector<16x128xf32>
    %692 = arith.mulf %691, %683 : vector<16x128xf32>
    %693 = arith.addf %623, %692 : vector<16x128xf32>
    %c1_i32_183 = arith.constant 1 : i32
    %694 = arith.addi %687, %c1_i32_183 : i32
    %695 = arith.index_cast %694 : i32 to index
    %696 = memref.load %arg3[%695] : memref<400xf32, #tpu.memory_space<smem>>
    %697 = vector.broadcast %696 : f32 to vector<16x128xf32>
    %698 = arith.mulf %697, %683 : vector<16x128xf32>
    %699 = arith.addf %629, %698 : vector<16x128xf32>
    %c2_i32_184 = arith.constant 2 : i32
    %700 = arith.addi %687, %c2_i32_184 : i32
    %701 = arith.index_cast %700 : i32 to index
    %702 = memref.load %arg3[%701] : memref<400xf32, #tpu.memory_space<smem>>
    %703 = vector.broadcast %702 : f32 to vector<16x128xf32>
    %704 = arith.mulf %703, %683 : vector<16x128xf32>
    %705 = arith.addf %635, %704 : vector<16x128xf32>
    %c3_i32_185 = arith.constant 3 : i32
    %706 = arith.addi %687, %c3_i32_185 : i32
    %707 = arith.index_cast %706 : i32 to index
    %708 = memref.load %arg3[%707] : memref<400xf32, #tpu.memory_space<smem>>
    %709 = vector.broadcast %708 : f32 to vector<16x128xf32>
    %710 = arith.mulf %709, %683 : vector<16x128xf32>
    %711 = arith.addf %641, %710 : vector<16x128xf32>
    %c4_i32_186 = arith.constant 4 : i32
    %712 = arith.addi %687, %c4_i32_186 : i32
    %713 = arith.index_cast %712 : i32 to index
    %714 = memref.load %arg3[%713] : memref<400xf32, #tpu.memory_space<smem>>
    %715 = vector.broadcast %714 : f32 to vector<16x128xf32>
    %716 = arith.mulf %715, %683 : vector<16x128xf32>
    %717 = arith.addf %647, %716 : vector<16x128xf32>
    %c2_i32_187 = arith.constant 2 : i32
    %718 = arith.muli %arg1, %c2_i32_187 : i32
    %c1_i32_188 = arith.constant 1 : i32
    %719 = arith.addi %718, %c1_i32_188 : i32
    %c100_i32_189 = arith.constant 100 : i32
    %720 = arith.muli %719, %c100_i32_189 : i32
    %c50_i32_190 = arith.constant 50 : i32
    %721 = arith.addi %720, %c50_i32_190 : i32
    %c0_i32_191 = arith.constant 0 : i32
    %722 = arith.addi %721, %c0_i32_191 : i32
    %723 = arith.index_cast %722 : i32 to index
    %724 = memref.load %arg3[%723] : memref<400xf32, #tpu.memory_space<smem>>
    %725 = vector.broadcast %724 : f32 to vector<16x128xf32>
    %726 = arith.mulf %725, %683 : vector<16x128xf32>
    %727 = arith.addf %657, %726 : vector<16x128xf32>
    %c1_i32_192 = arith.constant 1 : i32
    %728 = arith.addi %721, %c1_i32_192 : i32
    %729 = arith.index_cast %728 : i32 to index
    %730 = memref.load %arg3[%729] : memref<400xf32, #tpu.memory_space<smem>>
    %731 = vector.broadcast %730 : f32 to vector<16x128xf32>
    %732 = arith.mulf %731, %683 : vector<16x128xf32>
    %733 = arith.addf %663, %732 : vector<16x128xf32>
    %c2_i32_193 = arith.constant 2 : i32
    %734 = arith.addi %721, %c2_i32_193 : i32
    %735 = arith.index_cast %734 : i32 to index
    %736 = memref.load %arg3[%735] : memref<400xf32, #tpu.memory_space<smem>>
    %737 = vector.broadcast %736 : f32 to vector<16x128xf32>
    %738 = arith.mulf %737, %683 : vector<16x128xf32>
    %739 = arith.addf %669, %738 : vector<16x128xf32>
    %c3_i32_194 = arith.constant 3 : i32
    %740 = arith.addi %721, %c3_i32_194 : i32
    %741 = arith.index_cast %740 : i32 to index
    %742 = memref.load %arg3[%741] : memref<400xf32, #tpu.memory_space<smem>>
    %743 = vector.broadcast %742 : f32 to vector<16x128xf32>
    %744 = arith.mulf %743, %683 : vector<16x128xf32>
    %745 = arith.addf %675, %744 : vector<16x128xf32>
    %c4_i32_195 = arith.constant 4 : i32
    %746 = arith.addi %721, %c4_i32_195 : i32
    %747 = arith.index_cast %746 : i32 to index
    %748 = memref.load %arg3[%747] : memref<400xf32, #tpu.memory_space<smem>>
    %749 = vector.broadcast %748 : f32 to vector<16x128xf32>
    %750 = arith.mulf %749, %683 : vector<16x128xf32>
    %751 = arith.addf %681, %750 : vector<16x128xf32>
    %c15_i32_196 = arith.constant 15 : i32
    %752 = tpu.dynamic_rotate %683 by %c15_i32_196 dim 0 : vector<16x128xf32>, i32 -> vector<16x128xf32>
    %c2_i32_197 = arith.constant 2 : i32
    %753 = arith.muli %arg1, %c2_i32_197 : i32
    %c0_i32_198 = arith.constant 0 : i32
    %754 = arith.addi %753, %c0_i32_198 : i32
    %c100_i32_199 = arith.constant 100 : i32
    %755 = arith.muli %754, %c100_i32_199 : i32
    %c55_i32 = arith.constant 55 : i32
    %756 = arith.addi %755, %c55_i32 : i32
    %c0_i32_200 = arith.constant 0 : i32
    %757 = arith.addi %756, %c0_i32_200 : i32
    %758 = arith.index_cast %757 : i32 to index
    %759 = memref.load %arg3[%758] : memref<400xf32, #tpu.memory_space<smem>>
    %760 = vector.broadcast %759 : f32 to vector<16x128xf32>
    %761 = arith.mulf %760, %752 : vector<16x128xf32>
    %762 = arith.addf %693, %761 : vector<16x128xf32>
    %c1_i32_201 = arith.constant 1 : i32
    %763 = arith.addi %756, %c1_i32_201 : i32
    %764 = arith.index_cast %763 : i32 to index
    %765 = memref.load %arg3[%764] : memref<400xf32, #tpu.memory_space<smem>>
    %766 = vector.broadcast %765 : f32 to vector<16x128xf32>
    %767 = arith.mulf %766, %752 : vector<16x128xf32>
    %768 = arith.addf %699, %767 : vector<16x128xf32>
    %c2_i32_202 = arith.constant 2 : i32
    %769 = arith.addi %756, %c2_i32_202 : i32
    %770 = arith.index_cast %769 : i32 to index
    %771 = memref.load %arg3[%770] : memref<400xf32, #tpu.memory_space<smem>>
    %772 = vector.broadcast %771 : f32 to vector<16x128xf32>
    %773 = arith.mulf %772, %752 : vector<16x128xf32>
    %774 = arith.addf %705, %773 : vector<16x128xf32>
    %c3_i32_203 = arith.constant 3 : i32
    %775 = arith.addi %756, %c3_i32_203 : i32
    %776 = arith.index_cast %775 : i32 to index
    %777 = memref.load %arg3[%776] : memref<400xf32, #tpu.memory_space<smem>>
    %778 = vector.broadcast %777 : f32 to vector<16x128xf32>
    %779 = arith.mulf %778, %752 : vector<16x128xf32>
    %780 = arith.addf %711, %779 : vector<16x128xf32>
    %c4_i32_204 = arith.constant 4 : i32
    %781 = arith.addi %756, %c4_i32_204 : i32
    %782 = arith.index_cast %781 : i32 to index
    %783 = memref.load %arg3[%782] : memref<400xf32, #tpu.memory_space<smem>>
    %784 = vector.broadcast %783 : f32 to vector<16x128xf32>
    %785 = arith.mulf %784, %752 : vector<16x128xf32>
    %786 = arith.addf %717, %785 : vector<16x128xf32>
    %c2_i32_205 = arith.constant 2 : i32
    %787 = arith.muli %arg1, %c2_i32_205 : i32
    %c1_i32_206 = arith.constant 1 : i32
    %788 = arith.addi %787, %c1_i32_206 : i32
    %c100_i32_207 = arith.constant 100 : i32
    %789 = arith.muli %788, %c100_i32_207 : i32
    %c55_i32_208 = arith.constant 55 : i32
    %790 = arith.addi %789, %c55_i32_208 : i32
    %c0_i32_209 = arith.constant 0 : i32
    %791 = arith.addi %790, %c0_i32_209 : i32
    %792 = arith.index_cast %791 : i32 to index
    %793 = memref.load %arg3[%792] : memref<400xf32, #tpu.memory_space<smem>>
    %794 = vector.broadcast %793 : f32 to vector<16x128xf32>
    %795 = arith.mulf %794, %752 : vector<16x128xf32>
    %796 = arith.addf %727, %795 : vector<16x128xf32>
    %c1_i32_210 = arith.constant 1 : i32
    %797 = arith.addi %790, %c1_i32_210 : i32
    %798 = arith.index_cast %797 : i32 to index
    %799 = memref.load %arg3[%798] : memref<400xf32, #tpu.memory_space<smem>>
    %800 = vector.broadcast %799 : f32 to vector<16x128xf32>
    %801 = arith.mulf %800, %752 : vector<16x128xf32>
    %802 = arith.addf %733, %801 : vector<16x128xf32>
    %c2_i32_211 = arith.constant 2 : i32
    %803 = arith.addi %790, %c2_i32_211 : i32
    %804 = arith.index_cast %803 : i32 to index
    %805 = memref.load %arg3[%804] : memref<400xf32, #tpu.memory_space<smem>>
    %806 = vector.broadcast %805 : f32 to vector<16x128xf32>
    %807 = arith.mulf %806, %752 : vector<16x128xf32>
    %808 = arith.addf %739, %807 : vector<16x128xf32>
    %c3_i32_212 = arith.constant 3 : i32
    %809 = arith.addi %790, %c3_i32_212 : i32
    %810 = arith.index_cast %809 : i32 to index
    %811 = memref.load %arg3[%810] : memref<400xf32, #tpu.memory_space<smem>>
    %812 = vector.broadcast %811 : f32 to vector<16x128xf32>
    %813 = arith.mulf %812, %752 : vector<16x128xf32>
    %814 = arith.addf %745, %813 : vector<16x128xf32>
    %c4_i32_213 = arith.constant 4 : i32
    %815 = arith.addi %790, %c4_i32_213 : i32
    %816 = arith.index_cast %815 : i32 to index
    %817 = memref.load %arg3[%816] : memref<400xf32, #tpu.memory_space<smem>>
    %818 = vector.broadcast %817 : f32 to vector<16x128xf32>
    %819 = arith.mulf %818, %752 : vector<16x128xf32>
    %820 = arith.addf %751, %819 : vector<16x128xf32>
    %c14_i32_214 = arith.constant 14 : i32
    %821 = tpu.dynamic_rotate %683 by %c14_i32_214 dim 0 : vector<16x128xf32>, i32 -> vector<16x128xf32>
    %c2_i32_215 = arith.constant 2 : i32
    %822 = arith.muli %arg1, %c2_i32_215 : i32
    %c0_i32_216 = arith.constant 0 : i32
    %823 = arith.addi %822, %c0_i32_216 : i32
    %c100_i32_217 = arith.constant 100 : i32
    %824 = arith.muli %823, %c100_i32_217 : i32
    %c60_i32 = arith.constant 60 : i32
    %825 = arith.addi %824, %c60_i32 : i32
    %c0_i32_218 = arith.constant 0 : i32
    %826 = arith.addi %825, %c0_i32_218 : i32
    %827 = arith.index_cast %826 : i32 to index
    %828 = memref.load %arg3[%827] : memref<400xf32, #tpu.memory_space<smem>>
    %829 = vector.broadcast %828 : f32 to vector<16x128xf32>
    %830 = arith.mulf %829, %821 : vector<16x128xf32>
    %831 = arith.addf %762, %830 : vector<16x128xf32>
    %c1_i32_219 = arith.constant 1 : i32
    %832 = arith.addi %825, %c1_i32_219 : i32
    %833 = arith.index_cast %832 : i32 to index
    %834 = memref.load %arg3[%833] : memref<400xf32, #tpu.memory_space<smem>>
    %835 = vector.broadcast %834 : f32 to vector<16x128xf32>
    %836 = arith.mulf %835, %821 : vector<16x128xf32>
    %837 = arith.addf %768, %836 : vector<16x128xf32>
    %c2_i32_220 = arith.constant 2 : i32
    %838 = arith.addi %825, %c2_i32_220 : i32
    %839 = arith.index_cast %838 : i32 to index
    %840 = memref.load %arg3[%839] : memref<400xf32, #tpu.memory_space<smem>>
    %841 = vector.broadcast %840 : f32 to vector<16x128xf32>
    %842 = arith.mulf %841, %821 : vector<16x128xf32>
    %843 = arith.addf %774, %842 : vector<16x128xf32>
    %c3_i32_221 = arith.constant 3 : i32
    %844 = arith.addi %825, %c3_i32_221 : i32
    %845 = arith.index_cast %844 : i32 to index
    %846 = memref.load %arg3[%845] : memref<400xf32, #tpu.memory_space<smem>>
    %847 = vector.broadcast %846 : f32 to vector<16x128xf32>
    %848 = arith.mulf %847, %821 : vector<16x128xf32>
    %849 = arith.addf %780, %848 : vector<16x128xf32>
    %c4_i32_222 = arith.constant 4 : i32
    %850 = arith.addi %825, %c4_i32_222 : i32
    %851 = arith.index_cast %850 : i32 to index
    %852 = memref.load %arg3[%851] : memref<400xf32, #tpu.memory_space<smem>>
    %853 = vector.broadcast %852 : f32 to vector<16x128xf32>
    %854 = arith.mulf %853, %821 : vector<16x128xf32>
    %855 = arith.addf %786, %854 : vector<16x128xf32>
    %c2_i32_223 = arith.constant 2 : i32
    %856 = arith.muli %arg1, %c2_i32_223 : i32
    %c1_i32_224 = arith.constant 1 : i32
    %857 = arith.addi %856, %c1_i32_224 : i32
    %c100_i32_225 = arith.constant 100 : i32
    %858 = arith.muli %857, %c100_i32_225 : i32
    %c60_i32_226 = arith.constant 60 : i32
    %859 = arith.addi %858, %c60_i32_226 : i32
    %c0_i32_227 = arith.constant 0 : i32
    %860 = arith.addi %859, %c0_i32_227 : i32
    %861 = arith.index_cast %860 : i32 to index
    %862 = memref.load %arg3[%861] : memref<400xf32, #tpu.memory_space<smem>>
    %863 = vector.broadcast %862 : f32 to vector<16x128xf32>
    %864 = arith.mulf %863, %821 : vector<16x128xf32>
    %865 = arith.addf %796, %864 : vector<16x128xf32>
    %c1_i32_228 = arith.constant 1 : i32
    %866 = arith.addi %859, %c1_i32_228 : i32
    %867 = arith.index_cast %866 : i32 to index
    %868 = memref.load %arg3[%867] : memref<400xf32, #tpu.memory_space<smem>>
    %869 = vector.broadcast %868 : f32 to vector<16x128xf32>
    %870 = arith.mulf %869, %821 : vector<16x128xf32>
    %871 = arith.addf %802, %870 : vector<16x128xf32>
    %c2_i32_229 = arith.constant 2 : i32
    %872 = arith.addi %859, %c2_i32_229 : i32
    %873 = arith.index_cast %872 : i32 to index
    %874 = memref.load %arg3[%873] : memref<400xf32, #tpu.memory_space<smem>>
    %875 = vector.broadcast %874 : f32 to vector<16x128xf32>
    %876 = arith.mulf %875, %821 : vector<16x128xf32>
    %877 = arith.addf %808, %876 : vector<16x128xf32>
    %c3_i32_230 = arith.constant 3 : i32
    %878 = arith.addi %859, %c3_i32_230 : i32
    %879 = arith.index_cast %878 : i32 to index
    %880 = memref.load %arg3[%879] : memref<400xf32, #tpu.memory_space<smem>>
    %881 = vector.broadcast %880 : f32 to vector<16x128xf32>
    %882 = arith.mulf %881, %821 : vector<16x128xf32>
    %883 = arith.addf %814, %882 : vector<16x128xf32>
    %c4_i32_231 = arith.constant 4 : i32
    %884 = arith.addi %859, %c4_i32_231 : i32
    %885 = arith.index_cast %884 : i32 to index
    %886 = memref.load %arg3[%885] : memref<400xf32, #tpu.memory_space<smem>>
    %887 = vector.broadcast %886 : f32 to vector<16x128xf32>
    %888 = arith.mulf %887, %821 : vector<16x128xf32>
    %889 = arith.addf %820, %888 : vector<16x128xf32>
    %c13_i32_232 = arith.constant 13 : i32
    %890 = tpu.dynamic_rotate %683 by %c13_i32_232 dim 0 : vector<16x128xf32>, i32 -> vector<16x128xf32>
    %c2_i32_233 = arith.constant 2 : i32
    %891 = arith.muli %arg1, %c2_i32_233 : i32
    %c0_i32_234 = arith.constant 0 : i32
    %892 = arith.addi %891, %c0_i32_234 : i32
    %c100_i32_235 = arith.constant 100 : i32
    %893 = arith.muli %892, %c100_i32_235 : i32
    %c65_i32 = arith.constant 65 : i32
    %894 = arith.addi %893, %c65_i32 : i32
    %c0_i32_236 = arith.constant 0 : i32
    %895 = arith.addi %894, %c0_i32_236 : i32
    %896 = arith.index_cast %895 : i32 to index
    %897 = memref.load %arg3[%896] : memref<400xf32, #tpu.memory_space<smem>>
    %898 = vector.broadcast %897 : f32 to vector<16x128xf32>
    %899 = arith.mulf %898, %890 : vector<16x128xf32>
    %900 = arith.addf %831, %899 : vector<16x128xf32>
    %c1_i32_237 = arith.constant 1 : i32
    %901 = arith.addi %894, %c1_i32_237 : i32
    %902 = arith.index_cast %901 : i32 to index
    %903 = memref.load %arg3[%902] : memref<400xf32, #tpu.memory_space<smem>>
    %904 = vector.broadcast %903 : f32 to vector<16x128xf32>
    %905 = arith.mulf %904, %890 : vector<16x128xf32>
    %906 = arith.addf %837, %905 : vector<16x128xf32>
    %c2_i32_238 = arith.constant 2 : i32
    %907 = arith.addi %894, %c2_i32_238 : i32
    %908 = arith.index_cast %907 : i32 to index
    %909 = memref.load %arg3[%908] : memref<400xf32, #tpu.memory_space<smem>>
    %910 = vector.broadcast %909 : f32 to vector<16x128xf32>
    %911 = arith.mulf %910, %890 : vector<16x128xf32>
    %912 = arith.addf %843, %911 : vector<16x128xf32>
    %c3_i32_239 = arith.constant 3 : i32
    %913 = arith.addi %894, %c3_i32_239 : i32
    %914 = arith.index_cast %913 : i32 to index
    %915 = memref.load %arg3[%914] : memref<400xf32, #tpu.memory_space<smem>>
    %916 = vector.broadcast %915 : f32 to vector<16x128xf32>
    %917 = arith.mulf %916, %890 : vector<16x128xf32>
    %918 = arith.addf %849, %917 : vector<16x128xf32>
    %c4_i32_240 = arith.constant 4 : i32
    %919 = arith.addi %894, %c4_i32_240 : i32
    %920 = arith.index_cast %919 : i32 to index
    %921 = memref.load %arg3[%920] : memref<400xf32, #tpu.memory_space<smem>>
    %922 = vector.broadcast %921 : f32 to vector<16x128xf32>
    %923 = arith.mulf %922, %890 : vector<16x128xf32>
    %924 = arith.addf %855, %923 : vector<16x128xf32>
    %c2_i32_241 = arith.constant 2 : i32
    %925 = arith.muli %arg1, %c2_i32_241 : i32
    %c1_i32_242 = arith.constant 1 : i32
    %926 = arith.addi %925, %c1_i32_242 : i32
    %c100_i32_243 = arith.constant 100 : i32
    %927 = arith.muli %926, %c100_i32_243 : i32
    %c65_i32_244 = arith.constant 65 : i32
    %928 = arith.addi %927, %c65_i32_244 : i32
    %c0_i32_245 = arith.constant 0 : i32
    %929 = arith.addi %928, %c0_i32_245 : i32
    %930 = arith.index_cast %929 : i32 to index
    %931 = memref.load %arg3[%930] : memref<400xf32, #tpu.memory_space<smem>>
    %932 = vector.broadcast %931 : f32 to vector<16x128xf32>
    %933 = arith.mulf %932, %890 : vector<16x128xf32>
    %934 = arith.addf %865, %933 : vector<16x128xf32>
    %c1_i32_246 = arith.constant 1 : i32
    %935 = arith.addi %928, %c1_i32_246 : i32
    %936 = arith.index_cast %935 : i32 to index
    %937 = memref.load %arg3[%936] : memref<400xf32, #tpu.memory_space<smem>>
    %938 = vector.broadcast %937 : f32 to vector<16x128xf32>
    %939 = arith.mulf %938, %890 : vector<16x128xf32>
    %940 = arith.addf %871, %939 : vector<16x128xf32>
    %c2_i32_247 = arith.constant 2 : i32
    %941 = arith.addi %928, %c2_i32_247 : i32
    %942 = arith.index_cast %941 : i32 to index
    %943 = memref.load %arg3[%942] : memref<400xf32, #tpu.memory_space<smem>>
    %944 = vector.broadcast %943 : f32 to vector<16x128xf32>
    %945 = arith.mulf %944, %890 : vector<16x128xf32>
    %946 = arith.addf %877, %945 : vector<16x128xf32>
    %c3_i32_248 = arith.constant 3 : i32
    %947 = arith.addi %928, %c3_i32_248 : i32
    %948 = arith.index_cast %947 : i32 to index
    %949 = memref.load %arg3[%948] : memref<400xf32, #tpu.memory_space<smem>>
    %950 = vector.broadcast %949 : f32 to vector<16x128xf32>
    %951 = arith.mulf %950, %890 : vector<16x128xf32>
    %952 = arith.addf %883, %951 : vector<16x128xf32>
    %c4_i32_249 = arith.constant 4 : i32
    %953 = arith.addi %928, %c4_i32_249 : i32
    %954 = arith.index_cast %953 : i32 to index
    %955 = memref.load %arg3[%954] : memref<400xf32, #tpu.memory_space<smem>>
    %956 = vector.broadcast %955 : f32 to vector<16x128xf32>
    %957 = arith.mulf %956, %890 : vector<16x128xf32>
    %958 = arith.addf %889, %957 : vector<16x128xf32>
    %c12_i32_250 = arith.constant 12 : i32
    %959 = tpu.dynamic_rotate %683 by %c12_i32_250 dim 0 : vector<16x128xf32>, i32 -> vector<16x128xf32>
    %c2_i32_251 = arith.constant 2 : i32
    %960 = arith.muli %arg1, %c2_i32_251 : i32
    %c0_i32_252 = arith.constant 0 : i32
    %961 = arith.addi %960, %c0_i32_252 : i32
    %c100_i32_253 = arith.constant 100 : i32
    %962 = arith.muli %961, %c100_i32_253 : i32
    %c70_i32 = arith.constant 70 : i32
    %963 = arith.addi %962, %c70_i32 : i32
    %c0_i32_254 = arith.constant 0 : i32
    %964 = arith.addi %963, %c0_i32_254 : i32
    %965 = arith.index_cast %964 : i32 to index
    %966 = memref.load %arg3[%965] : memref<400xf32, #tpu.memory_space<smem>>
    %967 = vector.broadcast %966 : f32 to vector<16x128xf32>
    %968 = arith.mulf %967, %959 : vector<16x128xf32>
    %969 = arith.addf %900, %968 : vector<16x128xf32>
    %c1_i32_255 = arith.constant 1 : i32
    %970 = arith.addi %963, %c1_i32_255 : i32
    %971 = arith.index_cast %970 : i32 to index
    %972 = memref.load %arg3[%971] : memref<400xf32, #tpu.memory_space<smem>>
    %973 = vector.broadcast %972 : f32 to vector<16x128xf32>
    %974 = arith.mulf %973, %959 : vector<16x128xf32>
    %975 = arith.addf %906, %974 : vector<16x128xf32>
    %c2_i32_256 = arith.constant 2 : i32
    %976 = arith.addi %963, %c2_i32_256 : i32
    %977 = arith.index_cast %976 : i32 to index
    %978 = memref.load %arg3[%977] : memref<400xf32, #tpu.memory_space<smem>>
    %979 = vector.broadcast %978 : f32 to vector<16x128xf32>
    %980 = arith.mulf %979, %959 : vector<16x128xf32>
    %981 = arith.addf %912, %980 : vector<16x128xf32>
    %c3_i32_257 = arith.constant 3 : i32
    %982 = arith.addi %963, %c3_i32_257 : i32
    %983 = arith.index_cast %982 : i32 to index
    %984 = memref.load %arg3[%983] : memref<400xf32, #tpu.memory_space<smem>>
    %985 = vector.broadcast %984 : f32 to vector<16x128xf32>
    %986 = arith.mulf %985, %959 : vector<16x128xf32>
    %987 = arith.addf %918, %986 : vector<16x128xf32>
    %c4_i32_258 = arith.constant 4 : i32
    %988 = arith.addi %963, %c4_i32_258 : i32
    %989 = arith.index_cast %988 : i32 to index
    %990 = memref.load %arg3[%989] : memref<400xf32, #tpu.memory_space<smem>>
    %991 = vector.broadcast %990 : f32 to vector<16x128xf32>
    %992 = arith.mulf %991, %959 : vector<16x128xf32>
    %993 = arith.addf %924, %992 : vector<16x128xf32>
    %c2_i32_259 = arith.constant 2 : i32
    %994 = arith.muli %arg1, %c2_i32_259 : i32
    %c1_i32_260 = arith.constant 1 : i32
    %995 = arith.addi %994, %c1_i32_260 : i32
    %c100_i32_261 = arith.constant 100 : i32
    %996 = arith.muli %995, %c100_i32_261 : i32
    %c70_i32_262 = arith.constant 70 : i32
    %997 = arith.addi %996, %c70_i32_262 : i32
    %c0_i32_263 = arith.constant 0 : i32
    %998 = arith.addi %997, %c0_i32_263 : i32
    %999 = arith.index_cast %998 : i32 to index
    %1000 = memref.load %arg3[%999] : memref<400xf32, #tpu.memory_space<smem>>
    %1001 = vector.broadcast %1000 : f32 to vector<16x128xf32>
    %1002 = arith.mulf %1001, %959 : vector<16x128xf32>
    %1003 = arith.addf %934, %1002 : vector<16x128xf32>
    %c1_i32_264 = arith.constant 1 : i32
    %1004 = arith.addi %997, %c1_i32_264 : i32
    %1005 = arith.index_cast %1004 : i32 to index
    %1006 = memref.load %arg3[%1005] : memref<400xf32, #tpu.memory_space<smem>>
    %1007 = vector.broadcast %1006 : f32 to vector<16x128xf32>
    %1008 = arith.mulf %1007, %959 : vector<16x128xf32>
    %1009 = arith.addf %940, %1008 : vector<16x128xf32>
    %c2_i32_265 = arith.constant 2 : i32
    %1010 = arith.addi %997, %c2_i32_265 : i32
    %1011 = arith.index_cast %1010 : i32 to index
    %1012 = memref.load %arg3[%1011] : memref<400xf32, #tpu.memory_space<smem>>
    %1013 = vector.broadcast %1012 : f32 to vector<16x128xf32>
    %1014 = arith.mulf %1013, %959 : vector<16x128xf32>
    %1015 = arith.addf %946, %1014 : vector<16x128xf32>
    %c3_i32_266 = arith.constant 3 : i32
    %1016 = arith.addi %997, %c3_i32_266 : i32
    %1017 = arith.index_cast %1016 : i32 to index
    %1018 = memref.load %arg3[%1017] : memref<400xf32, #tpu.memory_space<smem>>
    %1019 = vector.broadcast %1018 : f32 to vector<16x128xf32>
    %1020 = arith.mulf %1019, %959 : vector<16x128xf32>
    %1021 = arith.addf %952, %1020 : vector<16x128xf32>
    %c4_i32_267 = arith.constant 4 : i32
    %1022 = arith.addi %997, %c4_i32_267 : i32
    %1023 = arith.index_cast %1022 : i32 to index
    %1024 = memref.load %arg3[%1023] : memref<400xf32, #tpu.memory_space<smem>>
    %1025 = vector.broadcast %1024 : f32 to vector<16x128xf32>
    %1026 = arith.mulf %1025, %959 : vector<16x128xf32>
    %1027 = arith.addf %958, %1026 : vector<16x128xf32>
    %c0_268 = arith.constant 0 : index
    %c3 = arith.constant 3 : index
    %c0_269 = arith.constant 0 : index
    %c0_270 = arith.constant 0 : index
    %1028 = vector.load %arg2[%c0_268, %c3, %c0_269, %c0_270] : memref<1x4x16x128xf32, #tpu.memory_space<vmem>>, vector<1x1x16x128xf32>
    %1029 = vector.shape_cast %1028 : vector<1x1x16x128xf32> to vector<16x128xf32>
    %c2_i32_271 = arith.constant 2 : i32
    %1030 = arith.muli %arg1, %c2_i32_271 : i32
    %c0_i32_272 = arith.constant 0 : i32
    %1031 = arith.addi %1030, %c0_i32_272 : i32
    %c100_i32_273 = arith.constant 100 : i32
    %1032 = arith.muli %1031, %c100_i32_273 : i32
    %c75_i32 = arith.constant 75 : i32
    %1033 = arith.addi %1032, %c75_i32 : i32
    %c0_i32_274 = arith.constant 0 : i32
    %1034 = arith.addi %1033, %c0_i32_274 : i32
    %1035 = arith.index_cast %1034 : i32 to index
    %1036 = memref.load %arg3[%1035] : memref<400xf32, #tpu.memory_space<smem>>
    %1037 = vector.broadcast %1036 : f32 to vector<16x128xf32>
    %1038 = arith.mulf %1037, %1029 : vector<16x128xf32>
    %1039 = arith.addf %969, %1038 : vector<16x128xf32>
    %c1_i32_275 = arith.constant 1 : i32
    %1040 = arith.addi %1033, %c1_i32_275 : i32
    %1041 = arith.index_cast %1040 : i32 to index
    %1042 = memref.load %arg3[%1041] : memref<400xf32, #tpu.memory_space<smem>>
    %1043 = vector.broadcast %1042 : f32 to vector<16x128xf32>
    %1044 = arith.mulf %1043, %1029 : vector<16x128xf32>
    %1045 = arith.addf %975, %1044 : vector<16x128xf32>
    %c2_i32_276 = arith.constant 2 : i32
    %1046 = arith.addi %1033, %c2_i32_276 : i32
    %1047 = arith.index_cast %1046 : i32 to index
    %1048 = memref.load %arg3[%1047] : memref<400xf32, #tpu.memory_space<smem>>
    %1049 = vector.broadcast %1048 : f32 to vector<16x128xf32>
    %1050 = arith.mulf %1049, %1029 : vector<16x128xf32>
    %1051 = arith.addf %981, %1050 : vector<16x128xf32>
    %c3_i32_277 = arith.constant 3 : i32
    %1052 = arith.addi %1033, %c3_i32_277 : i32
    %1053 = arith.index_cast %1052 : i32 to index
    %1054 = memref.load %arg3[%1053] : memref<400xf32, #tpu.memory_space<smem>>
    %1055 = vector.broadcast %1054 : f32 to vector<16x128xf32>
    %1056 = arith.mulf %1055, %1029 : vector<16x128xf32>
    %1057 = arith.addf %987, %1056 : vector<16x128xf32>
    %c4_i32_278 = arith.constant 4 : i32
    %1058 = arith.addi %1033, %c4_i32_278 : i32
    %1059 = arith.index_cast %1058 : i32 to index
    %1060 = memref.load %arg3[%1059] : memref<400xf32, #tpu.memory_space<smem>>
    %1061 = vector.broadcast %1060 : f32 to vector<16x128xf32>
    %1062 = arith.mulf %1061, %1029 : vector<16x128xf32>
    %1063 = arith.addf %993, %1062 : vector<16x128xf32>
    %c2_i32_279 = arith.constant 2 : i32
    %1064 = arith.muli %arg1, %c2_i32_279 : i32
    %c1_i32_280 = arith.constant 1 : i32
    %1065 = arith.addi %1064, %c1_i32_280 : i32
    %c100_i32_281 = arith.constant 100 : i32
    %1066 = arith.muli %1065, %c100_i32_281 : i32
    %c75_i32_282 = arith.constant 75 : i32
    %1067 = arith.addi %1066, %c75_i32_282 : i32
    %c0_i32_283 = arith.constant 0 : i32
    %1068 = arith.addi %1067, %c0_i32_283 : i32
    %1069 = arith.index_cast %1068 : i32 to index
    %1070 = memref.load %arg3[%1069] : memref<400xf32, #tpu.memory_space<smem>>
    %1071 = vector.broadcast %1070 : f32 to vector<16x128xf32>
    %1072 = arith.mulf %1071, %1029 : vector<16x128xf32>
    %1073 = arith.addf %1003, %1072 : vector<16x128xf32>
    %c1_i32_284 = arith.constant 1 : i32
    %1074 = arith.addi %1067, %c1_i32_284 : i32
    %1075 = arith.index_cast %1074 : i32 to index
    %1076 = memref.load %arg3[%1075] : memref<400xf32, #tpu.memory_space<smem>>
    %1077 = vector.broadcast %1076 : f32 to vector<16x128xf32>
    %1078 = arith.mulf %1077, %1029 : vector<16x128xf32>
    %1079 = arith.addf %1009, %1078 : vector<16x128xf32>
    %c2_i32_285 = arith.constant 2 : i32
    %1080 = arith.addi %1067, %c2_i32_285 : i32
    %1081 = arith.index_cast %1080 : i32 to index
    %1082 = memref.load %arg3[%1081] : memref<400xf32, #tpu.memory_space<smem>>
    %1083 = vector.broadcast %1082 : f32 to vector<16x128xf32>
    %1084 = arith.mulf %1083, %1029 : vector<16x128xf32>
    %1085 = arith.addf %1015, %1084 : vector<16x128xf32>
    %c3_i32_286 = arith.constant 3 : i32
    %1086 = arith.addi %1067, %c3_i32_286 : i32
    %1087 = arith.index_cast %1086 : i32 to index
    %1088 = memref.load %arg3[%1087] : memref<400xf32, #tpu.memory_space<smem>>
    %1089 = vector.broadcast %1088 : f32 to vector<16x128xf32>
    %1090 = arith.mulf %1089, %1029 : vector<16x128xf32>
    %1091 = arith.addf %1021, %1090 : vector<16x128xf32>
    %c4_i32_287 = arith.constant 4 : i32
    %1092 = arith.addi %1067, %c4_i32_287 : i32
    %1093 = arith.index_cast %1092 : i32 to index
    %1094 = memref.load %arg3[%1093] : memref<400xf32, #tpu.memory_space<smem>>
    %1095 = vector.broadcast %1094 : f32 to vector<16x128xf32>
    %1096 = arith.mulf %1095, %1029 : vector<16x128xf32>
    %1097 = arith.addf %1027, %1096 : vector<16x128xf32>
    %c15_i32_288 = arith.constant 15 : i32
    %1098 = tpu.dynamic_rotate %1029 by %c15_i32_288 dim 0 : vector<16x128xf32>, i32 -> vector<16x128xf32>
    %c2_i32_289 = arith.constant 2 : i32
    %1099 = arith.muli %arg1, %c2_i32_289 : i32
    %c0_i32_290 = arith.constant 0 : i32
    %1100 = arith.addi %1099, %c0_i32_290 : i32
    %c100_i32_291 = arith.constant 100 : i32
    %1101 = arith.muli %1100, %c100_i32_291 : i32
    %c80_i32 = arith.constant 80 : i32
    %1102 = arith.addi %1101, %c80_i32 : i32
    %c0_i32_292 = arith.constant 0 : i32
    %1103 = arith.addi %1102, %c0_i32_292 : i32
    %1104 = arith.index_cast %1103 : i32 to index
    %1105 = memref.load %arg3[%1104] : memref<400xf32, #tpu.memory_space<smem>>
    %1106 = vector.broadcast %1105 : f32 to vector<16x128xf32>
    %1107 = arith.mulf %1106, %1098 : vector<16x128xf32>
    %1108 = arith.addf %1039, %1107 : vector<16x128xf32>
    %c1_i32_293 = arith.constant 1 : i32
    %1109 = arith.addi %1102, %c1_i32_293 : i32
    %1110 = arith.index_cast %1109 : i32 to index
    %1111 = memref.load %arg3[%1110] : memref<400xf32, #tpu.memory_space<smem>>
    %1112 = vector.broadcast %1111 : f32 to vector<16x128xf32>
    %1113 = arith.mulf %1112, %1098 : vector<16x128xf32>
    %1114 = arith.addf %1045, %1113 : vector<16x128xf32>
    %c2_i32_294 = arith.constant 2 : i32
    %1115 = arith.addi %1102, %c2_i32_294 : i32
    %1116 = arith.index_cast %1115 : i32 to index
    %1117 = memref.load %arg3[%1116] : memref<400xf32, #tpu.memory_space<smem>>
    %1118 = vector.broadcast %1117 : f32 to vector<16x128xf32>
    %1119 = arith.mulf %1118, %1098 : vector<16x128xf32>
    %1120 = arith.addf %1051, %1119 : vector<16x128xf32>
    %c3_i32_295 = arith.constant 3 : i32
    %1121 = arith.addi %1102, %c3_i32_295 : i32
    %1122 = arith.index_cast %1121 : i32 to index
    %1123 = memref.load %arg3[%1122] : memref<400xf32, #tpu.memory_space<smem>>
    %1124 = vector.broadcast %1123 : f32 to vector<16x128xf32>
    %1125 = arith.mulf %1124, %1098 : vector<16x128xf32>
    %1126 = arith.addf %1057, %1125 : vector<16x128xf32>
    %c4_i32_296 = arith.constant 4 : i32
    %1127 = arith.addi %1102, %c4_i32_296 : i32
    %1128 = arith.index_cast %1127 : i32 to index
    %1129 = memref.load %arg3[%1128] : memref<400xf32, #tpu.memory_space<smem>>
    %1130 = vector.broadcast %1129 : f32 to vector<16x128xf32>
    %1131 = arith.mulf %1130, %1098 : vector<16x128xf32>
    %1132 = arith.addf %1063, %1131 : vector<16x128xf32>
    %c2_i32_297 = arith.constant 2 : i32
    %1133 = arith.muli %arg1, %c2_i32_297 : i32
    %c1_i32_298 = arith.constant 1 : i32
    %1134 = arith.addi %1133, %c1_i32_298 : i32
    %c100_i32_299 = arith.constant 100 : i32
    %1135 = arith.muli %1134, %c100_i32_299 : i32
    %c80_i32_300 = arith.constant 80 : i32
    %1136 = arith.addi %1135, %c80_i32_300 : i32
    %c0_i32_301 = arith.constant 0 : i32
    %1137 = arith.addi %1136, %c0_i32_301 : i32
    %1138 = arith.index_cast %1137 : i32 to index
    %1139 = memref.load %arg3[%1138] : memref<400xf32, #tpu.memory_space<smem>>
    %1140 = vector.broadcast %1139 : f32 to vector<16x128xf32>
    %1141 = arith.mulf %1140, %1098 : vector<16x128xf32>
    %1142 = arith.addf %1073, %1141 : vector<16x128xf32>
    %c1_i32_302 = arith.constant 1 : i32
    %1143 = arith.addi %1136, %c1_i32_302 : i32
    %1144 = arith.index_cast %1143 : i32 to index
    %1145 = memref.load %arg3[%1144] : memref<400xf32, #tpu.memory_space<smem>>
    %1146 = vector.broadcast %1145 : f32 to vector<16x128xf32>
    %1147 = arith.mulf %1146, %1098 : vector<16x128xf32>
    %1148 = arith.addf %1079, %1147 : vector<16x128xf32>
    %c2_i32_303 = arith.constant 2 : i32
    %1149 = arith.addi %1136, %c2_i32_303 : i32
    %1150 = arith.index_cast %1149 : i32 to index
    %1151 = memref.load %arg3[%1150] : memref<400xf32, #tpu.memory_space<smem>>
    %1152 = vector.broadcast %1151 : f32 to vector<16x128xf32>
    %1153 = arith.mulf %1152, %1098 : vector<16x128xf32>
    %1154 = arith.addf %1085, %1153 : vector<16x128xf32>
    %c3_i32_304 = arith.constant 3 : i32
    %1155 = arith.addi %1136, %c3_i32_304 : i32
    %1156 = arith.index_cast %1155 : i32 to index
    %1157 = memref.load %arg3[%1156] : memref<400xf32, #tpu.memory_space<smem>>
    %1158 = vector.broadcast %1157 : f32 to vector<16x128xf32>
    %1159 = arith.mulf %1158, %1098 : vector<16x128xf32>
    %1160 = arith.addf %1091, %1159 : vector<16x128xf32>
    %c4_i32_305 = arith.constant 4 : i32
    %1161 = arith.addi %1136, %c4_i32_305 : i32
    %1162 = arith.index_cast %1161 : i32 to index
    %1163 = memref.load %arg3[%1162] : memref<400xf32, #tpu.memory_space<smem>>
    %1164 = vector.broadcast %1163 : f32 to vector<16x128xf32>
    %1165 = arith.mulf %1164, %1098 : vector<16x128xf32>
    %1166 = arith.addf %1097, %1165 : vector<16x128xf32>
    %c14_i32_306 = arith.constant 14 : i32
    %1167 = tpu.dynamic_rotate %1029 by %c14_i32_306 dim 0 : vector<16x128xf32>, i32 -> vector<16x128xf32>
    %c2_i32_307 = arith.constant 2 : i32
    %1168 = arith.muli %arg1, %c2_i32_307 : i32
    %c0_i32_308 = arith.constant 0 : i32
    %1169 = arith.addi %1168, %c0_i32_308 : i32
    %c100_i32_309 = arith.constant 100 : i32
    %1170 = arith.muli %1169, %c100_i32_309 : i32
    %c85_i32 = arith.constant 85 : i32
    %1171 = arith.addi %1170, %c85_i32 : i32
    %c0_i32_310 = arith.constant 0 : i32
    %1172 = arith.addi %1171, %c0_i32_310 : i32
    %1173 = arith.index_cast %1172 : i32 to index
    %1174 = memref.load %arg3[%1173] : memref<400xf32, #tpu.memory_space<smem>>
    %1175 = vector.broadcast %1174 : f32 to vector<16x128xf32>
    %1176 = arith.mulf %1175, %1167 : vector<16x128xf32>
    %1177 = arith.addf %1108, %1176 : vector<16x128xf32>
    %c1_i32_311 = arith.constant 1 : i32
    %1178 = arith.addi %1171, %c1_i32_311 : i32
    %1179 = arith.index_cast %1178 : i32 to index
    %1180 = memref.load %arg3[%1179] : memref<400xf32, #tpu.memory_space<smem>>
    %1181 = vector.broadcast %1180 : f32 to vector<16x128xf32>
    %1182 = arith.mulf %1181, %1167 : vector<16x128xf32>
    %1183 = arith.addf %1114, %1182 : vector<16x128xf32>
    %c2_i32_312 = arith.constant 2 : i32
    %1184 = arith.addi %1171, %c2_i32_312 : i32
    %1185 = arith.index_cast %1184 : i32 to index
    %1186 = memref.load %arg3[%1185] : memref<400xf32, #tpu.memory_space<smem>>
    %1187 = vector.broadcast %1186 : f32 to vector<16x128xf32>
    %1188 = arith.mulf %1187, %1167 : vector<16x128xf32>
    %1189 = arith.addf %1120, %1188 : vector<16x128xf32>
    %c3_i32_313 = arith.constant 3 : i32
    %1190 = arith.addi %1171, %c3_i32_313 : i32
    %1191 = arith.index_cast %1190 : i32 to index
    %1192 = memref.load %arg3[%1191] : memref<400xf32, #tpu.memory_space<smem>>
    %1193 = vector.broadcast %1192 : f32 to vector<16x128xf32>
    %1194 = arith.mulf %1193, %1167 : vector<16x128xf32>
    %1195 = arith.addf %1126, %1194 : vector<16x128xf32>
    %c4_i32_314 = arith.constant 4 : i32
    %1196 = arith.addi %1171, %c4_i32_314 : i32
    %1197 = arith.index_cast %1196 : i32 to index
    %1198 = memref.load %arg3[%1197] : memref<400xf32, #tpu.memory_space<smem>>
    %1199 = vector.broadcast %1198 : f32 to vector<16x128xf32>
    %1200 = arith.mulf %1199, %1167 : vector<16x128xf32>
    %1201 = arith.addf %1132, %1200 : vector<16x128xf32>
    %c2_i32_315 = arith.constant 2 : i32
    %1202 = arith.muli %arg1, %c2_i32_315 : i32
    %c1_i32_316 = arith.constant 1 : i32
    %1203 = arith.addi %1202, %c1_i32_316 : i32
    %c100_i32_317 = arith.constant 100 : i32
    %1204 = arith.muli %1203, %c100_i32_317 : i32
    %c85_i32_318 = arith.constant 85 : i32
    %1205 = arith.addi %1204, %c85_i32_318 : i32
    %c0_i32_319 = arith.constant 0 : i32
    %1206 = arith.addi %1205, %c0_i32_319 : i32
    %1207 = arith.index_cast %1206 : i32 to index
    %1208 = memref.load %arg3[%1207] : memref<400xf32, #tpu.memory_space<smem>>
    %1209 = vector.broadcast %1208 : f32 to vector<16x128xf32>
    %1210 = arith.mulf %1209, %1167 : vector<16x128xf32>
    %1211 = arith.addf %1142, %1210 : vector<16x128xf32>
    %c1_i32_320 = arith.constant 1 : i32
    %1212 = arith.addi %1205, %c1_i32_320 : i32
    %1213 = arith.index_cast %1212 : i32 to index
    %1214 = memref.load %arg3[%1213] : memref<400xf32, #tpu.memory_space<smem>>
    %1215 = vector.broadcast %1214 : f32 to vector<16x128xf32>
    %1216 = arith.mulf %1215, %1167 : vector<16x128xf32>
    %1217 = arith.addf %1148, %1216 : vector<16x128xf32>
    %c2_i32_321 = arith.constant 2 : i32
    %1218 = arith.addi %1205, %c2_i32_321 : i32
    %1219 = arith.index_cast %1218 : i32 to index
    %1220 = memref.load %arg3[%1219] : memref<400xf32, #tpu.memory_space<smem>>
    %1221 = vector.broadcast %1220 : f32 to vector<16x128xf32>
    %1222 = arith.mulf %1221, %1167 : vector<16x128xf32>
    %1223 = arith.addf %1154, %1222 : vector<16x128xf32>
    %c3_i32_322 = arith.constant 3 : i32
    %1224 = arith.addi %1205, %c3_i32_322 : i32
    %1225 = arith.index_cast %1224 : i32 to index
    %1226 = memref.load %arg3[%1225] : memref<400xf32, #tpu.memory_space<smem>>
    %1227 = vector.broadcast %1226 : f32 to vector<16x128xf32>
    %1228 = arith.mulf %1227, %1167 : vector<16x128xf32>
    %1229 = arith.addf %1160, %1228 : vector<16x128xf32>
    %c4_i32_323 = arith.constant 4 : i32
    %1230 = arith.addi %1205, %c4_i32_323 : i32
    %1231 = arith.index_cast %1230 : i32 to index
    %1232 = memref.load %arg3[%1231] : memref<400xf32, #tpu.memory_space<smem>>
    %1233 = vector.broadcast %1232 : f32 to vector<16x128xf32>
    %1234 = arith.mulf %1233, %1167 : vector<16x128xf32>
    %1235 = arith.addf %1166, %1234 : vector<16x128xf32>
    %c13_i32_324 = arith.constant 13 : i32
    %1236 = tpu.dynamic_rotate %1029 by %c13_i32_324 dim 0 : vector<16x128xf32>, i32 -> vector<16x128xf32>
    %c2_i32_325 = arith.constant 2 : i32
    %1237 = arith.muli %arg1, %c2_i32_325 : i32
    %c0_i32_326 = arith.constant 0 : i32
    %1238 = arith.addi %1237, %c0_i32_326 : i32
    %c100_i32_327 = arith.constant 100 : i32
    %1239 = arith.muli %1238, %c100_i32_327 : i32
    %c90_i32 = arith.constant 90 : i32
    %1240 = arith.addi %1239, %c90_i32 : i32
    %c0_i32_328 = arith.constant 0 : i32
    %1241 = arith.addi %1240, %c0_i32_328 : i32
    %1242 = arith.index_cast %1241 : i32 to index
    %1243 = memref.load %arg3[%1242] : memref<400xf32, #tpu.memory_space<smem>>
    %1244 = vector.broadcast %1243 : f32 to vector<16x128xf32>
    %1245 = arith.mulf %1244, %1236 : vector<16x128xf32>
    %1246 = arith.addf %1177, %1245 : vector<16x128xf32>
    %c1_i32_329 = arith.constant 1 : i32
    %1247 = arith.addi %1240, %c1_i32_329 : i32
    %1248 = arith.index_cast %1247 : i32 to index
    %1249 = memref.load %arg3[%1248] : memref<400xf32, #tpu.memory_space<smem>>
    %1250 = vector.broadcast %1249 : f32 to vector<16x128xf32>
    %1251 = arith.mulf %1250, %1236 : vector<16x128xf32>
    %1252 = arith.addf %1183, %1251 : vector<16x128xf32>
    %c2_i32_330 = arith.constant 2 : i32
    %1253 = arith.addi %1240, %c2_i32_330 : i32
    %1254 = arith.index_cast %1253 : i32 to index
    %1255 = memref.load %arg3[%1254] : memref<400xf32, #tpu.memory_space<smem>>
    %1256 = vector.broadcast %1255 : f32 to vector<16x128xf32>
    %1257 = arith.mulf %1256, %1236 : vector<16x128xf32>
    %1258 = arith.addf %1189, %1257 : vector<16x128xf32>
    %c3_i32_331 = arith.constant 3 : i32
    %1259 = arith.addi %1240, %c3_i32_331 : i32
    %1260 = arith.index_cast %1259 : i32 to index
    %1261 = memref.load %arg3[%1260] : memref<400xf32, #tpu.memory_space<smem>>
    %1262 = vector.broadcast %1261 : f32 to vector<16x128xf32>
    %1263 = arith.mulf %1262, %1236 : vector<16x128xf32>
    %1264 = arith.addf %1195, %1263 : vector<16x128xf32>
    %c4_i32_332 = arith.constant 4 : i32
    %1265 = arith.addi %1240, %c4_i32_332 : i32
    %1266 = arith.index_cast %1265 : i32 to index
    %1267 = memref.load %arg3[%1266] : memref<400xf32, #tpu.memory_space<smem>>
    %1268 = vector.broadcast %1267 : f32 to vector<16x128xf32>
    %1269 = arith.mulf %1268, %1236 : vector<16x128xf32>
    %1270 = arith.addf %1201, %1269 : vector<16x128xf32>
    %c2_i32_333 = arith.constant 2 : i32
    %1271 = arith.muli %arg1, %c2_i32_333 : i32
    %c1_i32_334 = arith.constant 1 : i32
    %1272 = arith.addi %1271, %c1_i32_334 : i32
    %c100_i32_335 = arith.constant 100 : i32
    %1273 = arith.muli %1272, %c100_i32_335 : i32
    %c90_i32_336 = arith.constant 90 : i32
    %1274 = arith.addi %1273, %c90_i32_336 : i32
    %c0_i32_337 = arith.constant 0 : i32
    %1275 = arith.addi %1274, %c0_i32_337 : i32
    %1276 = arith.index_cast %1275 : i32 to index
    %1277 = memref.load %arg3[%1276] : memref<400xf32, #tpu.memory_space<smem>>
    %1278 = vector.broadcast %1277 : f32 to vector<16x128xf32>
    %1279 = arith.mulf %1278, %1236 : vector<16x128xf32>
    %1280 = arith.addf %1211, %1279 : vector<16x128xf32>
    %c1_i32_338 = arith.constant 1 : i32
    %1281 = arith.addi %1274, %c1_i32_338 : i32
    %1282 = arith.index_cast %1281 : i32 to index
    %1283 = memref.load %arg3[%1282] : memref<400xf32, #tpu.memory_space<smem>>
    %1284 = vector.broadcast %1283 : f32 to vector<16x128xf32>
    %1285 = arith.mulf %1284, %1236 : vector<16x128xf32>
    %1286 = arith.addf %1217, %1285 : vector<16x128xf32>
    %c2_i32_339 = arith.constant 2 : i32
    %1287 = arith.addi %1274, %c2_i32_339 : i32
    %1288 = arith.index_cast %1287 : i32 to index
    %1289 = memref.load %arg3[%1288] : memref<400xf32, #tpu.memory_space<smem>>
    %1290 = vector.broadcast %1289 : f32 to vector<16x128xf32>
    %1291 = arith.mulf %1290, %1236 : vector<16x128xf32>
    %1292 = arith.addf %1223, %1291 : vector<16x128xf32>
    %c3_i32_340 = arith.constant 3 : i32
    %1293 = arith.addi %1274, %c3_i32_340 : i32
    %1294 = arith.index_cast %1293 : i32 to index
    %1295 = memref.load %arg3[%1294] : memref<400xf32, #tpu.memory_space<smem>>
    %1296 = vector.broadcast %1295 : f32 to vector<16x128xf32>
    %1297 = arith.mulf %1296, %1236 : vector<16x128xf32>
    %1298 = arith.addf %1229, %1297 : vector<16x128xf32>
    %c4_i32_341 = arith.constant 4 : i32
    %1299 = arith.addi %1274, %c4_i32_341 : i32
    %1300 = arith.index_cast %1299 : i32 to index
    %1301 = memref.load %arg3[%1300] : memref<400xf32, #tpu.memory_space<smem>>
    %1302 = vector.broadcast %1301 : f32 to vector<16x128xf32>
    %1303 = arith.mulf %1302, %1236 : vector<16x128xf32>
    %1304 = arith.addf %1235, %1303 : vector<16x128xf32>
    %c12_i32_342 = arith.constant 12 : i32
    %1305 = tpu.dynamic_rotate %1029 by %c12_i32_342 dim 0 : vector<16x128xf32>, i32 -> vector<16x128xf32>
    %c2_i32_343 = arith.constant 2 : i32
    %1306 = arith.muli %arg1, %c2_i32_343 : i32
    %c0_i32_344 = arith.constant 0 : i32
    %1307 = arith.addi %1306, %c0_i32_344 : i32
    %c100_i32_345 = arith.constant 100 : i32
    %1308 = arith.muli %1307, %c100_i32_345 : i32
    %c95_i32 = arith.constant 95 : i32
    %1309 = arith.addi %1308, %c95_i32 : i32
    %c0_i32_346 = arith.constant 0 : i32
    %1310 = arith.addi %1309, %c0_i32_346 : i32
    %1311 = arith.index_cast %1310 : i32 to index
    %1312 = memref.load %arg3[%1311] : memref<400xf32, #tpu.memory_space<smem>>
    %1313 = vector.broadcast %1312 : f32 to vector<16x128xf32>
    %1314 = arith.mulf %1313, %1305 : vector<16x128xf32>
    %1315 = arith.addf %1246, %1314 : vector<16x128xf32>
    %c1_i32_347 = arith.constant 1 : i32
    %1316 = arith.addi %1309, %c1_i32_347 : i32
    %1317 = arith.index_cast %1316 : i32 to index
    %1318 = memref.load %arg3[%1317] : memref<400xf32, #tpu.memory_space<smem>>
    %1319 = vector.broadcast %1318 : f32 to vector<16x128xf32>
    %1320 = arith.mulf %1319, %1305 : vector<16x128xf32>
    %1321 = arith.addf %1252, %1320 : vector<16x128xf32>
    %c2_i32_348 = arith.constant 2 : i32
    %1322 = arith.addi %1309, %c2_i32_348 : i32
    %1323 = arith.index_cast %1322 : i32 to index
    %1324 = memref.load %arg3[%1323] : memref<400xf32, #tpu.memory_space<smem>>
    %1325 = vector.broadcast %1324 : f32 to vector<16x128xf32>
    %1326 = arith.mulf %1325, %1305 : vector<16x128xf32>
    %1327 = arith.addf %1258, %1326 : vector<16x128xf32>
    %c3_i32_349 = arith.constant 3 : i32
    %1328 = arith.addi %1309, %c3_i32_349 : i32
    %1329 = arith.index_cast %1328 : i32 to index
    %1330 = memref.load %arg3[%1329] : memref<400xf32, #tpu.memory_space<smem>>
    %1331 = vector.broadcast %1330 : f32 to vector<16x128xf32>
    %1332 = arith.mulf %1331, %1305 : vector<16x128xf32>
    %1333 = arith.addf %1264, %1332 : vector<16x128xf32>
    %c4_i32_350 = arith.constant 4 : i32
    %1334 = arith.addi %1309, %c4_i32_350 : i32
    %1335 = arith.index_cast %1334 : i32 to index
    %1336 = memref.load %arg3[%1335] : memref<400xf32, #tpu.memory_space<smem>>
    %1337 = vector.broadcast %1336 : f32 to vector<16x128xf32>
    %1338 = arith.mulf %1337, %1305 : vector<16x128xf32>
    %1339 = arith.addf %1270, %1338 : vector<16x128xf32>
    %c2_i32_351 = arith.constant 2 : i32
    %1340 = arith.muli %arg1, %c2_i32_351 : i32
    %c1_i32_352 = arith.constant 1 : i32
    %1341 = arith.addi %1340, %c1_i32_352 : i32
    %c100_i32_353 = arith.constant 100 : i32
    %1342 = arith.muli %1341, %c100_i32_353 : i32
    %c95_i32_354 = arith.constant 95 : i32
    %1343 = arith.addi %1342, %c95_i32_354 : i32
    %c0_i32_355 = arith.constant 0 : i32
    %1344 = arith.addi %1343, %c0_i32_355 : i32
    %1345 = arith.index_cast %1344 : i32 to index
    %1346 = memref.load %arg3[%1345] : memref<400xf32, #tpu.memory_space<smem>>
    %1347 = vector.broadcast %1346 : f32 to vector<16x128xf32>
    %1348 = arith.mulf %1347, %1305 : vector<16x128xf32>
    %1349 = arith.addf %1280, %1348 : vector<16x128xf32>
    %c1_i32_356 = arith.constant 1 : i32
    %1350 = arith.addi %1343, %c1_i32_356 : i32
    %1351 = arith.index_cast %1350 : i32 to index
    %1352 = memref.load %arg3[%1351] : memref<400xf32, #tpu.memory_space<smem>>
    %1353 = vector.broadcast %1352 : f32 to vector<16x128xf32>
    %1354 = arith.mulf %1353, %1305 : vector<16x128xf32>
    %1355 = arith.addf %1286, %1354 : vector<16x128xf32>
    %c2_i32_357 = arith.constant 2 : i32
    %1356 = arith.addi %1343, %c2_i32_357 : i32
    %1357 = arith.index_cast %1356 : i32 to index
    %1358 = memref.load %arg3[%1357] : memref<400xf32, #tpu.memory_space<smem>>
    %1359 = vector.broadcast %1358 : f32 to vector<16x128xf32>
    %1360 = arith.mulf %1359, %1305 : vector<16x128xf32>
    %1361 = arith.addf %1292, %1360 : vector<16x128xf32>
    %c3_i32_358 = arith.constant 3 : i32
    %1362 = arith.addi %1343, %c3_i32_358 : i32
    %1363 = arith.index_cast %1362 : i32 to index
    %1364 = memref.load %arg3[%1363] : memref<400xf32, #tpu.memory_space<smem>>
    %1365 = vector.broadcast %1364 : f32 to vector<16x128xf32>
    %1366 = arith.mulf %1365, %1305 : vector<16x128xf32>
    %1367 = arith.addf %1298, %1366 : vector<16x128xf32>
    %c4_i32_359 = arith.constant 4 : i32
    %1368 = arith.addi %1343, %c4_i32_359 : i32
    %1369 = arith.index_cast %1368 : i32 to index
    %1370 = memref.load %arg3[%1369] : memref<400xf32, #tpu.memory_space<smem>>
    %1371 = vector.broadcast %1370 : f32 to vector<16x128xf32>
    %1372 = arith.mulf %1371, %1305 : vector<16x128xf32>
    %1373 = arith.addf %1304, %1372 : vector<16x128xf32>
    %c127_i32 = arith.constant 127 : i32
    %1374 = tpu.dynamic_rotate %1321 by %c127_i32 dim 1 : vector<16x128xf32>, i32 -> vector<16x128xf32>
    %c126_i32 = arith.constant 126 : i32
    %1375 = tpu.dynamic_rotate %1327 by %c126_i32 dim 1 : vector<16x128xf32>, i32 -> vector<16x128xf32>
    %c125_i32 = arith.constant 125 : i32
    %1376 = tpu.dynamic_rotate %1333 by %c125_i32 dim 1 : vector<16x128xf32>, i32 -> vector<16x128xf32>
    %c124_i32 = arith.constant 124 : i32
    %1377 = tpu.dynamic_rotate %1339 by %c124_i32 dim 1 : vector<16x128xf32>, i32 -> vector<16x128xf32>
    %1378 = arith.addf %1315, %1374 : vector<16x128xf32>
    %1379 = arith.addf %1375, %1376 : vector<16x128xf32>
    %1380 = arith.addf %1378, %1379 : vector<16x128xf32>
    %1381 = arith.addf %1380, %1377 : vector<16x128xf32>
    %1382 = vector.extract_strided_slice %1381 {offsets = [0, 0], sizes = [12, 128], strides = [1, 1]} : vector<16x128xf32> to vector<12x128xf32>
    %c0_360 = arith.constant 0 : index
    %c0_361 = arith.constant 0 : index
    %c0_362 = arith.constant 0 : index
    %c0_363 = arith.constant 0 : index
    %1383 = vector.load %arg4[%c0_360, %c0_361, %c0_362, %c0_363] : memref<1x2x12x128xf32, #tpu.memory_space<vmem>>, vector<1x1x12x128xf32>
    %1384 = vector.shape_cast %1383 : vector<1x1x12x128xf32> to vector<12x128xf32>
    %1385 = vector.shape_cast %1382 : vector<12x128xf32> to vector<1x1x12x128xf32>
    tpu.vector_store %arg4[%c0_360, %c0_361, %c0_362, %c0_363], %1385 {strides = array<i32>} : memref<1x2x12x128xf32, #tpu.memory_space<vmem>>, vector<1x1x12x128xf32>,
    %c127_i32_364 = arith.constant 127 : i32
    %1386 = tpu.dynamic_rotate %1355 by %c127_i32_364 dim 1 : vector<16x128xf32>, i32 -> vector<16x128xf32>
    %c126_i32_365 = arith.constant 126 : i32
    %1387 = tpu.dynamic_rotate %1361 by %c126_i32_365 dim 1 : vector<16x128xf32>, i32 -> vector<16x128xf32>
    %c125_i32_366 = arith.constant 125 : i32
    %1388 = tpu.dynamic_rotate %1367 by %c125_i32_366 dim 1 : vector<16x128xf32>, i32 -> vector<16x128xf32>
    %c124_i32_367 = arith.constant 124 : i32
    %1389 = tpu.dynamic_rotate %1373 by %c124_i32_367 dim 1 : vector<16x128xf32>, i32 -> vector<16x128xf32>
    %1390 = arith.addf %1349, %1386 : vector<16x128xf32>
    %1391 = arith.addf %1387, %1388 : vector<16x128xf32>
    %1392 = arith.addf %1390, %1391 : vector<16x128xf32>
    %1393 = arith.addf %1392, %1389 : vector<16x128xf32>
    %1394 = vector.extract_strided_slice %1393 {offsets = [0, 0], sizes = [12, 128], strides = [1, 1]} : vector<16x128xf32> to vector<12x128xf32>
    %c0_368 = arith.constant 0 : index
    %c1_369 = arith.constant 1 : index
    %c0_370 = arith.constant 0 : index
    %c0_371 = arith.constant 0 : index
    %1395 = vector.load %arg4[%c0_368, %c1_369, %c0_370, %c0_371] : memref<1x2x12x128xf32, #tpu.memory_space<vmem>>, vector<1x1x12x128xf32>
    %1396 = vector.shape_cast %1395 : vector<1x1x12x128xf32> to vector<12x128xf32>
    %1397 = vector.shape_cast %1394 : vector<12x128xf32> to vector<1x1x12x128xf32>
    tpu.vector_store %arg4[%c0_368, %c1_369, %c0_370, %c0_371], %1397 {strides = array<i32>} : memref<1x2x12x128xf32, #tpu.memory_space<vmem>>, vector<1x1x12x128xf32>,
    return
  }
  func.func @transform_0(%arg0: i32, %arg1: i32) -> (i32, i32, i32, i32) {
    %c0_i32 = arith.constant 0 : i32
    %c0_i32_0 = arith.constant 0 : i32
    %c0_i32_1 = arith.constant 0 : i32
    %c0_i32_2 = arith.constant 0 : i32
    return %arg0, %c0_i32, %c0_i32_0, %c0_i32_1 : i32, i32, i32, i32
  }
  func.func @transform_1(%arg0: i32, %arg1: i32) -> i32 {
    %c0_i32 = arith.constant 0 : i32
    %c0_i32_0 = arith.constant 0 : i32
    return %c0_i32 : i32
  }
  func.func @transform_2(%arg0: i32, %arg1: i32) -> (i32, i32, i32, i32) {
    %c0_i32 = arith.constant 0 : i32
    %c0_i32_0 = arith.constant 0 : i32
    %c0_i32_1 = arith.constant 0 : i32
    return %arg0, %arg1, %c0_i32, %c0_i32_0 : i32, i32, i32, i32
  }
}

</mosaic_0001>

<bundles_post_ra>
// kernel: tpu_custom_call.1
= control target key start
LH: loop header
LB: loop body
LE: loop exit
PB: predicated region body
PF: predicated region fallthrough
CT: control target
= control target key end

     0   :  { %s4416_s0 = inlined_call_operand.hbm [shape: f32[2,4,16,128], index: 0, kind: input, shape index: {}]   ;;  %s4417_s1 = inlined_call_operand.hbm [shape: f32[400], index: 1, kind: input, shape index: {}]   ;;  %s4418_s2 = inlined_call_operand.vmem [shape: f32[2,4,12,128], index: 2, kind: output, shape index: {}]  }
   0x1   :  { %4539 = sst [smem:[#allocation52_spill]] %s4416_s0 }
   0x2   :  { %4540 = sst [smem:[#allocation53_spill]] %s4417_s1 }
   0x3   :  { %4541 = sst [smem:[#allocation54_spill]] %s4418_s2 }
   0x4   :  { %7 = vsyncpa [#allocation3], 0 }
   0x5   :  { %9 = vsyncpa [#allocation3 + $0x1], 0 }
   0x6   :  { %10 = vsyncpa [#allocation4], 0  ;;  %s2099_s9 = smov 0   ;;  %s2101_s10 = smov 0  }
   0x7   :  { %s2103_s11 = smov 0   ;;  %s2105_s12 = smov 0  }
   0x8   :  { %s2107_s13 = smov 0   ;;  %s2109_s14 = smov 0  }
   0x9   :  { %s2111_s15 = smov 0   ;;  %s2113_s16 = smov 0  }
   0xa LB: > { %4542 = sst [smem:[#allocation8_spill]] %s2050_s10  ;;  %s1830_s17 = sadd.s32 4294967295, %s2074_s16   ;;  %s2074_s16 = sphi %s2113_s16, %s16_s16   ;;  %s2070_s15 = sphi %s2111_s15, %s4729_s15   ;;  %s2066_s14 = sphi %s2109_s14, %s4728_s14   ;;  %s2062_s13 = sphi %s2107_s13, %s4727_s13   ;;  %s2058_s12 = sphi %s2105_s12, %s4726_s12   ;;  %s2054_s11 = sphi %s2103_s11, %s4725_s11   ;;  %s2050_s10 = sphi %s2101_s10, %s4724_s10   ;;  %s2046_s9 = sphi %s2099_s9, %s4723_s9  }
   0xb   : > { %4543 = sst [smem:[#allocation9_spill]] %s2054_s11  ;;  %s35_s18 = sadd.s32 1, %s2054_s11 }
   0xc   : > { %4544 = sst [smem:[#allocation10_spill]] %s2062_s13  ;;  %p42_p0 = scmp.ne.s32.totalorder %s2054_s11, %s2050_s10 }
   0xd   : > { %4545 = sst [smem:[#allocation11_spill]] %s2066_s14  ;;  %p43_p1 = scmp.eq.s32.totalorder %s2074_s16, 0 }
   0xe   : > { %4546 = sst [smem:[#allocation12_spill]] %s2070_s15  ;;  %p48_p2 = scmp.ne.s32.totalorder %s2050_s10, %s2046_s9 }
   0xf   : > { %4547 = sst [smem:[#allocation13_spill]] %s2074_s16  ;;  %p2143_p3 = scmp.eq.s32.totalorder %s1830_s17, 0 }
  0x10   : > { %p44_p4 = por %p43_p1, %p42_p0  ;;  %p1832_p5 = scmp.ge.s32.totalorder %s2074_s16, 1 }
  0x11   : > { %s4548_s19 = scalar_select %p2143_p3, 1, 0 }
  0x12   : > { %p2150_p6 = por %p2143_p3, %p48_p2  ;;  %p108_p7 = scmp.lt.s32.totalorder %s2074_s16, 5 }
  0x13   : > { %p1872_p9 = scmp.lt.s32.totalorder %s2074_s16, 4  ;;  %s25_s23 = sadd.s32 1, %s2066_s14 }
  0x14   : > { %s4549_s20 = scalar_select %p2150_p6, 1, 0 }
  0x15   : > { %p2155_p8 = pnand %p1832_p5, %p108_p7  ;;  %p2162_p11 = pnand %p1872_p9, %p44_p4 }
  0x16   : > { %p2169_p13 = scmp.ge.s32.totalorder %s25_s23, 2  ;;  %s4553_s1 = sld [smem:[#allocation53_spill]] }
  0x17   : > { %s4550_s21 = scalar_select %p2155_p8, 1, 0 }
  0x18   : > { %p1863_p10 = pneg %p2155_p8 }
  0x1a   : > { %p1864_p12 = pnand %p1863_p10, %p2143_p3 }
  0x1c   : > { %s1961_s27 = scalar_lea.hbm %s4553_s1, 64  ;;  %p1963_p1 = pneg %p1864_p12 }
  0x1d   : > { %p1962_p0 = scmp.ne.s32.totalorder %s4553_s1, %s1961_s27  ;;  %p1968_p5 = scmp.lt.u32.totalorder %s1961_s27, %s4553_s1 }
  0x1f   : > { %p1964_p2 = pnand %p1963_p1, %p1962_p0 }
  0x21   : > { %p1965_p4 = pneg %p1964_p2 }
  0x23   : > { %p1970_p7 = pnand %p1968_p5, %p1965_p4 }
  0x25   : > { %1973 = shalt.err (!%p1970_p7)
}
  0x26   : > { %s2076_s4 = smov [#allocation5]   ;;  %s4731_s23 = smov (%p2169_p13, %s25_s23), 0 }
  0x27   : > { %1866 = dma.hbm_to_smem (!%p1864_p12), %s4553_s1, 64, %s2076_s4, [#allocation4]  }
  0x28   : > { %4554 = sst [smem:[#allocation14_spill]] %s4731_s23  ;;  %s28_s7 = sadd.s32 1, %s2070_s15 }
  0x29   : > { %s130_s8 = sand.u32 1, %s2054_s11   ;;  %s4733_s7 = smov (!%p2169_p13, %s28_s7), %s2070_s15 }
  0x2a   : > { %s1835_s9 = sshll.u32 %s130_s8, 6  ;;  %p30_p9 = scmp.ge.s32.totalorder %s4733_s7, 2 }
  0x2b   : > { %s1856_s17 = sshll.u32 %s2070_s15, 10  ;;  %s134_s25 = scalar_lea.vmem [#allocation2], %s1835_s9 }
  0x2c   : > { %s141_s26 = sshll.u32 %s134_s25, 4  ;;  %s4735_s7 = smov (%p30_p9, %s4733_s7), 0  ;;  %s2202_s26 = int_to_ptr.vmem [resolvable:$true] %s141_s26 }
  0x2d   : > { %4555 = sst [smem:[#allocation15_spill]] %s4735_s7  ;;  %s4556_s0 = sld [smem:[#allocation52_spill]] }
  0x2e   : > { %s32_s24 = ssub.s32 %s2070_s15, %s4735_s7  ;;  %s2210_s3 = scalar_lea.sflag [#allocation3], %s130_s8 }
  0x2f   : > { %p2206_p10 = scmp.eq.s32.totalorder %s32_s24, 0  ;;  %p1976_p13 = pneg %p2162_p11 }
  0x33   : > { %s2200_s29 = scalar_lea.hbm %s4556_s0, %s1856_s17  ;;  %s1979_s9 = scalar_lea.hbm %s4556_s0, 2048 }
  0x34   : > { %s1974_s4 = scalar_lea.hbm %s2200_s29, 1024  ;;  %p1980_p2 = scmp.lt.u32.totalorder %s2200_s29, %s4556_s0 }
  0x35   : > { %p1975_p12 = scmp.ne.s32.totalorder %s2200_s29, %s1974_s4  ;;  %p1981_p4 = scmp.lt.u32.totalorder %s1979_s9, %s1974_s4 }
  0x36   : > { %p1983_p7 = scmp.lt.u32.totalorder %s1974_s4, %s2200_s29 }
  0x37   : > { %p1977_p0 = pnand %p1976_p13, %p1975_p12  ;;  %p1982_p5 = por %p1981_p4, %p1980_p2 }
  0x39   : > { %p1978_p1 = pneg %p1977_p0  ;;  %p1984_p9 = por %p1983_p7, %p1982_p5 }
  0x3b   : > { %p1985_p3 = pnand %p1984_p9, %p1978_p1 }
  0x3d   : > { %1988 = shalt.err (!%p1985_p3)
}
  0x3e   : > { %s1989_s8 = scalar_lea.vmem %s2202_s26, 1024  ;;  %s2077_s27 = smov [#allocation2]  }
  0x3f   : > { %p1990_p12 = scmp.ne.s32.totalorder %s2202_s26, %s1989_s8  ;;  %s1994_s28 = sshll.u32 %s2077_s27, 4  ;;  %s1995_s28 = int_to_ptr.vmem [resolvable:$false] %s1994_s28 }
  0x40   : > { %s1996_s24 = scalar_lea.vmem %s1995_s28, 2048  ;;  %p1997_p8 = scmp.lt.s32.totalorder %s2202_s26, %s1995_s28 }
  0x41   : > { %p1992_p0 = pnand %p1990_p12, %p1976_p13  ;;  %p1998_p2 = scmp.lt.s32.totalorder %s1996_s24, %s1989_s8 }
  0x43   : > { %p1993_p6 = pneg %p1992_p0  ;;  %p1999_p4 = por %p1998_p2, %p1997_p8 }
  0x45   : > { %p2000_p5 = pnand %p1999_p4, %p1993_p6 }
  0x47   : > { %2003 = shalt.err (!%p2000_p5)
}
  0x48   : > { %s2078_s4 = smov 128   ;;  %s2079_s5 = smov 8  }
  0x49   : > { %1870 = dma.hbm_to_vmem [thread:$0]  (!%p2162_p11), %s2200_s29, 1024, %s2202_s26, %s2210_s3, %s2078_s4, %s2078_s4, %s2079_s5  }
  0x4a   : > { %s2243_s6 = scalar_select %p2206_p10, %s2054_s11, %s35_s18  }
  0x4b   : > { %p4559_p3 = scmp.ne.s32.totalorder %s4550_s21, 0 }
  0x4c   : > { %4558 = sst [smem:[#allocation16_spill]] %s2243_s6 }
  0x4d   : > { %153 = sbr.rel (%p4559_p3) target bundleno = 463 (0x1cf), region = 28 }
  0x54   : > { %s155_s9 = sand.u32 1, %s2050_s10   ;;  %p4560_p6 = scmp.ne.s32.totalorder %s4549_s20, 0 }
  0x55   : > { %s1839_s17 = sshll.u32 %s155_s9, 6  ;;  %s156_s25 = scalar_lea.sflag [#allocation3], %s155_s9 }
  0x56   : > { %s2248_s8 = scalar_lea.vmem [#allocation2], %s1839_s17 }
  0x57   : > { %2037 = dma.done.wait (%p4560_p6), %s156_s25, 1024  }
  0x58   : > { %2039 = vsyncadd (%p4560_p6), %s156_s25, 4294966272  ;;  %p4561_p8 = scmp.ne.s32.totalorder %s4548_s19, 0 }
  0x5a   : > { %2041 = dma.done.wait (%p4561_p8), [#allocation4], 64  }
  0x5b   : > { %2043 = vsyncadd (%p4561_p8), [#allocation4], 4294967232 }
  0x5c   : > { %168 = sfence }
  0x5d   : > { %v2259_v0 = vld [vmem:[%s2248_s8] sm:$0xff]  ;;  %v2262_v1 = vld [vmem:[%s2248_s8 + $0x8] sm:$0xff]  ;;  %s2265_s18 = smul.u32 200, %s2058_s12  ;;  %v257_v2 = vlaneseq  ;;  %v2268_v3 = vld [vmem:[%s2248_s8 + $0x10] sm:$0xff]  ;;  %s4464_s11 = smov 127  }
  0x5e   : > { %4562 = vst [vmem:[#allocation17_spill] sm:$0xff] %v2259_v0  ;;  %4564 = vst [vmem:[#allocation19_spill] sm:$0xff] %v2268_v3  ;;  %v255_v4 = vrot.slane %v2259_v0, 1  ;;  %v256_v5 = vrot.slane %v2262_v1, 1  ;;  %v2277_v7 = vld [vmem:[%s2248_s8 + $0x18] sm:$0xff]  ;;  %v332_v8 = vrot.slane %v2259_v0, 2 }
  0x5f   : > { %4563 = sst [smem:[#allocation18_spill]] %s2265_s18  ;;  %s213_s19 = sadd.s32 2, %s2265_s18  ;;  %v2273_v6 = vshrl.u32 %v257_v2, 7  ;;  %v333_v9 = vrot.slane %v2262_v1, 2  ;;  %v407_v10 = vrot.slane %v2259_v0, 3  ;;  %v408_v11 = vrot.slane %v2262_v1, 3 }
  0x60   : > { %s276_s20 = sadd.s32 7, %s2265_s18  ;;  %s2279_s21 = sld [smem:[#allocation5 + %s213_s19]]  ;;  %v482_v12 = vrot.slane %v2259_v0, 4  ;;  %v483_v13 = vrot.slane %v2262_v1, 4  ;;  %v630_v14 = vrot.slane %v2268_v3, 1  ;;  %v631_v15 = vrot.slane %v2277_v7, 1 }
  0x61   : > { %s2281_s22 = sld [smem:[#allocation5 + %s276_s20]]  ;;  %vm259_vm0 = vcmp.lt.s32.totalorder %v2273_v6, 7  ;;  %vm334_vm1 = vcmp.lt.s32.totalorder %v2273_v6, 6  ;;  %s351_s26 = sadd.s32 12, %s2265_s18  ;;  %vm409_vm2 = vcmp.lt.s32.totalorder %v2273_v6, 5  ;;  %vm484_vm3 = vcmp.lt.s32.totalorder %v2273_v6, 4 }
  0x62   : > { %s426_s29 = sadd.s32 17, %s2265_s18  ;;  %s2293_s30 = sld [smem:[#allocation5 + %s351_s26]]  ;;  %v2305_v16 = vsel %vm259_vm0, %v255_v4, %v256_v5  ;;  %v2309_v17 = vsel %vm259_vm0, %v256_v5, %v255_v4  ;;  %v2313_v18 = vsel %vm334_vm1, %v332_v8, %v333_v9  ;;  %v704_v19 = vrot.slane %v2268_v3, 2  ;;  %v2362_v32 = vld [vmem:[%s2248_s8 + $0x20] sm:$0xff]  ;;  %v2416_v57 = vld [vmem:[%s2248_s8 + $0x28] sm:$0xff] }
  0x63   : > { %s2296_s3 = sld [smem:[#allocation5 + %s426_s29]]  ;;  %s501_s27 = sadd.s32 22, %s2265_s18  ;;  %4565 = vst [vmem:[#allocation20_spill] sm:$0xff] %v2313_v18  ;;  %v2322_v20 = vsel %vm334_vm1, %v333_v9, %v332_v8  ;;  %v2326_v21 = vsel %vm409_vm2, %v407_v10, %v408_v11  ;;  %v2330_v22 = vsel %vm409_vm2, %v408_v11, %v407_v10  ;;  %v2334_v23 = vsel %vm484_vm3, %v482_v12, %v483_v13 }
  0x64   : > { %s574_s28 = sadd.s32 27, %s2265_s18  ;;  %s2315_s24 = sld [smem:[#allocation5 + %s501_s27]]  ;;  %4566 = vst [vmem:[#allocation21_spill] sm:$0xff] %v2334_v23  ;;  %v2342_v26 = vsel %vm484_vm3, %v483_v13, %v482_v12  ;;  %v2346_v27 = vsel %vm259_vm0, %v630_v14, %v631_v15  ;;  %v2356_v30 = vsel %vm259_vm0, %v631_v15, %v630_v14  ;;  %v705_v31 = vrot.slane %v2277_v7, 2 }
  0x65   : > { %s2317_s4 = sld [smem:[#allocation5 + %s574_s28]]  ;;  %s648_s5 = sadd.s32 32, %s2265_s18  ;;  %4567 = vst [vmem:[#allocation22_spill] sm:$0xff] %v2346_v27  ;;  %v778_v35 = vrot.slane %v2268_v3, 3  ;;  %v779_v36 = vrot.slane %v2277_v7, 3  ;;  %v852_v40 = vrot.slane %v2268_v3, 4 }
  0x66   : > { %s722_s9 = sadd.s32 37, %s2265_s18  ;;  %v215_v24 = vstv %s2279_s21  ;;  %s2348_s17 = sld [smem:[#allocation5 + %s648_s5]]  ;;  %v853_v43 = vrot.slane %v2277_v7, 4  ;;  %v999_v44 = vrot.slane %v2362_v32, 1  ;;  %v2386_v47 = vsel %vm334_vm1, %v704_v19, %v705_v31 }
  0x67   : > { %v278_v25 = vstv %s2281_s22  ;;  %s2350_s25 = sld [smem:[#allocation5 + %s722_s9]]  ;;  %v216_v28 = vmul.f32 %v215_v24, %v2259_v0  ;;  %s796_s19 = sadd.s32 42, %s2265_s18  ;;  %4568 = vst [vmem:[#allocation23_spill] sm:$0xff] %v2386_v47  ;;  %v2390_v48 = vsel %vm334_vm1, %v705_v31, %v704_v19  ;;  %v2395_v49 = vmul.f32 %v215_v24, %v2262_v1 }
  0x68   : > { %v279_v29 = vmul.f32 %v278_v25, %v2305_v16  ;;  %s870_s20 = sadd.s32 47, %s2265_s18  ;;  %v353_v33 = vstv %s2293_s30  ;;  %s2368_s21 = sld [smem:[#allocation5 + %s796_s19]]  ;;  %v2398_v50 = vmul.f32 %v278_v25, %v2309_v17  ;;  %v2403_v52 = vsel %vm409_vm2, %v778_v35, %v779_v36 }
  0x69   : > { %v428_v34 = vstv %s2296_s3  ;;  %s2370_s22 = sld [smem:[#allocation5 + %s870_s20]]  ;;  %v354_v38 = vmul.f32 %v353_v33, %v2313_v18  ;;  %s943_s26 = sadd.s32 52, %s2265_s18  ;;  %4569 = vst [vmem:[#allocation24_spill] sm:$0xff] %v2403_v52  ;;  %v2408_v53 = vmul.f32 %v353_v33, %v2322_v20  ;;  %v2413_v56 = vsel %vm409_vm2, %v779_v36, %v778_v35 }
  0x6a   : > { %v281_v37 = vadd.f32 %v279_v29, %v216_v28  ;;  %v429_v39 = vmul.f32 %v428_v34, %v2326_v21  ;;  %s1017_s29 = sadd.s32 57, %s2265_s18  ;;  %v503_v41 = vstv %s2315_s24  ;;  %s2380_s30 = sld [smem:[#allocation5 + %s943_s26]]  ;;  %v2422_v58 = vmul.f32 %v428_v34, %v2330_v22 }
  0x6b   : > { %v576_v42 = vstv %s2317_s4  ;;  %v504_v46 = vmul.f32 %v503_v41, %v2334_v23  ;;  %s1091_s3 = sadd.s32 62, %s2265_s18  ;;  %s1165_s27 = sadd.s32 67, %s2265_s18  ;;  %v2425_v59 = vmul.f32 %v503_v41, %v2342_v26  ;;  %v2430_v61 = vsel %vm484_vm3, %v852_v40, %v853_v43 }
  0x6c   : > { %v356_v45 = vadd.f32 %v354_v38, %v281_v37  ;;  %v650_v51 = vstv %s2348_s17  ;;  %s2405_s28 = sld [smem:[#allocation5 + %s1017_s29]]  ;;  %v577_v55 = vmul.f32 %v2268_v3, %v576_v42  ;;  %s1312_s4 = sadd.s32 77, %s2265_s18  ;;  %4571 = vst [vmem:[#allocation26_spill] sm:$0xff] %v2430_v61  ;;  %v2435_v63 = vmul.f32 %v2277_v7, %v576_v42  ;;  %v2494_v42 = vld [vmem:[%s2248_s8 + $0x30] sm:$0xff] }
  0x6d   : > { %s2418_s24 = sld [smem:[#allocation5 + %s1091_s3]]  ;;  %4570 = vst [vmem:[#allocation25_spill] sm:$0xff] %v2425_v59  ;;  %v724_v60 = vstv %s2350_s25  ;;  %v651_v2 = vmul.f32 %v650_v51, %v2346_v27  ;;  %s1239_s9 = sadd.s32 72, %s2265_s18  ;;  %v2442_v5 = vmul.f32 %v650_v51, %v2356_v30  ;;  %v2446_v8 = vsel %vm484_vm3, %v853_v43, %v852_v40  ;;  %4579 = vst [vmem:[#allocation34_spill] sm:$0xff] %v2494_v42  ;;  %v2509_v51 = vld [vmem:[%s2248_s8 + $0x38] sm:$0xff] }
  0x6e   : > { %v431_v54 = vadd.f32 %v429_v39, %v356_v45  ;;  %s2432_s5 = sld [smem:[#allocation5 + %s1165_s27]]  ;;  %4572 = vst [vmem:[#allocation27_spill] sm:$0xff] %v2435_v63  ;;  %v798_v4 = vstv %s2368_s21  ;;  %s1386_s17 = sadd.s32 82, %s2265_s18  ;;  %v1000_v10 = vrot.slane %v2416_v57, 1  ;;  %v725_v12 = vmul.f32 %v724_v60, %v2386_v47 }
  0x6f   : > { %4573 = vst [vmem:[#allocation28_spill] sm:$0xff] %v2442_v5  ;;  %v872_v9 = vstv %s2370_s22  ;;  %s2450_s25 = sld [smem:[#allocation5 + %s1312_s4]]  ;;  %v2454_v13 = vmul.f32 %v724_v60, %v2390_v48  ;;  %s1460_s19 = sadd.s32 87, %s2265_s18  ;;  %v799_v15 = vmul.f32 %v798_v4, %v2403_v52  ;;  %v2460_v19 = vmul.f32 %v798_v4, %v2413_v56 }
  0x70   : > { %v506_v62 = vadd.f32 %v504_v46, %v431_v54  ;;  %v945_v14 = vstv %s2380_s30  ;;  %v1073_v24 = vrot.slane %v2362_v32, 2  ;;  %v1074_v25 = vrot.slane %v2416_v57, 2  ;;  %s2464_s20 = sld [smem:[#allocation5 + %s1239_s9]]  ;;  %s1534_s22 = sadd.s32 92, %s2265_s18 }
  0x71   : > { %4574 = vst [vmem:[#allocation29_spill] sm:$0xff] %v2454_v13  ;;  %4575 = vst [vmem:[#allocation30_spill] sm:$0xff] %v2460_v19  ;;  %s2466_s21 = sld [smem:[#allocation5 + %s1386_s17]]  ;;  %v873_v29 = vmul.f32 %v872_v9, %v2430_v61  ;;  %v1147_v31 = vrot.slane %v2362_v32, 3  ;;  %v1148_v33 = vrot.slane %v2416_v57, 3  ;;  %s1608_s26 = sadd.s32 97, %s2265_s18  ;;  %v2474_v34 = vmul.f32 %v872_v9, %v2446_v8 }
  0x72   : > { %v579_v11 = vadd.f32 %v577_v55, %v506_v62  ;;  %v946_v35 = vmul.f32 %v2362_v32, %v945_v14  ;;  %v2479_v36 = vsel %vm259_vm0, %v999_v44, %v1000_v10  ;;  %v2483_v37 = vsel %vm259_vm0, %v1000_v10, %v999_v44  ;;  %s2485_s29 = sld [smem:[#allocation5 + %s1460_s19]]  ;;  %s208_s30 = sadd.s32 1, %s2265_s18 }
  0x73   : > { %4576 = vst [vmem:[#allocation31_spill] sm:$0xff] %v2474_v34  ;;  %4577 = vst [vmem:[#allocation32_spill] sm:$0xff] %v2479_v36  ;;  %v2489_v39 = vmul.f32 %v2416_v57, %v945_v14  ;;  %v1019_v40 = vstv %s2405_s28  ;;  %v1093_v41 = vstv %s2418_s24  ;;  %s269_s3 = sadd.s32 6, %s2265_s18  ;;  %s344_s27 = sadd.s32 11, %s2265_s18  ;;  %v2500_v43 = vsel %vm334_vm1, %v1073_v24, %v1074_v25 }
  0x74   : > { %v653_v28 = vadd.f32 %v651_v2, %v579_v11  ;;  %4580 = vst [vmem:[#allocation35_spill] sm:$0xff] %v2500_v43  ;;  %v2504_v44 = vsel %vm334_vm1, %v1074_v25, %v1073_v24  ;;  %v1221_v45 = vrot.slane %v2362_v32, 4  ;;  %v1222_v46 = vrot.slane %v2416_v57, 4  ;;  %s2511_s28 = sld [smem:[#allocation5 + %s1534_s22]]  ;;  %s419_s9 = sadd.s32 16, %s2265_s18 }
  0x75   : > { %4578 = vst [vmem:[#allocation33_spill] sm:$0xff] %v2489_v39  ;;  %s2513_s24 = sld [smem:[#allocation5 + %s1608_s26]]  ;;  %v2517_v55 = vsel %vm409_vm2, %v1147_v31, %v1148_v33  ;;  %v2521_v60 = vsel %vm409_vm2, %v1148_v33, %v1147_v31  ;;  %v1167_v62 = vstv %s2432_s5  ;;  %v1020_v2 = vmul.f32 %v1019_v40, %v2479_v36  ;;  %s494_s5 = sadd.s32 21, %s2265_s18 }
  0x76   : > { %v727_v38 = vadd.f32 %v725_v12, %v653_v28  ;;  %4581 = vst [vmem:[#allocation36_spill] sm:$0xff] %v2517_v55  ;;  %s2524_s4 = sld [smem:[#allocation5 + %s208_s30]]  ;;  %v2529_v4 = vmul.f32 %v1019_v40, %v2483_v37  ;;  %v1314_v9 = vstv %s2450_s25  ;;  %v1368_v10 = vrot.slane %v2494_v42, 1  ;;  %s567_s22 = sadd.s32 26, %s2265_s18 }
  0x77   : > { %s2533_s17 = sld [smem:[#allocation5 + %s269_s3]]  ;;  %v1094_v12 = vmul.f32 %v1093_v41, %v2500_v43  ;;  %v2539_v14 = vmul.f32 %v1093_v41, %v2504_v44  ;;  %v1168_v24 = vmul.f32 %v1167_v62, %v2517_v55  ;;  %v2546_v25 = vmul.f32 %v1167_v62, %v2521_v60  ;;  %s641_s26 = sadd.s32 31, %s2265_s18 }
  0x78   : > { %v801_v54 = vadd.f32 %v799_v15, %v727_v38  ;;  %4582 = vst [vmem:[#allocation37_spill] sm:$0xff] %v2529_v4  ;;  %s2535_s19 = sld [smem:[#allocation5 + %s344_s27]]  ;;  %v1369_v15 = vrot.slane %v2509_v51, 1  ;;  %v2550_v28 = vsel %vm484_vm3, %v1221_v45, %v1222_v46  ;;  %v2558_v33 = vsel %vm484_vm3, %v1222_v46, %v1221_v45  ;;  %s715_s3 = sadd.s32 36, %s2265_s18 }
  0x79   : > { %4583 = vst [vmem:[#allocation38_spill] sm:$0xff] %v2539_v14  ;;  %4584 = vst [vmem:[#allocation39_spill] sm:$0xff] %v2546_v25  ;;  %s2553_s25 = sld [smem:[#allocation5 + %s419_s9]]  ;;  %v1315_v38 = vmul.f32 %v2494_v42, %v1314_v9  ;;  %v2562_v40 = vmul.f32 %v2509_v51, %v1314_v9  ;;  %v1442_v62 = vrot.slane %v2494_v42, 2  ;;  %v1516_v9 = vrot.slane %v2494_v42, 3  ;;  %s789_s27 = sadd.s32 41, %s2265_s18 }
  0x7a   : > { %v875_v11 = vadd.f32 %v873_v29, %v801_v54  ;;  %4585 = vst [vmem:[#allocation40_spill] sm:$0xff] %v2550_v28  ;;  %v1241_v29 = vstv %s2464_s20  ;;  %v2566_v41 = vsel %vm259_vm0, %v1368_v10, %v1369_v15  ;;  %v1388_v54 = vstv %s2466_s21  ;;  %s2571_s20 = sld [smem:[#allocation5 + %s494_s5]]  ;;  %s863_s9 = sadd.s32 46, %s2265_s18 }
  0x7b   : > { %4586 = vst [vmem:[#allocation41_spill] sm:$0xff] %v2562_v40  ;;  %4587 = vst [vmem:[#allocation42_spill] sm:$0xff] %v2566_v41  ;;  %s2573_s30 = sld [smem:[#allocation5 + %s567_s22]]  ;;  %v1242_v46 = vmul.f32 %v1241_v29, %v2550_v28  ;;  %v2582_v40 = vmul.f32 %v1241_v29, %v2558_v33  ;;  %v1462_v25 = vstv %s2485_s29  ;;  %v2591_v4 = vsel %vm259_vm0, %v1369_v15, %v1368_v10  ;;  %s936_s5 = sadd.s32 51, %s2265_s18 }
  0x7c   : > { %v948_v31 = vadd.f32 %v946_v35, %v875_v11  ;;  %v1443_v35 = vrot.slane %v2509_v51, 2  ;;  %v1517_v11 = vrot.slane %v2509_v51, 3  ;;  %s2578_s21 = sld [smem:[#allocation5 + %s641_s26]]  ;;  %v1389_v39 = vmul.f32 %v1388_v54, %v2566_v41  ;;  %s1010_s22 = sadd.s32 56, %s2265_s18 }
  0x7d   : > { %4588 = vst [vmem:[#allocation43_spill] sm:$0xff] %v2582_v40  ;;  %v210_v34 = vstv %s2524_s4  ;;  %s2607_s29 = sld [smem:[#allocation5 + %s715_s3]]  ;;  %s1084_s26 = sadd.s32 61, %s2265_s18  ;;  %v2644_v63 = vmul.f32 %v1388_v54, %v2591_v4 }
  0x7e   : > { %v1022_v45 = vadd.f32 %v1020_v2, %v948_v31  ;;  %v1590_v2 = vrot.slane %v2494_v42, 4  ;;  %v1591_v31 = vrot.slane %v2509_v51, 4  ;;  %v2599_v29 = vsel %vm334_vm1, %v1442_v62, %v1443_v35  ;;  %s2619_s4 = sld [smem:[#allocation5 + %s789_s27]]  ;;  %s1379_s27 = sadd.s32 81, %s2265_s18 }
  0x7f   : > { %v2603_v40 = vsel %vm334_vm1, %v1443_v35, %v1442_v62  ;;  %v2612_v15 = vsel %vm409_vm2, %v1516_v9, %v1517_v11  ;;  %v2616_v19 = vsel %vm409_vm2, %v1517_v11, %v1516_v9  ;;  %v211_v13 = vmul.f32 %v210_v34, %v2259_v0  ;;  %s2621_s0 = sld [smem:[#allocation5 + %s863_s9]]  ;;  %4590 = vst [vmem:[#allocation45_spill] sm:$0xff] %v2644_v63  ;;  %s1453_s9 = sadd.s32 86, %s2265_s18 }
  0x80   : > { %v1096_v14 = vadd.f32 %v1094_v12, %v1022_v45  ;;  %v1536_v12 = vstv %s2511_s28  ;;  %v1610_v45 = vstv %s2513_s24  ;;  %v2625_v62 = vsel %vm484_vm3, %v1590_v2, %v1591_v31  ;;  %s2630_s28 = sld [smem:[#allocation5 + %s936_s5]]  ;;  %s1172_s1 = sadd.s32 68, %s2265_s18 }
  0x81   : > { %4589 = vst [vmem:[#allocation44_spill] sm:$0xff] %v2625_v62  ;;  %v421_v35 = vstv %s2553_s25  ;;  %s2632_s24 = sld [smem:[#allocation5 + %s1010_s22]]  ;;  %v2636_v11 = vsel %vm484_vm3, %v1591_v31, %v1590_v2  ;;  %v1463_v59 = vmul.f32 %v1462_v25, %v2599_v29  ;;  %v496_v6 = vstv %s2571_s20  ;;  %s1305_s25 = sadd.s32 76, %s2265_s18 }
  0x82   : > { %v1170_v10 = vadd.f32 %v1168_v24, %v1096_v14  ;;  %v271_v14 = vstv %s2533_s17  ;;  %v346_v24 = vstv %s2535_s19  ;;  %s2640_s3 = sld [smem:[#allocation5 + %s1084_s26]]  ;;  %s1158_s17 = sadd.s32 66, %s2265_s18  ;;  %v1537_v31 = vmul.f32 %v1536_v12, %v2612_v15 }
  0x83   : > { %v272_v0 = vmul.f32 %v271_v14, %v2305_v16  ;;  %v347_v5 = vmul.f32 %v346_v24, %v2313_v18  ;;  %s1232_s19 = sadd.s32 71, %s2265_s18  ;;  %v422_v18 = vmul.f32 %v421_v35, %v2326_v21  ;;  %v2658_v54 = vmul.f32 %v1536_v12, %v2616_v19  ;;  %s2665_s20 = sld [smem:[#allocation5 + %s1158_s17]] }
  0x84   : > { %v1244_v9 = vadd.f32 %v1242_v46, %v1170_v10  ;;  %v2648_v46 = vmul.f32 %v1462_v25, %v2603_v40  ;;  %v1611_v63 = vmul.f32 %v1610_v45, %v2625_v62  ;;  %v2662_v25 = vmul.f32 %v1610_v45, %v2636_v11  ;;  %s2669_s5 = sld [smem:[#allocation5 + %s1232_s19]]  ;;  %s283_s17 = sadd.s32 8, %s2265_s18 }
  0x85   : > { %v274_v10 = vadd.f32 %v272_v0, %v211_v13  ;;  %4592 = vst [vmem:[#allocation47_spill] sm:$0xff] %v2658_v54  ;;  %v497_v13 = vmul.f32 %v496_v6, %v2334_v23  ;;  %s2671_s22 = sld [smem:[#allocation5 + %s1305_s25]]  ;;  %v2674_v12 = vmul.f32 %v210_v34, %v2262_v1  ;;  %v2677_v45 = vmul.f32 %v271_v14, %v2309_v17  ;;  %s433_s19 = sadd.s32 18, %s2265_s18 }
  0x86   : > { %4591 = vst [vmem:[#allocation46_spill] sm:$0xff] %v2648_v46  ;;  %v1317_v2 = vadd.f32 %v1315_v38, %v1244_v9  ;;  %4593 = vst [vmem:[#allocation48_spill] sm:$0xff] %v2662_v25  ;;  %v569_v46 = vstv %s2573_s30  ;;  %v643_v9 = vstv %s2578_s21  ;;  %s2683_s30 = sld [smem:[#allocation5 + %s1379_s27]]  ;;  %v791_v25 = vstv %s2619_s4  ;;  %s218_s21 = sadd.s32 3, %s2265_s18 }
  0x87   : > { %v349_v0 = vadd.f32 %v347_v5, %v274_v10  ;;  %v717_v5 = vstv %s2607_s29  ;;  %s2685_s26 = sld [smem:[#allocation5 + %s1453_s9]]  ;;  %v570_v34 = vmul.f32 %v2268_v3, %v569_v46  ;;  %v2692_v14 = vmul.f32 %v421_v35, %v2330_v22  ;;  %s358_s29 = sadd.s32 13, %s2265_s18 }
  0x88   : > { %v1391_v38 = vadd.f32 %v1389_v39, %v1317_v2  ;;  %v2680_v39 = vmul.f32 %v346_v24, %v2322_v20  ;;  %v2695_v24 = vmul.f32 %v496_v6, %v2342_v26  ;;  %v2698_v54 = vmul.f32 %v2277_v7, %v569_v46  ;;  %s508_s25 = sadd.s32 23, %s2265_s18  ;;  %s2715_s27 = sld [smem:[#allocation5 + %s218_s21]] }
  0x89   : > { %v424_v10 = vadd.f32 %v422_v18, %v349_v0  ;;  %v2704_v0 = vmul.f32 %v643_v9, %v2356_v30  ;;  %v865_v3 = vstv %s2621_s0  ;;  %v718_v35 = vmul.f32 %v717_v5, %v2386_v47  ;;  %s2717_s9 = sld [smem:[#allocation5 + %s283_s17]]  ;;  %s4448_s21 = smov 126  }
  0x8a   : > { %v1465_v2 = vadd.f32 %v1463_v59, %v1391_v38  ;;  %v644_v59 = vmul.f32 %v643_v9, %v2346_v27  ;;  %v2711_v46 = vmul.f32 %v717_v5, %v2390_v48  ;;  %v792_v6 = vmul.f32 %v791_v25, %v2403_v52  ;;  %s2721_s0 = sld [smem:[#allocation5 + %s358_s29]]  ;;  %s655_s29 = sadd.s32 33, %s2265_s18 }
  0x8b   : > { %v499_v38 = vadd.f32 %v497_v13, %v424_v10  ;;  %v938_v27 = vstv %s2630_s28  ;;  %v1012_v9 = vstv %s2632_s24  ;;  %s2723_s4 = sld [smem:[#allocation5 + %s433_s19]]  ;;  %v2726_v5 = vmul.f32 %v791_v25, %v2413_v56  ;;  %s581_s24 = sadd.s32 28, %s2265_s18 }
  0x8c   : > { %v1539_v18 = vadd.f32 %v1537_v31, %v1465_v2  ;;  %v1086_v2 = vstv %s2640_s3  ;;  %v866_v10 = vmul.f32 %v865_v3, %v2430_v61  ;;  %v2730_v52 = vmul.f32 %v865_v3, %v2446_v8  ;;  %s2733_s28 = sld [smem:[#allocation5 + %s508_s25]]  ;;  %s1601_s3 = sadd.s32 96, %s2265_s18 }
  0x8d   : > { %v572_v13 = vadd.f32 %v570_v34, %v499_v38  ;;  %v1234_v25 = vstv %s2669_s5  ;;  %v1307_v38 = vstv %s2671_s22  ;;  %v2742_v61 = vmul.f32 %v2416_v57, %v938_v27  ;;  %s2761_s5 = sld [smem:[#allocation5 + %s581_s24]]  ;;  %s803_s25 = sadd.s32 43, %s2265_s18 }
  0x8e   : > { %v1613_v31 = vadd.f32 %v1611_v63, %v1539_v18  ;;  %v1160_v63 = vstv %s2665_s20  ;;  %v939_v18 = vmul.f32 %v2362_v32, %v938_v27  ;;  %v1013_v3 = vmul.f32 %v1012_v9, %v2479_v36  ;;  %s4594_s20 = sadd.s32 91, %s2265_s18  ;;  %s2775_s22 = sld [smem:[#allocation5 + %s1601_s3]] }
  0x8f   : > { %v646_v34 = vadd.f32 %v644_v59, %v572_v13  ;;  %v2746_v47 = vmul.f32 %v1012_v9, %v2483_v37  ;;  %v1087_v23 = vmul.f32 %v1086_v2, %v2500_v43  ;;  %s2751_s17 = sld [smem:[#allocation5 + %s4594_s20]]  ;;  %v2758_v27 = vmul.f32 %v1160_v63, %v2517_v55  ;;  %s877_s24 = sadd.s32 48, %s2265_s18 }
  0x90   : > { %1668 = vrot.lane.b32.xlu1 %v1613_v31, %s4448_s21  ;;  %v2755_v31 = vmul.f32 %v1086_v2, %v2504_v44  ;;  %v1381_v13 = vstv %s2683_s30  ;;  %v2764_v9 = vmul.f32 %v1160_v63, %v2521_v60  ;;  %v2767_v43 = vmul.f32 %v1234_v25, %v2550_v28  ;;  %s729_s30 = sadd.s32 38, %s2265_s18  ;;  %s2785_s19 = sld [smem:[#allocation5 + %s655_s29]] }
  0x91   : > { %v720_v59 = vadd.f32 %v718_v35, %v646_v34  ;;  %v2770_v35 = vmul.f32 %v1234_v25, %v2558_v33  ;;  %v2773_v2 = vmul.f32 %v2494_v42, %v1307_v38  ;;  %v2779_v55 = vmul.f32 %v2509_v51, %v1307_v38  ;;  %s2800_s3 = sld [smem:[#allocation5 + %s729_s30]]  ;;  %s950_s20 = sadd.s32 53, %s2265_s18 }
  0x92   : > { %v282_v63 = vadd.f32 %v2398_v50, %v2395_v49  ;;  %v275_v25 = vadd.f32 %v2677_v45, %v2674_v12  ;;  %v2789_v42 = vmul.f32 %v1381_v13, %v2566_v41  ;;  %v4451_v38 = vstv %s2715_s27  ;;  %s1024_s29 = sadd.s32 58, %s2265_s18  ;;  %s2817_s30 = sld [smem:[#allocation5 + %s877_s24]] }
  0x93   : > { %v794_v34 = vadd.f32 %v792_v6, %v720_v59  ;;  %v1455_v6 = vstv %s2685_s26  ;;  %v4450_v59 = vstv %s2717_s9  ;;  %v222_v12 = vmul.f32 %v4451_v38, %v2262_v1  ;;  %s2809_s26 = sld [smem:[#allocation5 + %s803_s25]]  ;;  %s1098_s21 = sadd.s32 63, %s2265_s18 }
  0x94   : > { %v357_v49 = vadd.f32 %v2408_v53, %v282_v63  ;;  %v350_v50 = vadd.f32 %v2680_v39, %v275_v25  ;;  %v287_v45 = vmul.f32 %v4450_v59, %v2309_v17  ;;  %v360_v41 = vstv %s2721_s0  ;;  %s2827_s25 = sld [smem:[#allocation5 + %s950_s20]]  ;;  %s1467_s23 = sadd.s32 88, %s2265_s18 }
  0x95   : > { %v868_v28 = vadd.f32 %v866_v10, %v794_v34  ;;  %v4452_v36 = vstv %s2723_s4  ;;  %v4453_v10 = vstv %s2733_s28  ;;  %v362_v63 = vmul.f32 %v360_v41, %v2322_v20  ;;  %s2833_s24 = sld [smem:[#allocation5 + %s1024_s29]]  ;;  %s1246_s29 = sadd.s32 73, %s2265_s18 }
  0x96   : > { %v432_v39 = vadd.f32 %v2422_v58, %v357_v49  ;;  %v425_v34 = vadd.f32 %v2692_v14, %v350_v50  ;;  %v2821_v25 = vmul.f32 %v1381_v13, %v2591_v4  ;;  %v1529_v59 = vstv %s2751_s17  ;;  %v4595_v14 = vld [vmem:[#allocation25_spill] sm:$0xff]  ;;  %s2840_s17 = sld [smem:[#allocation5 + %s1098_s21]]  ;;  %s1319_s21 = sadd.s32 78, %s2265_s18 }
  0x97   : > { %v941_v53 = vadd.f32 %v939_v18, %v868_v28  ;;  %v289_v38 = vadd.f32 %v287_v45, %v222_v12  ;;  %v437_v28 = vmul.f32 %v4452_v36, %v2330_v22  ;;  %v583_v50 = vstv %s2761_s5  ;;  %s2845_s20 = sld [smem:[#allocation5 + %s1172_s1]]  ;;  %s1393_s1 = sadd.s32 83, %s2265_s18 }
  0x98   : > { %v507_v18 = vadd.f32 %v4595_v14, %v432_v39  ;;  %v500_v49 = vadd.f32 %v2695_v24, %v425_v34  ;;  %v1456_v13 = vmul.f32 %v1455_v6, %v2599_v29  ;;  %v1603_v12 = vstv %s2775_s22  ;;  %s2868_s22 = sld [smem:[#allocation5 + %s1246_s29]]  ;;  %s1541_s15 = sadd.s32 93, %s2265_s18 }
  0x99   : > { %v1015_v58 = vadd.f32 %v1013_v3, %v941_v53  ;;  %v364_v45 = vadd.f32 %v362_v63, %v289_v38  ;;  %v512_v36 = vmul.f32 %v4453_v10, %v2342_v26  ;;  %v4596_v53 = vld [vmem:[#allocation27_spill] sm:$0xff]  ;;  %v657_v34 = vstv %s2785_s19  ;;  %s2874_s7 = sld [smem:[#allocation5 + %s1319_s21]]  ;;  %s1615_s21 = sadd.s32 98, %s2265_s18 }
  0x9a   : > { %v580_v39 = vadd.f32 %v4596_v53, %v507_v18  ;;  %v573_v24 = vadd.f32 %v2698_v54, %v500_v49  ;;  %v2849_v14 = vmul.f32 %v1455_v6, %v2603_v40  ;;  %v1530_v38 = vmul.f32 %v1529_v59, %v2612_v15  ;;  %v4597_v54 = vld [vmem:[#allocation28_spill] sm:$0xff]  ;;  %s2882_s29 = sld [smem:[#allocation5 + %s1393_s1]]  ;;  %s440_s6 = sadd.s32 19, %s2265_s18 }
  0x9b   : > { %v1089_v3 = vadd.f32 %v1087_v23, %v1015_v58  ;;  %v439_v63 = vadd.f32 %v437_v28, %v364_v45  ;;  %v585_v10 = vmul.f32 %v2277_v7, %v583_v50  ;;  %v731_v49 = vstv %s2800_s3  ;;  %s2897_s1 = sld [smem:[#allocation5 + %s1467_s23]]  ;;  %s736_s5 = sadd.s32 39, %s2265_s18 }
  0x9c   : > { %v654_v58 = vadd.f32 %v4597_v54, %v580_v39  ;;  %v647_v18 = vadd.f32 %v2704_v0, %v573_v24  ;;  %v2862_v6 = vmul.f32 %v1529_v59, %v2616_v19  ;;  %v1604_v28 = vmul.f32 %v1603_v12, %v2625_v62  ;;  %v4598_v0 = vld [vmem:[#allocation29_spill] sm:$0xff]  ;;  %s2903_s14 = sld [smem:[#allocation5 + %s1541_s15]]  ;;  %s223_s15 = sadd.s32 4, %s2265_s18 }
  0x9d   : > { %v1163_v23 = vadd.f32 %v2758_v27, %v1089_v3  ;;  %v514_v7 = vadd.f32 %v512_v36, %v439_v63  ;;  %v659_v45 = vmul.f32 %v657_v34, %v2356_v30  ;;  %v4462_v39 = vstv %s2809_s26  ;;  %s2914_s23 = sld [smem:[#allocation5 + %s1615_s21]]  ;;  %s290_s21 = sadd.s32 9, %s2265_s18 }
  0x9e   : > { %v728_v3 = vadd.f32 %v4598_v0, %v654_v58  ;;  %v721_v53 = vadd.f32 %v2711_v46, %v647_v18  ;;  %v733_v59 = vmul.f32 %v731_v49, %v2390_v48  ;;  %v4459_v24 = vstv %s2817_s30  ;;  %s2953_s0 = sld [smem:[#allocation5 + %s290_s21]]  ;;  %s810_s19 = sadd.s32 44, %s2265_s18 }
  0x9f   : > { %v1237_v27 = vadd.f32 %v2767_v43, %v1163_v23  ;;  %v587_v36 = vadd.f32 %v585_v10, %v514_v7  ;;  %v4458_v63 = vstv %s2827_s25  ;;  %v4599_v23 = vld [vmem:[#allocation30_spill] sm:$0xff]  ;;  %v4457_v58 = vstv %s2833_s24  ;;  %s2969_s21 = sld [smem:[#allocation5 + %s440_s6]]  ;;  %s884_s3 = sadd.s32 49, %s2265_s18 }
  0xa0   : > { %v802_v46 = vadd.f32 %v4599_v23, %v728_v3  ;;  %v795_v54 = vadd.f32 %v2726_v5, %v721_v53  ;;  %v2891_v10 = vmul.f32 %v1603_v12, %v2636_v11  ;;  %v807_v7 = vmul.f32 %v4462_v39, %v2413_v56  ;;  %s1179_s16 = sadd.s32 69, %s2265_s18  ;;  %s4629_s2 = smov 126  }
  0xa1   : > { %v1310_v43 = vadd.f32 %v2773_v2, %v1237_v27  ;;  %v661_v18 = vadd.f32 %v659_v45, %v587_v36  ;;  %v4461_v0 = vstv %s2840_s17  ;;  %v4600_v27 = vld [vmem:[#allocation31_spill] sm:$0xff]  ;;  %v4460_v53 = vstv %s2845_s20  ;;  %s4630_s13 = smov 127  }
  0xa2   : > { %v876_v5 = vadd.f32 %v4600_v27, %v802_v46  ;;  %v869_v3 = vadd.f32 %v2730_v52, %v795_v54  ;;  %v881_v45 = vmul.f32 %v4459_v24, %v2446_v8  ;;  %v954_v36 = vmul.f32 %v2416_v57, %v4458_v63 }
  0xa3   : > { %v1384_v2 = vadd.f32 %v2789_v42, %v1310_v43  ;;  %v735_v12 = vadd.f32 %v733_v59, %v661_v18  ;;  %v1028_v42 = vmul.f32 %v4457_v58, %v2483_v37  ;;  %v4601_v43 = vld [vmem:[#allocation33_spill] sm:$0xff]  ;;  %v1102_v46 = vmul.f32 %v4461_v0, %v2504_v44  ;;  %v4602_v58 = vld [vmem:[#allocation17_spill] sm:$0xff]  ;;  %v4606_v0 = vld [vmem:[#allocation20_spill] sm:$0xff] }
  0xa4   : > { %v949_v23 = vadd.f32 %v4601_v43, %v876_v5  ;;  %v942_v59 = vadd.f32 %v2742_v61, %v869_v3  ;;  %v1176_v18 = vmul.f32 %v4460_v53, %v2521_v60  ;;  %v1248_v27 = vstv %s2868_s22 }
  0xa5   : > { %v1458_v52 = vadd.f32 %v1456_v13, %v1384_v2  ;;  %v809_v54 = vadd.f32 %v807_v7, %v735_v12  ;;  %v4603_v63 = vstv %s2715_s27  ;;  %v4604_v2 = vld [vmem:[#allocation37_spill] sm:$0xff]  ;;  %v1321_v3 = vstv %s2874_s7  ;;  %s365_s27 = sadd.s32 14, %s2265_s18 }
  0xa6   : > { %v221_v24 = vmul.f32 %v4603_v63, %v4602_v58  ;;  %v1023_v5 = vadd.f32 %v4604_v2, %v949_v23  ;;  %v1016_v61 = vadd.f32 %v2746_v47, %v942_v59  ;;  %v1395_v12 = vstv %s2882_s29  ;;  %v4607_v58 = vld [vmem:[#allocation38_spill] sm:$0xff] }
  0xa7   : > { %v1532_v13 = vadd.f32 %v1530_v38, %v1458_v52  ;;  %v883_v7 = vadd.f32 %v881_v45, %v809_v54  ;;  %v4605_v43 = vstv %s2717_s9  ;;  %v361_v39 = vmul.f32 %v360_v41, %v4606_v0  ;;  %s2951_s9 = sld [smem:[#allocation5 + %s223_s15]] }
  0xa8   : > { %v286_v53 = vmul.f32 %v4605_v43, %v2305_v16  ;;  %v1097_v38 = vadd.f32 %v4607_v58, %v1023_v5  ;;  %v1090_v52 = vadd.f32 %v2755_v31, %v1016_v61  ;;  %v1250_v47 = vmul.f32 %v1248_v27, %v2558_v33  ;;  %v4609_v31 = vld [vmem:[#allocation39_spill] sm:$0xff]  ;;  %v4610_v61 = vld [vmem:[#allocation21_spill] sm:$0xff]  ;;  %s2967_s15 = sld [smem:[#allocation5 + %s365_s27]] }
  0xa9   : > { %v1606_v63 = vadd.f32 %v1604_v28, %v1532_v13  ;;  %v956_v45 = vadd.f32 %v954_v36, %v883_v7  ;;  %v4468_v23 = vstv %s2897_s1  ;;  %v4608_v41 = vstv %s2723_s4  ;;  %s515_s4 = sadd.s32 24, %s2265_s18 }
  0xaa   : > { %v288_v59 = vadd.f32 %v286_v53, %v221_v24  ;;  %v436_v28 = vmul.f32 %v4608_v41, %v2326_v21  ;;  %v1171_v54 = vadd.f32 %v4609_v31, %v1097_v38  ;;  %v1164_v36 = vadd.f32 %v2764_v9, %v1090_v52  ;;  %v4612_v9 = vld [vmem:[#allocation43_spill] sm:$0xff]  ;;  %s2989_s6 = sld [smem:[#allocation5 + %s515_s4]]  ;;  %v4615_v41 = vld [vmem:[#allocation41_spill] sm:$0xff] }
  0xab   : > { %1664 = vrot.lane.b32.xlu0 %v1606_v63, %s4464_s11  ;;  %v1323_v24 = vmul.f32 %v2509_v51, %v1321_v3  ;;  %v4467_v53 = vstv %s2903_s14  ;;  %v1030_v13 = vadd.f32 %v1028_v42, %v956_v45  ;;  %v4466_v2 = vstv %s2914_s23  ;;  %s662_s11 = sadd.s32 34, %s2265_s18 }
  0xac   : > { %v363_v5 = vadd.f32 %v361_v39, %v288_v59  ;;  %v4611_v7 = vstv %s2733_s28  ;;  %v1245_v63 = vadd.f32 %v4612_v9, %v1171_v54  ;;  %v1238_v58 = vadd.f32 %v2770_v35, %v1164_v36  ;;  %s588_s28 = sadd.s32 29, %s2265_s18  ;;  %v4613_v59 = vld [vmem:[#allocation19_spill] sm:$0xff]  ;;  %v4616_v36 = vld [vmem:[#allocation22_spill] sm:$0xff]  ;;  %v4618_v9 = vld [vmem:[#allocation24_spill] sm:$0xff]  ;;  %s3010_s4 = sld [smem:[#allocation5 + %s662_s11]] }
  0xad   : > { %v511_v43 = vmul.f32 %v4611_v7, %v4610_v61  ;;  %v1397_v38 = vmul.f32 %v1395_v12, %v2591_v4  ;;  %v1471_v39 = vmul.f32 %v4468_v23, %v2603_v40  ;;  %v1104_v42 = vadd.f32 %v1102_v46, %v1030_v13  ;;  %s3008_s27 = sld [smem:[#allocation5 + %s588_s28]]  ;;  %v4625_v23 = vld [vmem:[#allocation46_spill] sm:$0xff]  ;;  %s1105_s28 = sadd.s32 64, %s2265_s18 }
  0xae   : > { %v2984_v52 = vmul.f32 %v4467_v53, %v2616_v19  ;;  %v438_v45 = vadd.f32 %v436_v28, %v363_v5  ;;  %v584_v35 = vmul.f32 %v4613_v59, %v583_v50  ;;  %v1318_v31 = vadd.f32 %v4615_v41, %v1245_v63  ;;  %v4617_v5 = vld [vmem:[#allocation23_spill] sm:$0xff]  ;;  %s3023_s11 = sld [smem:[#allocation5 + %s736_s5]]  ;;  %s3047_s5 = sshll.u32 %s2058_s12, 1 }
  0xaf   : > { %v1311_v54 = vadd.f32 %v2779_v55, %v1238_v58  ;;  %v2996_v46 = vmul.f32 %v4466_v2, %v2636_v11  ;;  %v658_v28 = vmul.f32 %v657_v34, %v4616_v36  ;;  %v1178_v13 = vadd.f32 %v1176_v18, %v1104_v42  ;;  %v4621_v55 = vld [vmem:[#allocation45_spill] sm:$0xff]  ;;  %v4622_v18 = vld [vmem:[#allocation26_spill] sm:$0xff]  ;;  %4627 = sst [smem:[#allocation51_spill]] %s3047_s5 }
  0xb0   : > { %4614 = sst [smem:[#allocation49_spill]] %s2989_s6  ;;  %v513_v50 = vadd.f32 %v511_v43, %v438_v45  ;;  %v732_v7 = vmul.f32 %v731_v49, %v4617_v5  ;;  %v4619_v59 = vstv %s2809_s26  ;;  %v1392_v34 = vadd.f32 %v4621_v55, %v1318_v31  ;;  %s957_s26 = sadd.s32 54, %s2265_s18 }
  0xb1   : > { %v806_v63 = vmul.f32 %v4619_v59, %v4618_v9  ;;  %v1385_v58 = vadd.f32 %v2821_v25, %v1311_v54  ;;  %v4623_v43 = vstv %s2817_s30  ;;  %v4624_v45 = vstv %s2827_s25  ;;  %s3037_s30 = sld [smem:[#allocation5 + %s810_s19]]  ;;  %s1031_s25 = sadd.s32 59, %s2265_s18 }
  0xb2   : > { %4620 = sst [smem:[#allocation50_spill]] %s3010_s4  ;;  %v880_v42 = vmul.f32 %v4623_v43, %v4622_v18  ;;  %v953_v49 = vmul.f32 %v2362_v32, %v4624_v45  ;;  %v1252_v41 = vadd.f32 %v1250_v47, %v1178_v13  ;;  %v586_v59 = vadd.f32 %v584_v35, %v513_v50 }
  0xb3   : > { %v225_v2 = vstv %s2951_s9  ;;  %v292_v53 = vstv %s2953_s0  ;;  %v1466_v31 = vadd.f32 %v4625_v23, %v1392_v34  ;;  %v1459_v25 = vadd.f32 %v2849_v14, %v1385_v58  ;;  %v4626_v23 = vld [vmem:[#allocation47_spill] sm:$0xff]  ;;  %s3053_s19 = sld [smem:[#allocation5 + %s884_s3]] }
  0xb4   : > { %v227_v54 = vmul.f32 %v225_v2, %v2262_v1  ;;  %v294_v32 = vmul.f32 %v292_v53, %v2309_v17  ;;  %v1325_v47 = vadd.f32 %v1323_v24, %v1252_v41  ;;  %v660_v35 = vadd.f32 %v658_v28, %v586_v59  ;;  %s3055_s10 = sld [smem:[#allocation5 + %s957_s26]]  ;;  %s229_s26 = sadd.s32 1, %s3047_s5 }
  0xb5   : > { %v367_v13 = vstv %s2967_s15  ;;  %v442_v50 = vstv %s2969_s21  ;;  %v1540_v14 = vadd.f32 %v4626_v23, %v1466_v31  ;;  %v1533_v55 = vadd.f32 %v2862_v6, %v1459_v25  ;;  %v4628_v6 = vld [vmem:[#allocation48_spill] sm:$0xff]  ;;  %s3062_s12 = sld [smem:[#allocation5 + %s1031_s25]]  ;;  %s1253_s25 = sadd.s32 74, %s2265_s18 }
  0xb6   : > { %v296_v1 = vadd.f32 %v294_v32, %v227_v54  ;;  %v369_v34 = vmul.f32 %v367_v13, %v2322_v20  ;;  %v1399_v24 = vadd.f32 %v1397_v38, %v1325_v47  ;;  %v734_v28 = vadd.f32 %v732_v7, %v660_v35  ;;  %s3067_s3 = sld [smem:[#allocation5 + %s1105_s28]]  ;;  %v3073_v32 = vld [vmem:[%s2248_s8 + $0x18] sm:$0xff]  ;;  %v4631_v35 = vld [vmem:[#allocation32_spill] sm:$0xff]  ;;  %s1400_s5 = sadd.s32 84, %s2265_s18 }
  0xb7   : > { %v444_v58 = vmul.f32 %v442_v50, %v2330_v22  ;;  %v517_v43 = vstv %s2989_s6  ;;  %v1614_v45 = vadd.f32 %v4628_v6, %v1540_v14  ;;  %v1607_v41 = vadd.f32 %v2891_v10, %v1533_v55  ;;  %s1326_s6 = sadd.s32 79, %s2265_s18  ;;  %s3085_s28 = sld [smem:[#allocation5 + %s1179_s16]] }
  0xb8   : > { %v371_v59 = vadd.f32 %v369_v34, %v296_v1  ;;  %v519_v38 = vmul.f32 %v517_v43, %v2342_v26  ;;  %v1473_v7 = vadd.f32 %v1471_v39, %v1399_v24  ;;  %v808_v31 = vadd.f32 %v806_v63, %v734_v28  ;;  %v4633_v24 = vld [vmem:[#allocation35_spill] sm:$0xff]  ;;  %s3099_s16 = sld [smem:[#allocation5 + %s1253_s25]]  ;;  %s1622_s25 = sadd.s32 99, %s2265_s18 }
  0xb9   : > { %v590_v25 = vstv %s3008_s27  ;;  %v664_v54 = vstv %s3010_s4  ;;  %1670 = vrot.lane.b32.xlu1 %v1614_v45, %s4629_s2  ;;  %1666 = vrot.lane.b32.xlu0 %v1607_v41, %s4630_s13  ;;  %s1474_s2 = sadd.s32 89, %s2265_s18  ;;  %s3092_s13 = smul.u32 100, %s229_s26 }
  0xba   : > { %v446_v10 = vadd.f32 %v444_v58, %v371_v59  ;;  %v592_v39 = vmul.f32 %v3073_v32, %v590_v25  ;;  %v1547_v63 = vadd.f32 %v2984_v52, %v1473_v7  ;;  %v882_v47 = vadd.f32 %v880_v42, %v808_v31  ;;  %s3106_s26 = sld [smem:[#allocation5 + %s1400_s5]]  ;;  %s1548_s4 = sadd.s32 94, %s2265_s18  ;;  %v4637_v31 = vld [vmem:[#allocation40_spill] sm:$0xff] }
  0xbb   : > { %v4632_v23 = vstv %s2833_s24  ;;  %v738_v55 = vstv %s3023_s11  ;;  %v666_v34 = vmul.f32 %v664_v54, %v2356_v30  ;;  %v4634_v28 = vstv %s2840_s17  ;;  %s3101_s24 = sld [smem:[#allocation5 + %s1326_s6]]  ;;  %s4484_s17 = smov 125  }
  0xbc   : > { %v1027_v14 = vmul.f32 %v4632_v23, %v4631_v35  ;;  %v521_v1 = vadd.f32 %v519_v38, %v446_v10  ;;  %v1621_v52 = vadd.f32 %v2996_v46, %v1547_v63  ;;  %v955_v42 = vadd.f32 %v953_v49, %v882_v47  ;;  %v4635_v49 = vld [vmem:[#allocation36_spill] sm:$0xff]  ;;  %s3114_s6 = sld [smem:[#allocation5 + %s1474_s2]]  ;;  %s304_s5 = sadd.s32 6, %s3092_s13 }
  0xbd   : > { %v1101_v58 = vmul.f32 %v4634_v28, %v4633_v24  ;;  %v4479_v6 = vstv %s3037_s30  ;;  %v740_v41 = vmul.f32 %v738_v55, %v2390_v48  ;;  %v4636_v59 = vstv %s2845_s20  ;;  %s235_s20 = sadd.s32 1, %s3092_s13  ;;  %s3135_s2 = sld [smem:[#allocation5 + %s1548_s4]] }
  0xbe   : > { %v594_v45 = vadd.f32 %v592_v39, %v521_v1  ;;  %1674 = vrot.lane.b32.xlu1 %v1621_v52, %s4484_s17  ;;  %v1029_v46 = vadd.f32 %v1027_v14, %v955_v42  ;;  %v1175_v38 = vmul.f32 %v4636_v59, %v4635_v49  ;;  %v4477_v7 = vstv %s3053_s19  ;;  %v4638_v14 = vld [vmem:[#allocation34_spill] sm:$0xff]  ;;  %s379_s22 = sadd.s32 11, %s3092_s13  ;;  %s3147_s7 = sld [smem:[#allocation5 + %s1622_s25]] }
  0xbf   : > { %v1249_v10 = vmul.f32 %v1248_v27, %v4637_v31  ;;  %v814_v63 = vmul.f32 %v4479_v6, %v2413_v56  ;;  %v4476_v47 = vstv %s3055_s10  ;;  %v1322_v1 = vmul.f32 %v4638_v14, %v1321_v3  ;;  %v4639_v52 = vld [vmem:[#allocation42_spill] sm:$0xff]  ;;  %s454_s29 = sadd.s32 16, %s3092_s13  ;;  %s3171_s4 = sld [smem:[#allocation5 + %s379_s22]] }
  0xc0   : > { %v668_v39 = vadd.f32 %v666_v34, %v594_v45  ;;  %v1103_v23 = vadd.f32 %v1101_v58, %v1029_v46  ;;  %v1396_v42 = vmul.f32 %v1395_v12, %v4639_v52  ;;  %v4640_v27 = vstv %s2897_s1  ;;  %s3157_s1 = sld [smem:[#allocation5 + %s304_s5]]  ;;  %s529_s25 = sadd.s32 21, %s3092_s13 }
  0xc1   : > { %v1470_v34 = vmul.f32 %v4640_v27, %v2599_v29  ;;  %v4641_v28 = vstv %s2903_s14  ;;  %v888_v3 = vmul.f32 %v4477_v7, %v2446_v8  ;;  %v4478_v12 = vstv %s3062_s12  ;;  %s3155_s14 = sld [smem:[#allocation5 + %s235_s20]]  ;;  %s602_s20 = sadd.s32 26, %s3092_s13 }
  0xc2   : > { %v3141_v45 = vmul.f32 %v4641_v28, %v2612_v15  ;;  %v742_v58 = vadd.f32 %v740_v41, %v668_v39  ;;  %v1177_v46 = vadd.f32 %v1175_v38, %v1103_v23  ;;  %v961_v59 = vmul.f32 %v2416_v57, %v4476_v47  ;;  %v3160_v39 = vld [vmem:[%s2248_s8] sm:$0xff]  ;;  %s3179_s0 = sld [smem:[#allocation5 + %s454_s29]]  ;;  %s676_s5 = sadd.s32 31, %s3092_s13 }
  0xc3   : > { %v1107_v14 = vstv %s3067_s3  ;;  %v1181_v27 = vstv %s3085_s28  ;;  %v226_v28 = vmul.f32 %v3160_v39, %v225_v2  ;;  %v293_v38 = vmul.f32 %v292_v53, %v2305_v16  ;;  %s3195_s15 = sld [smem:[#allocation5 + %s529_s25]]  ;;  %s750_s22 = sadd.s32 36, %s3092_s13 }
  0xc4   : > { %v816_v41 = vadd.f32 %v814_v63, %v742_v58  ;;  %v368_v57 = vmul.f32 %v367_v13, %v4606_v0  ;;  %v1251_v63 = vadd.f32 %v1249_v10, %v1177_v46  ;;  %v1035_v23 = vmul.f32 %v4478_v12, %v2483_v37  ;;  %s3204_s21 = sld [smem:[#allocation5 + %s602_s20]]  ;;  %s824_s25 = sadd.s32 41, %s3092_s13 }
  0xc5   : > { %v1255_v58 = vstv %s3099_s16  ;;  %v4481_v2 = vstv %s3101_s24  ;;  %v4480_v47 = vstv %s3106_s26  ;;  %v295_v13 = vadd.f32 %v293_v38, %v226_v28  ;;  %s3221_s29 = sld [smem:[#allocation5 + %s676_s5]]  ;;  %s898_s9 = sadd.s32 46, %s3092_s13 }
  0xc6   : > { %v890_v53 = vadd.f32 %v888_v3, %v816_v41  ;;  %v443_v7 = vmul.f32 %v442_v50, %v2326_v21  ;;  %v1324_v10 = vadd.f32 %v1322_v1, %v1251_v63  ;;  %v4643_v46 = vstv %s2914_s23  ;;  %s3236_s27 = sld [smem:[#allocation5 + %s750_s22]]  ;;  %s971_s5 = sadd.s32 51, %s3092_s13 }
  0xc7   : > { %v1618_v12 = vmul.f32 %v4643_v46, %v2625_v62  ;;  %v1109_v6 = vmul.f32 %v1107_v14, %v2504_v44  ;;  %v1183_v3 = vmul.f32 %v1181_v27, %v2521_v60  ;;  %v1257_v50 = vmul.f32 %v1255_v58, %v2558_v33  ;;  %v3216_v46 = vld [vmem:[%s2248_s8 + $0x10] sm:$0xff]  ;;  %s3251_s20 = sld [smem:[#allocation5 + %s824_s25]]  ;;  %s1045_s11 = sadd.s32 56, %s3092_s13 }
  0xc8   : > { %v963_v41 = vadd.f32 %v961_v59, %v890_v53  ;;  %v370_v1 = vadd.f32 %v368_v57, %v295_v13  ;;  %v518_v28 = vmul.f32 %v517_v43, %v4610_v61  ;;  %v1398_v38 = vadd.f32 %v1396_v42, %v1324_v10  ;;  %s3258_s23 = sld [smem:[#allocation5 + %s898_s9]]  ;;  %s1119_s22 = sadd.s32 61, %s3092_s13 }
  0xc9   : > { %v1330_v63 = vmul.f32 %v2509_v51, %v4481_v2  ;;  %v1404_v59 = vmul.f32 %v4480_v47, %v2591_v4  ;;  %v1476_v53 = vstv %s3114_s6  ;;  %v1550_v13 = vstv %s3135_s2  ;;  %s3273_s25 = sld [smem:[#allocation5 + %s971_s5]]  ;;  %s1340_s5 = sadd.s32 76, %s3092_s13 }
  0xca   : > { %v1037_v57 = vadd.f32 %v1035_v23, %v963_v41  ;;  %v445_v43 = vadd.f32 %v443_v7, %v370_v1  ;;  %v591_v42 = vmul.f32 %v3216_v46, %v590_v25  ;;  %v1472_v51 = vadd.f32 %v1470_v34, %v1398_v38  ;;  %v3230_v1 = vld [vmem:[%s2248_s8 + $0x8] sm:$0xff]  ;;  %s3280_s9 = sld [smem:[#allocation5 + %s1045_s11]]  ;;  %s1414_s18 = sadd.s32 81, %s3092_s13 }
  0xcb   : > { %v1624_v10 = vstv %s3147_s7  ;;  %v665_v47 = vmul.f32 %v664_v54, %v4616_v36  ;;  %v4482_v23 = vstv %s3155_s14  ;;  %v4483_v2 = vstv %s3157_s1  ;;  %s1488_s3 = sadd.s32 86, %s3092_s13  ;;  %s3330_s28 = sld [smem:[#allocation5 + %s1414_s18]] }
  0xcc   : > { %v1111_v7 = vadd.f32 %v1109_v6, %v1037_v57  ;;  %v520_v41 = vadd.f32 %v518_v28, %v445_v43  ;;  %v239_v25 = vmul.f32 %v3230_v1, %v4482_v23  ;;  %v1546_v54 = vadd.f32 %v3141_v45, %v1472_v51  ;;  %s240_s16 = sadd.s32 2, %s3092_s13  ;;  %s311_s18 = sadd.s32 7, %s3092_s13 }
  0xcd   : > { %v308_v34 = vmul.f32 %v4483_v2, %v2309_v17  ;;  %v381_v6 = vstv %s3171_s4  ;;  %v4487_v28 = vstv %s3179_s0  ;;  %v739_v43 = vmul.f32 %v738_v55, %v4617_v5  ;;  %s461_s2 = sadd.s32 17, %s3092_s13  ;;  %s609_s4 = sadd.s32 27, %s3092_s13 }
  0xce   : > { %v1185_v38 = vadd.f32 %v1183_v3, %v1111_v7  ;;  %v593_v57 = vadd.f32 %v591_v42, %v520_v41  ;;  %v383_v23 = vmul.f32 %v381_v6, %v2322_v20  ;;  %v1620_v45 = vadd.f32 %v1618_v12, %v1546_v54  ;;  %s1636_s7 = sadd.s32 96, %s3092_s13 }
  0xcf   : > { %v310_v51 = vadd.f32 %v308_v34, %v239_v25  ;;  %v458_v2 = vmul.f32 %v4487_v28, %v2330_v22  ;;  %v4486_v3 = vstv %s3195_s15  ;;  %v4645_v7 = vstv %s3037_s30  ;;  %s1193_s30 = sadd.s32 66, %s3092_s13 }
  0xd0   : > { %v1259_v55 = vadd.f32 %v1257_v50, %v1185_v38  ;;  %v667_v42 = vadd.f32 %v665_v47, %v593_v57  ;;  %v813_v41 = vmul.f32 %v4645_v7, %v4618_v9  ;;  %v4490_v12 = vstv %s3204_s21  ;;  %1672 = vrot.lane.b32.xlu0 %v1620_v45, %s4484_s17  ;;  %s1267_s17 = sadd.s32 71, %s3092_s13  ;;  %v3296_v7 = vld [vmem:[%s2248_s8 + $0x20] sm:$0xff]  ;;  %s3302_s11 = sld [smem:[#allocation5 + %s1193_s30]] }
  0xd1   : > { %v1478_v25 = vmul.f32 %v1476_v53, %v2603_v40  ;;  %v385_v54 = vadd.f32 %v383_v23, %v310_v51  ;;  %v533_v50 = vmul.f32 %v4486_v3, %v2342_v26  ;;  %v4646_v38 = vstv %s3053_s19  ;;  %s3292_s19 = sld [smem:[#allocation5 + %s1119_s22]] }
  0xd2   : > { %v1332_v47 = vadd.f32 %v1330_v63, %v1259_v55  ;;  %v741_v34 = vadd.f32 %v739_v43, %v667_v42  ;;  %v887_v57 = vmul.f32 %v4646_v38, %v4622_v18  ;;  %v4494_v45 = vstv %s3221_s29  ;;  %s3374_s22 = sld [smem:[#allocation5 + %s240_s16]]  ;;  %s683_s16 = sadd.s32 32, %s3092_s13 }
  0xd3   : > { %v1552_v23 = vmul.f32 %v1550_v13, %v2616_v19  ;;  %v1626_v51 = vmul.f32 %v1624_v10, %v2636_v11  ;;  %v460_v63 = vadd.f32 %v458_v2, %v385_v54  ;;  %v606_v43 = vmul.f32 %v3073_v32, %v4490_v12  ;;  %s3376_s30 = sld [smem:[#allocation5 + %s311_s18]]  ;;  %s757_s18 = sadd.s32 37, %s3092_s13 }
  0xd4   : > { %v1406_v55 = vadd.f32 %v1404_v59, %v1332_v47  ;;  %v815_v42 = vadd.f32 %v813_v41, %v741_v34  ;;  %v4647_v38 = vstv %s3055_s10  ;;  %v4491_v28 = vstv %s3236_s27  ;;  %s3314_s10 = sld [smem:[#allocation5 + %s1267_s17]]  ;;  %s1562_s17 = sadd.s32 91, %s3092_s13 }
  0xd5   : > { %v960_v3 = vmul.f32 %v3296_v7, %v4647_v38  ;;  %v4648_v2 = vstv %s3062_s12  ;;  %v1108_v59 = vmul.f32 %v1107_v14, %v4633_v24  ;;  %v535_v41 = vadd.f32 %v533_v50, %v460_v63  ;;  %s3320_s12 = sld [smem:[#allocation5 + %s1340_s5]]  ;;  %s4506_s5 = smov 124  }
  0xd6   : > { %v1034_v54 = vmul.f32 %v4648_v2, %v4631_v35  ;;  %v680_v47 = vmul.f32 %v4494_v45, %v2356_v30  ;;  %v1480_v34 = vadd.f32 %v1478_v25, %v1406_v55  ;;  %v889_v38 = vadd.f32 %v887_v57, %v815_v42  ;;  %v3334_v55 = vld [vmem:[%s2248_s8 + $0x30] sm:$0xff]  ;;  %s3366_s6 = sld [smem:[#allocation5 + %s1562_s17]] }
  0xd7   : > { %v1182_v12 = vmul.f32 %v1181_v27, %v4635_v49  ;;  %v4492_v2 = vstv %s3251_s20  ;;  %v1256_v14 = vmul.f32 %v1255_v58, %v4637_v31  ;;  %v608_v50 = vadd.f32 %v606_v43, %v535_v41 }
  0xd8   : > { %v754_v25 = vmul.f32 %v4491_v28, %v2390_v48  ;;  %v4493_v57 = vstv %s3258_s23  ;;  %v1554_v27 = vadd.f32 %v1552_v23, %v1480_v34  ;;  %v962_v63 = vadd.f32 %v960_v3, %v889_v38 }
  0xd9   : > { %v4649_v42 = vstv %s3101_s24  ;;  %v4650_v43 = vstv %s3106_s26  ;;  %v3349_v23 = vmul.f32 %v1476_v53, %v2599_v29  ;;  %v3354_v3 = vmul.f32 %v1550_v13, %v2612_v15  ;;  %s3359_s24 = sld [smem:[#allocation5 + %s1488_s3]]  ;;  %s386_s26 = sadd.s32 12, %s3092_s13 }
  0xda   : > { %v1329_v58 = vmul.f32 %v3334_v55, %v4649_v42  ;;  %v3342_v41 = vmul.f32 %v4650_v43, %v4639_v52  ;;  %v682_v34 = vadd.f32 %v680_v47, %v608_v50  ;;  %v828_v38 = vmul.f32 %v4492_v2, %v2413_v56  ;;  %s536_s3 = sadd.s32 22, %s3092_s13 }
  0xdb   : > { %v1628_v42 = vadd.f32 %v1626_v51, %v1554_v27  ;;  %v1036_v43 = vadd.f32 %v1034_v54, %v962_v63  ;;  %v902_v53 = vmul.f32 %v4493_v57, %v2446_v8  ;;  %v4495_v28 = vstv %s3273_s25  ;;  %s3418_s17 = sld [smem:[#allocation5 + %s536_s3]]  ;;  %s905_s3 = sadd.s32 47, %s3092_s13 }
  0xdc   : > { %v756_v13 = vadd.f32 %v754_v25, %v682_v34  ;;  %v4498_v47 = vstv %s3280_s9  ;;  %v4496_v50 = vstv %s3292_s19  ;;  %v4651_v2 = vstv %s3155_s14  ;;  %s3386_s14 = sld [smem:[#allocation5 + %s386_s26]] }
  0xdd   : > { %v238_v51 = vmul.f32 %v3160_v39, %v4651_v2  ;;  %1678 = vrot.lane.b32.xlu1 %v1628_v42, %s4506_s5  ;;  %v1110_v54 = vadd.f32 %v1108_v59, %v1036_v43  ;;  %v4497_v25 = vstv %s3302_s11  ;;  %v4652_v27 = vstv %s3157_s1  ;;  %v3395_v59 = vld [vmem:[%s2248_s8 + $0x28] sm:$0xff]  ;;  %s3401_s1 = sld [smem:[#allocation5 + %s461_s2]]  ;;  %s831_s2 = sadd.s32 42, %s3092_s13 }
  0xde   : > { %v307_v63 = vmul.f32 %v4652_v27, %v2305_v16  ;;  %v382_v34 = vmul.f32 %v381_v6, %v4606_v0  ;;  %v3392_v2 = vmul.f32 %v1624_v10, %v2625_v62  ;;  %v830_v42 = vadd.f32 %v828_v38, %v756_v13  ;;  %s3444_s26 = sld [smem:[#allocation5 + %s683_s16]]  ;;  %s1052_s16 = sadd.s32 57, %s3092_s13 }
  0xdf   : > { %v975_v43 = vmul.f32 %v3395_v59, %v4495_v28  ;;  %v1184_v6 = vadd.f32 %v1182_v12, %v1110_v54  ;;  %v4499_v57 = vstv %s3320_s12  ;;  %v4653_v38 = vstv %s3179_s0  ;;  %s3425_s0 = sld [smem:[#allocation5 + %s609_s4]] }
  0xe0   : > { %v309_v10 = vadd.f32 %v307_v63, %v238_v51  ;;  %v457_v13 = vmul.f32 %v4653_v38, %v2326_v21  ;;  %v904_v45 = vadd.f32 %v902_v53, %v830_v42  ;;  %v1049_v28 = vmul.f32 %v4498_v47, %v2483_v37  ;;  %v3431_v47 = vld [vmem:[%s2248_s8 + $0x38] sm:$0xff]  ;;  %s3475_s4 = sld [smem:[#allocation5 + %s831_s2]] }
  0xe1   : > { %v1123_v27 = vmul.f32 %v4496_v50, %v2504_v44  ;;  %v1197_v12 = vmul.f32 %v4497_v25, %v2521_v60  ;;  %v1258_v51 = vadd.f32 %v1256_v14, %v1184_v6  ;;  %v4502_v54 = vstv %s3330_s28  ;;  %4656 = vst [vmem:[#allocation25_spill] sm:$0xff] %v3431_v47  ;;  %s3508_s2 = sld [smem:[#allocation5 + %s1052_s16]]  ;;  %s1421_s16 = sadd.s32 82, %s3092_s13 }
  0xe2   : > { %v384_v63 = vadd.f32 %v382_v34, %v309_v10  ;;  %v4654_v53 = vstv %s3195_s15  ;;  %v977_v38 = vadd.f32 %v975_v43, %v904_v45  ;;  %v4655_v50 = vstv %s3314_s10  ;;  %s3437_s15 = sld [smem:[#allocation5 + %s1636_s7]] }
  0xe3   : > { %v532_v42 = vmul.f32 %v4654_v53, %v4610_v61  ;;  %v1271_v25 = vmul.f32 %v4655_v50, %v2558_v33  ;;  %v1344_v14 = vmul.f32 %v3431_v47, %v4499_v57  ;;  %v1331_v6 = vadd.f32 %v1329_v58, %v1258_v51  ;;  %s3481_s7 = sld [smem:[#allocation5 + %s905_s3]]  ;;  %s1274_s3 = sadd.s32 72, %s3092_s13 }
  0xe4   : > { %v459_v45 = vadd.f32 %v457_v13, %v384_v63  ;;  %v4657_v43 = vstv %s3204_s21  ;;  %v1051_v53 = vadd.f32 %v1049_v28, %v977_v38  ;;  %v1418_v57 = vmul.f32 %v4502_v54, %v2591_v4  ;;  %s3459_s21 = sld [smem:[#allocation5 + %s757_s18]]  ;;  %s1126_s18 = sadd.s32 62, %s3092_s13 }
  0xe5   : > { %v605_v50 = vmul.f32 %v3216_v46, %v4657_v43  ;;  %v4658_v34 = vstv %s3221_s29  ;;  %v4503_v58 = vstv %s3374_s22  ;;  %v1405_v13 = vadd.f32 %v3342_v41, %v1331_v6  ;;  %s978_s29 = sadd.s32 52, %s3092_s13 }
  0xe6   : > { %v679_v47 = vmul.f32 %v4658_v34, %v4616_v36  ;;  %v534_v51 = vadd.f32 %v532_v42, %v459_v45  ;;  %v244_v63 = vmul.f32 %v3230_v1, %v4503_v58  ;;  %v4504_v43 = vstv %s3376_s30 }
  0xe7   : > { %v1125_v28 = vadd.f32 %v1123_v27, %v1051_v53  ;;  %v315_v38 = vmul.f32 %v4504_v43, %v2309_v17  ;;  %v388_v34 = vstv %s3386_s14  ;;  %v463_v54 = vstv %s3401_s1  ;;  %s690_s1 = sadd.s32 33, %s3092_s13 }
  0xe8   : > { %v1479_v41 = vadd.f32 %v3349_v23, %v1405_v13  ;;  %v607_v42 = vadd.f32 %v605_v50, %v534_v51  ;;  %v4659_v6 = vstv %s3236_s27  ;;  %v390_v58 = vmul.f32 %v388_v34, %v2322_v20  ;;  %s3488_s27 = sld [smem:[#allocation5 + %s978_s29]]  ;;  %s1347_s29 = sadd.s32 77, %s3092_s13 }
  0xe9   : > { %v753_v45 = vmul.f32 %v4659_v6, %v4617_v5  ;;  %v1199_v27 = vadd.f32 %v1197_v12, %v1125_v28  ;;  %v317_v53 = vadd.f32 %v315_v38, %v244_v63  ;;  %v465_v43 = vmul.f32 %v463_v54, %v2330_v22 }
  0xea   : > { %v4505_v10 = vstv %s3418_s17  ;;  %v1553_v23 = vadd.f32 %v3354_v3, %v1479_v41  ;;  %v681_v50 = vadd.f32 %v679_v47, %v607_v42  ;;  %v4660_v13 = vstv %s3251_s20  ;;  %s1200_s20 = sadd.s32 67, %s3092_s13 }
  0xeb   : > { %v827_v51 = vmul.f32 %v4660_v13, %v4618_v9  ;;  %v4509_v6 = vstv %s3425_s0  ;;  %v1273_v12 = vadd.f32 %v1271_v25, %v1199_v27  ;;  %v4511_v63 = vstv %s3437_s15 }
  0xec   : > { %v392_v28 = vadd.f32 %v390_v58, %v317_v53  ;;  %v540_v38 = vmul.f32 %v4505_v10, %v2342_v26  ;;  %v1627_v3 = vadd.f32 %v3392_v2, %v1553_v23  ;;  %v755_v47 = vadd.f32 %v753_v45, %v681_v50 }
  0xed   : > { %v4661_v41 = vstv %s3258_s23  ;;  %v4508_v13 = vstv %s3444_s26  ;;  %v1346_v25 = vadd.f32 %v1344_v14, %v1273_v12  ;;  %v4662_v27 = vstv %s3359_s24  ;;  %s3519_s23 = sld [smem:[#allocation5 + %s1126_s18]] }
  0xee   : > { %v901_v42 = vmul.f32 %v4661_v41, %v4622_v18  ;;  %v1492_v58 = vmul.f32 %v4662_v27, %v2603_v40  ;;  %v467_v53 = vadd.f32 %v465_v43, %v392_v28  ;;  %v613_v10 = vmul.f32 %v3073_v32, %v4509_v6  ;;  %1676 = vrot.lane.b32.xlu0 %v1627_v3, %s4506_s5  ;;  %s3538_s18 = sld [smem:[#allocation5 + %s1274_s3]]  ;;  %s1495_s5 = sadd.s32 87, %s3092_s13 }
  0xef   : > { %v4663_v2 = vstv %s3366_s6  ;;  %v829_v45 = vadd.f32 %v827_v51, %v755_v47  ;;  %v4664_v23 = vstv %s3273_s25  ;;  %v4510_v50 = vstv %s3459_s21  ;;  %s3528_s25 = sld [smem:[#allocation5 + %s1200_s20]]  ;;  %s393_s20 = sadd.s32 13, %s3092_s13 }
  0xf0   : > { %v1566_v14 = vmul.f32 %v4663_v2, %v2616_v19  ;;  %v974_v43 = vmul.f32 %v3296_v7, %v4664_v23  ;;  %v1420_v12 = vadd.f32 %v1418_v57, %v1346_v25  ;;  %v1640_v28 = vmul.f32 %v4511_v63, %v2636_v11  ;;  %s4675_s3 = smov 127  }
  0xf1   : > { %v542_v3 = vadd.f32 %v540_v38, %v467_v53  ;;  %v687_v41 = vmul.f32 %v4508_v13, %v2356_v30  ;;  %v903_v51 = vadd.f32 %v901_v42, %v829_v45  ;;  %v4665_v47 = vstv %s3280_s9  ;;  %s3547_s9 = sld [smem:[#allocation5 + %s1347_s29]] }
  0xf2   : > { %v1048_v27 = vmul.f32 %v4665_v47, %v4631_v35  ;;  %v4666_v57 = vstv %s3292_s19  ;;  %v4512_v2 = vstv %s3475_s4  ;;  %v1494_v38 = vadd.f32 %v1492_v58, %v1420_v12  ;;  %s3554_s19 = sld [smem:[#allocation5 + %s1421_s16]]  ;;  %s616_s16 = sadd.s32 28, %s3092_s13 }
  0xf3   : > { %v1122_v25 = vmul.f32 %v4666_v57, %v4633_v24  ;;  %v4667_v53 = vstv %s3302_s11  ;;  %v615_v13 = vadd.f32 %v613_v10, %v542_v3  ;;  %v761_v42 = vmul.f32 %v4510_v50, %v2390_v48  ;;  %s245_s11 = sadd.s32 3, %s3092_s13  ;;  %s3606_s29 = sld [smem:[#allocation5 + %s393_s20]] }
  0xf4   : > { %v1196_v23 = vmul.f32 %v4667_v53, %v4635_v49  ;;  %v976_v45 = vadd.f32 %v974_v43, %v903_v51  ;;  %v4668_v47 = vstv %s3314_s10  ;;  %v4514_v6 = vstv %s3481_s7  ;;  %s3563_s10 = sld [smem:[#allocation5 + %s1495_s5]]  ;;  %s543_s5 = sadd.s32 23, %s3092_s13 }
  0xf5   : > { %v1270_v57 = vmul.f32 %v4668_v47, %v4637_v31  ;;  %v4513_v58 = vstv %s3488_s27  ;;  %v1568_v10 = vadd.f32 %v1566_v14, %v1494_v38  ;;  %v4669_v12 = vstv %s3320_s12  ;;  %s318_s12 = sadd.s32 8, %s3092_s13  ;;  %s764_s20 = sadd.s32 38, %s3092_s13 }
  0xf6   : > { %v1343_v3 = vmul.f32 %v3334_v55, %v4669_v12  ;;  %v689_v53 = vadd.f32 %v687_v41, %v615_v13  ;;  %v835_v43 = vmul.f32 %v4512_v2, %v2413_v56  ;;  %v1050_v51 = vadd.f32 %v1048_v27, %v976_v45 }
  0xf7   : > { %v4670_v47 = vstv %s3330_s28  ;;  %v4671_v63 = vstv %s3359_s24  ;;  %v4672_v13 = vstv %s3366_s6  ;;  %v1642_v38 = vadd.f32 %v1640_v28, %v1568_v10  ;;  %s1569_s28 = sadd.s32 92, %s3092_s13  ;;  %s3587_s24 = sld [smem:[#allocation5 + %s245_s11]] }
  0xf8   : > { %v1417_v50 = vmul.f32 %v4670_v47, %v4639_v52  ;;  %v3571_v14 = vmul.f32 %v4671_v63, %v2599_v29  ;;  %v3576_v41 = vmul.f32 %v4672_v13, %v2612_v15  ;;  %v763_v27 = vadd.f32 %v761_v42, %v689_v53  ;;  %s468_s6 = sadd.s32 18, %s3092_s13  ;;  %s3623_s11 = sld [smem:[#allocation5 + %s543_s5]] }
  0xf9   : > { %v909_v45 = vmul.f32 %v4514_v6, %v2446_v8  ;;  %v982_v12 = vmul.f32 %v3395_v59, %v4513_v58  ;;  %v1124_v63 = vadd.f32 %v1122_v25, %v1050_v51  ;;  %v4517_v47 = vstv %s3508_s2  ;;  %1692 = vrot.lane.b32.xlu1 %v1642_v38, %s4675_s3  ;;  %s3621_s14 = sld [smem:[#allocation5 + %s468_s6]]  ;;  %s838_s6 = sadd.s32 43, %s3092_s13 }
  0xfa   : > { %v4673_v13 = vstv %s3374_s22  ;;  %v4674_v28 = vstv %s3376_s30  ;;  %v837_v10 = vadd.f32 %v835_v43, %v763_v27  ;;  %v4516_v53 = vstv %s3519_s23  ;;  %s3604_s22 = sld [smem:[#allocation5 + %s318_s12]]  ;;  %s1643_s30 = sadd.s32 97, %s3092_s13 }
  0xfb   : > { %v243_v2 = vmul.f32 %v3160_v39, %v4673_v13  ;;  %v314_v42 = vmul.f32 %v4674_v28, %v2305_v16  ;;  %v4515_v58 = vstv %s3528_s25  ;;  %v389_v25 = vmul.f32 %v388_v34, %v4606_v0  ;;  %s3648_s12 = sld [smem:[#allocation5 + %s1643_s30]]  ;;  %s985_s5 = sadd.s32 53, %s3092_s13 }
  0xfc   : > { %v1198_v51 = vadd.f32 %v1196_v23, %v1124_v63  ;;  %v464_v43 = vmul.f32 %v463_v54, %v2326_v21  ;;  %v4676_v34 = vstv %s3437_s15  ;;  %v911_v27 = vadd.f32 %v909_v45, %v837_v10  ;;  %s3641_s15 = sld [smem:[#allocation5 + %s1569_s28]]  ;;  %s1059_s30 = sadd.s32 58, %s3092_s13 }
  0xfd   : > { %v316_v28 = vadd.f32 %v314_v42, %v243_v2  ;;  %v1639_v38 = vmul.f32 %v4676_v34, %v2625_v62  ;;  %v1056_v6 = vmul.f32 %v4517_v47, %v2483_v37  ;;  %v4519_v23 = vstv %s3547_s9  ;;  %s3661_s28 = sld [smem:[#allocation5 + %s690_s1]] }
  0xfe   : > { %v1272_v2 = vadd.f32 %v1270_v57, %v1198_v51  ;;  %v4518_v54 = vstv %s3554_s19  ;;  %v4677_v42 = vstv %s3418_s17  ;;  %v984_v45 = vadd.f32 %v982_v12, %v911_v27  ;;  %s3643_s17 = sld [smem:[#allocation5 + %s616_s16]]  ;;  %v4679_v12 = vld [vmem:[#allocation25_spill] sm:$0xff] }
  0xff   : > { %v391_v63 = vadd.f32 %v389_v25, %v316_v28  ;;  %v539_v13 = vmul.f32 %v4677_v42, %v4610_v61  ;;  %v1130_v10 = vmul.f32 %v4516_v53, %v2504_v44  ;;  %v1204_v34 = vmul.f32 %v4515_v58, %v2521_v60  ;;  %s3706_s16 = sld [smem:[#allocation5 + %s985_s5]] }
 0x100   : > { %v4678_v57 = vstv %s3538_s18  ;;  %v1345_v25 = vadd.f32 %v1343_v3, %v1272_v2  ;;  %v1351_v28 = vmul.f32 %v4679_v12, %v4519_v23  ;;  %v4680_v42 = vstv %s3425_s0  ;;  %s3673_s0 = sld [smem:[#allocation5 + %s764_s20]]  ;;  %s1281_s20 = sadd.s32 73, %s3092_s13 }
 0x101   : > { %v1278_v51 = vmul.f32 %v4678_v57, %v2558_v33  ;;  %v466_v27 = vadd.f32 %v464_v43, %v391_v63  ;;  %v612_v57 = vmul.f32 %v3216_v46, %v4680_v42  ;;  %v1058_v58 = vadd.f32 %v1056_v6, %v984_v45  ;;  %s3708_s1 = sld [smem:[#allocation5 + %s1059_s30]]  ;;  %s250_s30 = sadd.s32 4, %s3092_s13 }
 0x102   : > { %v1425_v53 = vmul.f32 %v4518_v54, %v2591_v4  ;;  %v4681_v3 = vstv %s3444_s26  ;;  %v1419_v43 = vadd.f32 %v1417_v50, %v1345_v25  ;;  %v4682_v42 = vstv %s3459_s21  ;;  %s3682_s26 = sld [smem:[#allocation5 + %s838_s6]]  ;;  %s912_s21 = sadd.s32 48, %s3092_s13 }
 0x103   : > { %v686_v2 = vmul.f32 %v4681_v3, %v4616_v36  ;;  %v541_v63 = vadd.f32 %v539_v13, %v466_v27  ;;  %v760_v6 = vmul.f32 %v4682_v42, %v4617_v5  ;;  %v4520_v45 = vstv %s3587_s24  ;;  %s1354_s6 = sadd.s32 78, %s3092_s13 }
 0x104   : > { %v1132_v54 = vadd.f32 %v1130_v10, %v1058_v58  ;;  %v249_v23 = vmul.f32 %v3230_v1, %v4520_v45  ;;  %v4522_v3 = vstv %s3604_s22  ;;  %v4521_v47 = vstv %s3606_s29  ;;  %s3748_s5 = sld [smem:[#allocation5 + %s1354_s6]] }
 0x105   : > { %v1493_v50 = vadd.f32 %v3571_v14, %v1419_v43  ;;  %v614_v13 = vadd.f32 %v612_v57, %v541_v63  ;;  %v322_v25 = vmul.f32 %v4522_v3, %v2309_v17  ;;  %v397_v58 = vmul.f32 %v4521_v47, %v2322_v20 }
 0x106   : > { %v1206_v10 = vadd.f32 %v1204_v34, %v1132_v54  ;;  %v4683_v27 = vstv %s3475_s4  ;;  %v470_v45 = vstv %s3621_s14  ;;  %v1571_v34 = vstv %s3641_s15  ;;  %s3701_s4 = sld [smem:[#allocation5 + %s912_s21]]  ;;  %s1207_s15 = sadd.s32 68, %s3092_s13 }
 0x107   : > { %v834_v42 = vmul.f32 %v4683_v27, %v4618_v9  ;;  %v1567_v57 = vadd.f32 %v3576_v41, %v1493_v50  ;;  %v688_v43 = vadd.f32 %v686_v2, %v614_v13  ;;  %v324_v63 = vadd.f32 %v322_v25, %v249_v23  ;;  %s1428_s21 = sadd.s32 83, %s3092_s13 }
 0x108   : > { %v472_v47 = vmul.f32 %v470_v45, %v2330_v22  ;;  %v1280_v54 = vadd.f32 %v1278_v51, %v1206_v10  ;;  %v4684_v27 = vstv %s3481_s7  ;;  %v4525_v14 = vstv %s3643_s17  ;;  %s1133_s7 = sadd.s32 63, %s3092_s13 }
 0x109   : > { %v908_v3 = vmul.f32 %v4684_v27, %v4622_v18  ;;  %v1641_v41 = vadd.f32 %v1639_v38, %v1567_v57  ;;  %v762_v2 = vadd.f32 %v760_v6, %v688_v43  ;;  %v399_v23 = vadd.f32 %v397_v58, %v324_v63 }
 0x10a   : > { %v4685_v50 = vstv %s3623_s11  ;;  %v1353_v51 = vadd.f32 %v1351_v28, %v1280_v54  ;;  %v4686_v25 = vstv %s3563_s10  ;;  %v1645_v27 = vstv %s3648_s12  ;;  %s1650_s12 = sadd.s32 98, %s3092_s13 }
 0x10b   : > { %v547_v13 = vmul.f32 %v4685_v50, %v2342_v26  ;;  %v1499_v10 = vmul.f32 %v4686_v25, %v2603_v40  ;;  %v4523_v38 = vstv %s3661_s28  ;;  %1690 = vrot.lane.b32.xlu0 %v1641_v41, %s4675_s3  ;;  %v836_v6 = vadd.f32 %v834_v42, %v762_v2  ;;  %s3737_s3 = sld [smem:[#allocation5 + %s1207_s15]] }
 0x10c   : > { %v4687_v58 = vstv %s3488_s27  ;;  %v474_v43 = vadd.f32 %v472_v47, %v399_v23  ;;  %v620_v28 = vmul.f32 %v3073_v32, %v4525_v14  ;;  %v1427_v63 = vadd.f32 %v1425_v53, %v1353_v51  ;;  %s3735_s27 = sld [smem:[#allocation5 + %s1133_s7]]  ;;  %s400_s7 = sadd.s32 14, %s3092_s13 }
 0x10d   : > { %v981_v57 = vmul.f32 %v3296_v7, %v4687_v58  ;;  %v1573_v54 = vmul.f32 %v1571_v34, %v2616_v19  ;;  %v4524_v50 = vstv %s3673_s0  ;;  %v910_v42 = vadd.f32 %v908_v3, %v836_v6 }
 0x10e   : > { %v4688_v41 = vstv %s3508_s2  ;;  %v549_v47 = vadd.f32 %v547_v13, %v474_v43  ;;  %v694_v23 = vmul.f32 %v4523_v38, %v2356_v30  ;;  %v1501_v32 = vadd.f32 %v1499_v10, %v1427_v63  ;;  %s3746_s2 = sld [smem:[#allocation5 + %s1281_s20]] }
 0x10f   : > { %v1055_v2 = vmul.f32 %v4688_v41, %v4631_v35  ;;  %v1647_v53 = vmul.f32 %v1645_v27, %v2636_v11  ;;  %v4689_v3 = vstv %s3519_s23  ;;  %v840_v25 = vstv %s3682_s26  ;;  %s3756_s23 = sld [smem:[#allocation5 + %s1428_s21]]  ;;  %s1576_s21 = sadd.s32 93, %s3092_s13 }
 0x110   : > { %v1129_v51 = vmul.f32 %v4689_v3, %v4633_v24  ;;  %v983_v13 = vadd.f32 %v981_v57, %v910_v42  ;;  %v4690_v6 = vstv %s3528_s25  ;;  %v622_v10 = vadd.f32 %v620_v28, %v549_v47  ;;  %s325_s25 = sadd.s32 9, %s3092_s13  ;;  %s3806_s20 = sld [smem:[#allocation5 + %s400_s7]] }
 0x111   : > { %v1203_v58 = vmul.f32 %v4690_v6, %v4635_v49  ;;  %v768_v43 = vmul.f32 %v4524_v50, %v2390_v48  ;;  %v1575_v63 = vadd.f32 %v1573_v54, %v1501_v32  ;;  %v4691_v41 = vstv %s3538_s18  ;;  %s3781_s18 = sld [smem:[#allocation5 + %s250_s30]]  ;;  %s697_s30 = sadd.s32 34, %s3092_s13 }
 0x112   : > { %v1277_v3 = vmul.f32 %v4691_v41, %v4637_v31  ;;  %v4692_v38 = vstv %s3547_s9  ;;  %v4527_v42 = vstv %s3701_s4  ;;  %v1057_v6 = vadd.f32 %v1055_v2, %v983_v13  ;;  %s475_s9 = sadd.s32 19, %s3092_s13  ;;  %s3804_s15 = sld [smem:[#allocation5 + %s325_s25]] }
 0x113   : > { %v1350_v57 = vmul.f32 %v3334_v55, %v4692_v38  ;;  %v696_v28 = vadd.f32 %v694_v23, %v622_v10  ;;  %v842_v47 = vmul.f32 %v840_v25, %v2413_v56  ;;  %v4526_v50 = vstv %s3706_s16  ;;  %s771_s7 = sadd.s32 39, %s3092_s13 }
 0x114   : > { %v1649_v54 = vadd.f32 %v1647_v53, %v1575_v63  ;;  %v4693_v32 = vstv %s3554_s19  ;;  %v4694_v41 = vstv %s3563_s10  ;;  %v4528_v2 = vstv %s3708_s1  ;;  %s550_s19 = sadd.s32 24, %s3092_s13  ;;  %s4695_s10 = smov 126  }
 0x115   : > { %v1424_v38 = vmul.f32 %v4693_v32, %v4639_v52  ;;  %v3778_v14 = vmul.f32 %v4694_v41, %v2599_v29  ;;  %v1131_v23 = vadd.f32 %v1129_v51, %v1057_v6  ;;  %v3784_v13 = vmul.f32 %v1571_v34, %v2612_v15  ;;  %s3821_s6 = sld [smem:[#allocation5 + %s550_s19]]  ;;  %s845_s19 = sadd.s32 44, %s3092_s13 }
 0x116   : > { %v770_v10 = vadd.f32 %v768_v43, %v696_v28  ;;  %v916_v53 = vmul.f32 %v4527_v42, %v2446_v8  ;;  %1696 = vrot.lane.b32.xlu1 %v1649_v54, %s4695_s10  ;;  %v989_v51 = vmul.f32 %v3395_v59, %v4526_v50  ;;  %v4696_v63 = vstv %s3587_s24  ;;  %s1502_s24 = sadd.s32 88, %s3092_s13 }
 0x117   : > { %v248_v34 = vmul.f32 %v3160_v39, %v4696_v63  ;;  %v4697_v6 = vstv %s3604_s22  ;;  %v4698_v28 = vstv %s3606_s29  ;;  %v1205_v54 = vadd.f32 %v1203_v58, %v1131_v23  ;;  %s623_s22 = sadd.s32 29, %s3092_s13  ;;  %s3819_s29 = sld [smem:[#allocation5 + %s475_s9]] }
 0x118   : > { %v321_v43 = vmul.f32 %v4697_v6, %v2305_v16  ;;  %v396_v32 = vmul.f32 %v4698_v28, %v4606_v0  ;;  %v844_v41 = vadd.f32 %v842_v47, %v770_v10  ;;  %v1063_v50 = vmul.f32 %v4528_v2, %v2483_v37  ;;  %s3833_s14 = sld [smem:[#allocation5 + %s1502_s24]] }
 0x119   : > { %v1135_v39 = vstv %s3735_s27  ;;  %v4531_v63 = vstv %s3737_s3  ;;  %v4529_v6 = vstv %s3746_s2  ;;  %v471_v42 = vmul.f32 %v470_v45, %v2326_v21  ;;  %s3838_s25 = sld [smem:[#allocation5 + %s623_s22]]  ;;  %s992_s22 = sadd.s32 54, %s3092_s13 }
 0x11a   : > { %v323_v28 = vadd.f32 %v321_v43, %v248_v34  ;;  %v1279_v58 = vadd.f32 %v1277_v3, %v1205_v54  ;;  %v918_v47 = vadd.f32 %v916_v53, %v844_v41  ;;  %v4530_v23 = vstv %s3748_s5  ;;  %s3859_s9 = sld [smem:[#allocation5 + %s697_s30]]  ;;  %s1066_s30 = sadd.s32 59, %s3092_s13 }
 0x11b   : > { %v4532_v10 = vstv %s3756_s23  ;;  %v1646_v34 = vmul.f32 %v1645_v27, %v2625_v62  ;;  %v1137_v45 = vmul.f32 %v1135_v39, %v2504_v44  ;;  %v4699_v3 = vstv %s3623_s11  ;;  %s3854_s11 = sld [smem:[#allocation5 + %s1576_s21]] }
 0x11c   : > { %v398_v43 = vadd.f32 %v396_v32, %v323_v28  ;;  %v546_v53 = vmul.f32 %v4699_v3, %v4610_v61  ;;  %v1352_v54 = vadd.f32 %v1350_v57, %v1279_v58  ;;  %v991_v41 = vadd.f32 %v989_v51, %v918_v47  ;;  %s3873_s24 = sld [smem:[#allocation5 + %s771_s7]]  ;;  %s1288_s7 = sadd.s32 74, %s3092_s13 }
 0x11d   : > { %v1211_v27 = vmul.f32 %v4531_v63, %v2521_v60  ;;  %v1285_v2 = vmul.f32 %v4529_v6, %v2558_v33  ;;  %v1358_v32 = vmul.f32 %v4679_v12, %v4530_v23  ;;  %v1432_v28 = vmul.f32 %v4532_v10, %v2591_v4  ;;  %s3911_s26 = sld [smem:[#allocation5 + %s992_s22]]  ;;  %s1509_s22 = sadd.s32 89, %s3092_s13 }
 0x11e   : > { %v473_v57 = vadd.f32 %v471_v42, %v398_v43  ;;  %v4700_v51 = vstv %s3643_s17  ;;  %v1426_v47 = vadd.f32 %v1424_v38, %v1352_v54  ;;  %v1065_v3 = vadd.f32 %v1063_v50, %v991_v41  ;;  %s3868_s17 = sld [smem:[#allocation5 + %s1650_s12]]  ;;  %s1214_s12 = sadd.s32 69, %s3092_s13 }
 0x11f   : > { %v619_v58 = vmul.f32 %v3216_v46, %v4700_v51  ;;  %v4701_v6 = vstv %s3661_s28  ;;  %v4702_v63 = vstv %s3673_s0  ;;  %v252_v46 = vstv %s3781_s18  ;;  %s919_s28 = sadd.s32 49, %s3092_s13  ;;  %s3888_s0 = sld [smem:[#allocation5 + %s845_s19]] }
 0x120   : > { %v693_v23 = vmul.f32 %v4701_v6, %v4616_v36  ;;  %v767_v10 = vmul.f32 %v4702_v63, %v4617_v5  ;;  %v548_v42 = vadd.f32 %v546_v53, %v473_v57  ;;  %v327_v43 = vstv %s3804_s15  ;;  %s3900_s21 = sld [smem:[#allocation5 + %s919_s28]]  ;;  %s1361_s19 = sadd.s32 79, %s3092_s13 }
 0x121   : > { %v4533_v51 = vstv %s3806_s20  ;;  %v1500_v50 = vadd.f32 %v3778_v14, %v1426_v47  ;;  %v1139_v38 = vadd.f32 %v1137_v45, %v1065_v3  ;;  %v254_v63 = vmul.f32 %v3230_v1, %v252_v46  ;;  %s3965_s27 = sld [smem:[#allocation5 + %s1288_s7]]  ;;  %s1435_s28 = sadd.s32 84, %s3092_s13 }
 0x122   : > { %v329_v6 = vmul.f32 %v327_v43, %v2309_v17  ;;  %v621_v53 = vadd.f32 %v619_v58, %v548_v42  ;;  %v404_v54 = vmul.f32 %v4533_v51, %v2322_v20  ;;  %v477_v41 = vstv %s3819_s29  ;;  %s3998_s18 = sld [smem:[#allocation5 + %s1435_s28]] }
 0x123   : > { %v552_v57 = vstv %s3821_s6  ;;  %v1574_v14 = vadd.f32 %v3784_v13, %v1500_v50  ;;  %v1213_v45 = vadd.f32 %v1211_v27, %v1139_v38  ;;  %v479_v47 = vmul.f32 %v477_v41, %v2330_v22  ;;  %s4712_s15 = sld [smem:[#allocation18_spill]] }
 0x124   : > { %v331_v1 = vadd.f32 %v329_v6, %v254_v63  ;;  %v1504_v58 = vstv %s3833_s14  ;;  %v695_v3 = vadd.f32 %v693_v23, %v621_v53  ;;  %v841_v42 = vmul.f32 %v840_v25, %v4618_v9 }
 0x125   : > { %v625_v51 = vstv %s3838_s25  ;;  %v1648_v13 = vadd.f32 %v1646_v34, %v1574_v14  ;;  %v1287_v27 = vadd.f32 %v1285_v2, %v1213_v45  ;;  %v554_v38 = vmul.f32 %v552_v57, %v2342_v26  ;;  %v3918_v14 = vld [vmem:[%s2248_s8 + $0x18] sm:$0xff] }
 0x126   : > { %v406_v50 = vadd.f32 %v404_v54, %v331_v1  ;;  %v1578_v23 = vstv %s3854_s11  ;;  %v769_v63 = vadd.f32 %v767_v10, %v695_v3  ;;  %v4703_v25 = vstv %s3701_s4  ;;  %s1140_s4 = sadd.s32 64, %s3092_s13 }
 0x127   : > { %v915_v6 = vmul.f32 %v4703_v25, %v4622_v18  ;;  %v699_v53 = vstv %s3859_s9  ;;  %1694 = vrot.lane.b32.xlu0 %v1648_v13, %s4695_s10  ;;  %v1360_v2 = vadd.f32 %v1358_v32, %v1287_v27  ;;  %v1506_v34 = vmul.f32 %v1504_v58, %v2603_v40  ;;  %s3929_s10 = sld [smem:[#allocation5 + %s1066_s30]] }
 0x128   : > { %v481_v54 = vadd.f32 %v479_v47, %v406_v50  ;;  %v627_v10 = vmul.f32 %v3918_v14, %v625_v51  ;;  %v1652_v45 = vstv %s3868_s17  ;;  %v843_v1 = vadd.f32 %v841_v42, %v769_v63 }
 0x129   : > { %v4704_v3 = vstv %s3706_s16  ;;  %v4534_v32 = vstv %s3873_s24  ;;  %v1434_v47 = vadd.f32 %v1432_v28, %v1360_v2  ;;  %v1580_v27 = vmul.f32 %v1578_v23, %v2616_v19  ;;  %s3942_s16 = sld [smem:[#allocation5 + %s1140_s4]]  ;;  %s262_s6 = sadd.s32 5, %s4712_s15 }
 0x12a   : > { %v988_v13 = vmul.f32 %v3296_v7, %v4704_v3  ;;  %v556_v50 = vadd.f32 %v554_v38, %v481_v54  ;;  %v701_v25 = vmul.f32 %v699_v53, %v2356_v30  ;;  %v917_v42 = vadd.f32 %v915_v6, %v843_v1  ;;  %s337_s25 = sadd.s32 10, %s4712_s15  ;;  %s4052_s11 = sld [smem:[#allocation5 + %s262_s6]] }
 0x12b   : > { %v4705_v63 = vstv %s3708_s1  ;;  %v4536_v3 = vstv %s3888_s0  ;;  %v1508_v28 = vadd.f32 %v1506_v34, %v1434_v47  ;;  %v1654_v2 = vmul.f32 %v1652_v45, %v2636_v11  ;;  %s3955_s1 = sld [smem:[#allocation5 + %s1214_s12]]  ;;  %s412_s17 = sadd.s32 15, %s4712_s15 }
 0x12c   : > { %v1062_v7 = vmul.f32 %v4705_v63, %v4631_v35  ;;  %v629_v38 = vadd.f32 %v627_v10, %v556_v50  ;;  %v775_v54 = vmul.f32 %v4534_v32, %v2390_v48  ;;  %v990_v6 = vadd.f32 %v988_v13, %v917_v42  ;;  %s4059_s9 = sld [smem:[#allocation5 + %s4712_s15]]  ;;  %s487_s4 = sadd.s32 20, %s4712_s15 }
 0x12d   : > { %v1136_v1 = vmul.f32 %v1135_v39, %v4633_v24  ;;  %v4535_v63 = vstv %s3900_s21  ;;  %v1582_v34 = vadd.f32 %v1580_v27, %v1508_v28  ;;  %v849_v10 = vmul.f32 %v4536_v3, %v2413_v56  ;;  %s4065_s30 = sld [smem:[#allocation5 + %s337_s25]]  ;;  %s560_s12 = sadd.s32 25, %s4712_s15 }
 0x12e   : > { %v703_v47 = vadd.f32 %v701_v25, %v629_v38  ;;  %v1064_v50 = vadd.f32 %v1062_v7, %v990_v6  ;;  %v4706_v13 = vstv %s3737_s3  ;;  %v994_v32 = vstv %s3911_s26  ;;  %s3975_s3 = sld [smem:[#allocation5 + %s1361_s19]]  ;;  %s708_s19 = sadd.s32 35, %s4712_s15 }
 0x12f   : > { %v1210_v42 = vmul.f32 %v4706_v13, %v4635_v49  ;;  %v1656_v39 = vadd.f32 %v1654_v2, %v1582_v34  ;;  %v4707_v27 = vstv %s3746_s2  ;;  %v923_v38 = vmul.f32 %v4535_v63, %v2446_v8  ;;  %v3978_v13 = vld [vmem:[%s2248_s8] sm:$0xff]  ;;  %s4708_s2 = smov 125   ;;  %s4100_s7 = sld [smem:[#allocation5 + %s560_s12]] }
 0x130   : > { %v1284_v25 = vmul.f32 %v4707_v27, %v4637_v31  ;;  %v777_v28 = vadd.f32 %v775_v54, %v703_v47  ;;  %v1138_v7 = vadd.f32 %v1136_v1, %v1064_v50  ;;  %v1068_v6 = vstv %s3929_s10  ;;  %s782_s10 = sadd.s32 40, %s4712_s15  ;;  %s4122_s28 = sld [smem:[#allocation5 + %s708_s19]] }
 0x131   : > { %v253_v2 = vmul.f32 %v3978_v13, %v252_v46  ;;  %v328_v54 = vmul.f32 %v327_v43, %v2305_v16  ;;  %1700 = vrot.lane.b32.xlu1 %v1656_v39, %s4708_s2  ;;  %v4709_v34 = vstv %s3748_s5  ;;  %v996_v50 = vmul.f32 %v3395_v59, %v994_v32  ;;  %s1583_s5 = sadd.s32 94, %s3092_s13  ;;  %s1594_s19 = sadd.s32 95, %s4712_s15 }
 0x132   : > { %v1357_v1 = vmul.f32 %v3334_v55, %v4709_v34  ;;  %v851_v47 = vadd.f32 %v849_v10, %v777_v28  ;;  %v4710_v27 = vstv %s3806_s20  ;;  %v1212_v63 = vadd.f32 %v1210_v42, %v1138_v7  ;;  %s4011_s20 = sld [smem:[#allocation5 + %s1509_s22]]  ;;  %s4716_s22 = smov 124  }
 0x133   : > { %v403_v46 = vmul.f32 %v4710_v27, %v4606_v0  ;;  %v1142_v3 = vstv %s3942_s16  ;;  %v330_v43 = vadd.f32 %v328_v54, %v253_v2  ;;  %v478_v55 = vmul.f32 %v477_v41, %v2326_v21  ;;  %s4024_s29 = sld [smem:[#allocation5 + %s1583_s5]]  ;;  %v4027_v27 = vld [vmem:[%s2248_s8 + $0x10] sm:$0xff] }
 0x134   : > { %v4711_v10 = vstv %s3756_s23  ;;  %v925_v39 = vadd.f32 %v923_v38, %v851_v47  ;;  %v1070_v28 = vmul.f32 %v1068_v6, %v2483_v37  ;;  %v1286_v42 = vadd.f32 %v1284_v25, %v1212_v63  ;;  %s1657_s23 = sadd.s32 99, %s3092_s13  ;;  %s4128_s16 = sld [smem:[#allocation5 + %s782_s10]] }
 0x135   : > { %v1431_v59 = vmul.f32 %v4711_v10, %v4639_v52  ;;  %v1216_v7 = vstv %s3955_s1  ;;  %v405_v2 = vadd.f32 %v403_v46, %v330_v43  ;;  %v553_v41 = vmul.f32 %v552_v57, %v4610_v61  ;;  %s4040_s14 = sld [smem:[#allocation5 + %s1657_s23]]  ;;  %s929_s1 = sadd.s32 50, %s4712_s15 }
 0x136   : > { %v1505_v38 = vmul.f32 %v1504_v58, %v2599_v29  ;;  %v998_v54 = vadd.f32 %v996_v50, %v925_v39  ;;  %v1144_v34 = vmul.f32 %v1142_v3, %v2504_v44  ;;  %v1359_v63 = vadd.f32 %v1357_v1, %v1286_v42  ;;  %s4155_s23 = sld [smem:[#allocation5 + %s929_s1]]  ;;  %s447_s1 = sadd.s32 15, %s3092_s13 }
 0x137   : > { %v1290_v25 = vstv %s3965_s27  ;;  %v480_v47 = vadd.f32 %v478_v55, %v405_v2  ;;  %v626_v57 = vmul.f32 %v4027_v27, %v625_v51  ;;  %v1579_v58 = vmul.f32 %v1578_v23, %v2612_v15  ;;  %s1003_s27 = sadd.s32 55, %s4712_s15 }
 0x138   : > { %v1072_v50 = vadd.f32 %v1070_v28, %v998_v54  ;;  %v1218_v1 = vmul.f32 %v1216_v7, %v2521_v60  ;;  %v1433_v46 = vadd.f32 %v1431_v59, %v1359_v63  ;;  %v1363_v43 = vstv %s3975_s3  ;;  %s1077_s3 = sadd.s32 60, %s4712_s15  ;;  %s4164_s6 = sld [smem:[#allocation5 + %s1003_s27]] }
 0x139   : > { %v555_v55 = vadd.f32 %v553_v41, %v480_v47  ;;  %v700_v51 = vmul.f32 %v699_v53, %v4616_v36  ;;  %v1653_v23 = vmul.f32 %v1652_v45, %v2625_v62  ;;  %v1292_v39 = vmul.f32 %v1290_v25, %v2558_v33  ;;  %s4173_s25 = sld [smem:[#allocation5 + %s1077_s3]]  ;;  %s595_s3 = sadd.s32 25, %s3092_s13 }
 0x13a   : > { %v1146_v10 = vadd.f32 %v1144_v34, %v1072_v50  ;;  %v1507_v59 = vadd.f32 %v1505_v38, %v1433_v46  ;;  %v1437_v28 = vstv %s3998_s18  ;;  %v4713_v2 = vstv %s3873_s24  ;;  %s4075_s24 = sld [smem:[#allocation5 + %s412_s17]]  ;;  %s1151_s18 = sadd.s32 65, %s4712_s15 }
 0x13b   : > { %v628_v42 = vadd.f32 %v626_v57, %v555_v55  ;;  %v774_v53 = vmul.f32 %v4713_v2, %v4617_v5  ;;  %v1365_v41 = vmul.f32 %v4679_v12, %v1363_v43  ;;  %v1511_v54 = vstv %s4011_s20  ;;  %s1225_s20 = sadd.s32 70, %s4712_s15  ;;  %s1372_s17 = sadd.s32 80, %s4712_s15 }
 0x13c   : > { %v1220_v45 = vadd.f32 %v1218_v1, %v1146_v10  ;;  %v1581_v38 = vadd.f32 %v1579_v58, %v1507_v59  ;;  %v4714_v63 = vstv %s3888_s0  ;;  %v1439_v50 = vmul.f32 %v1437_v28, %v2591_v4  ;;  %s4081_s0 = sld [smem:[#allocation5 + %s487_s4]]  ;;  %v4090_v59 = vld [vmem:[%s2248_s8 + $0x20] sm:$0xff] }
 0x13d   : > { %v702_v34 = vadd.f32 %v700_v51, %v628_v42  ;;  %v848_v47 = vmul.f32 %v4714_v63, %v4618_v9  ;;  %v1585_v1 = vstv %s4024_s29  ;;  %v4715_v46 = vstv %s3900_s21  ;;  %s634_s21 = sadd.s32 30, %s4712_s15  ;;  %s1298_s29 = sadd.s32 75, %s4712_s15 }
 0x13e   : > { %v1294_v57 = vadd.f32 %v1292_v39, %v1220_v45  ;;  %v1655_v12 = vadd.f32 %v1653_v23, %v1581_v38  ;;  %v922_v55 = vmul.f32 %v4715_v46, %v4622_v18  ;;  %v1513_v10 = vmul.f32 %v1511_v54, %v2603_v40  ;;  %s4111_s26 = sld [smem:[#allocation5 + %s634_s21]] }
 0x13f   : > { %v776_v58 = vadd.f32 %v774_v53, %v702_v34  ;;  %v1659_v23 = vstv %s4040_s14  ;;  %v995_v42 = vmul.f32 %v4090_v59, %v994_v32  ;;  %v1587_v53 = vmul.f32 %v1585_v1, %v2616_v19  ;;  %s4197_s14 = sld [smem:[#allocation5 + %s1298_s29]]  ;;  %s743_s29 = sadd.s32 35, %s3092_s13 }
 0x140   : > { %v1367_v51 = vadd.f32 %v1365_v41, %v1294_v57  ;;  %1698 = vrot.lane.b32.xlu0 %v1655_v12, %s4708_s2  ;;  %v264_v45 = vstv %s4052_s11  ;;  %v1069_v38 = vmul.f32 %v1068_v6, %v4631_v35  ;;  %v1661_v32 = vmul.f32 %v1659_v23, %v2636_v11  ;;  %s856_s2 = sadd.s32 45, %s4712_s15  ;;  %s4182_s11 = sld [smem:[#allocation5 + %s1151_s18]] }
 0x141   : > { %v850_v39 = vadd.f32 %v848_v47, %v776_v58  ;;  %v205_v63 = vstv %s4059_s9  ;;  %v339_v47 = vstv %s4065_s30  ;;  %v265_v12 = vmul.f32 %v264_v45, %v2305_v16  ;;  %s4143_s5 = sld [smem:[#allocation5 + %s856_s2]]  ;;  %s1446_s30 = sadd.s32 85, %s4712_s15 }
 0x142   : > { %v1441_v2 = vadd.f32 %v1439_v50, %v1367_v51  ;;  %v1143_v50 = vmul.f32 %v1142_v3, %v4633_v24  ;;  %v1217_v58 = vmul.f32 %v1216_v7, %v4635_v49  ;;  %v414_v46 = vstv %s4075_s24  ;;  %s4191_s9 = sld [smem:[#allocation5 + %s1225_s20]]  ;;  %s1520_s24 = sadd.s32 90, %s4712_s15 }
 0x143   : > { %v924_v41 = vadd.f32 %v922_v55, %v850_v39  ;;  %v340_v51 = vmul.f32 %v339_v47, %v4606_v0  ;;  %v206_v3 = vmul.f32 %v3978_v13, %v205_v63  ;;  %s4203_s4 = sld [smem:[#allocation5 + %s1372_s17]]  ;;  %s372_s2 = sadd.s32 10, %s3092_s13 }
 0x144   : > { %v1515_v34 = vadd.f32 %v1513_v10, %v1441_v2  ;;  %v489_v10 = vstv %s4081_s0  ;;  %v266_v2 = vmul.f32 %v264_v45, %v2309_v17  ;;  %s297_s0 = sadd.s32 5, %s3092_s13  ;;  %s4214_s12 = sld [smem:[#allocation5 + %s1446_s30]] }
 0x145   : > { %v997_v57 = vadd.f32 %v995_v42, %v924_v41  ;;  %v4131_v42 = vld [vmem:[%s2248_s8 + $0x8] sm:$0xff]  ;;  %s4218_s21 = sld [smem:[#allocation5 + %s1520_s24]]  ;;  %s817_s24 = sadd.s32 40, %s3092_s13 }
 0x146   : > { %v1589_v6 = vadd.f32 %v1587_v53, %v1515_v34  ;;  %v207_v7 = vmul.f32 %v4131_v42, %v205_v63  ;;  %v341_v53 = vmul.f32 %v339_v47, %v2322_v20  ;;  %v415_v34 = vmul.f32 %v414_v46, %v2326_v21  ;;  %s4223_s10 = sld [smem:[#allocation5 + %s297_s0]] }
 0x147   : > { %v1071_v55 = vadd.f32 %v1069_v38, %v997_v57  ;;  %v1291_v38 = vmul.f32 %v1290_v25, %v4637_v31  ;;  %v562_v57 = vstv %s4100_s7  ;;  %v416_v63 = vmul.f32 %v414_v46, %v2330_v22  ;;  %s4717_s7 = sld [smem:[#allocation10_spill]] }
 0x148   : > { %v1663_v39 = vadd.f32 %v1661_v32, %v1589_v6  ;;  %v267_v32 = vadd.f32 %v265_v12, %v206_v3  ;;  %v268_v45 = vadd.f32 %v266_v2, %v207_v7  ;;  %v490_v6 = vmul.f32 %v489_v10, %v4610_v61  ;;  %s4241_s15 = sld [smem:[#allocation5 + %s372_s2]] }
 0x149   : > { %v1145_v41 = vadd.f32 %v1143_v50, %v1071_v55  ;;  %v4147_v50 = vld [vmem:[%s2248_s8 + $0x30] sm:$0xff]  ;;  %v636_v55 = vstv %s4111_s26  ;;  %v491_v46 = vmul.f32 %v489_v10, %v2342_v26  ;;  %v563_v7 = vmul.f32 %v4027_v27, %v562_v57  ;;  %s4718_s26 = sld [smem:[#allocation51_spill]] }
 0x14a   : > { %1704 = vrot.lane.b32.xlu1 %v1663_v39, %s4716_s22  ;;  %v1364_v25 = vmul.f32 %v4147_v50, %v1363_v43  ;;  %v342_v12 = vadd.f32 %v340_v51, %v267_v32  ;;  %v343_v3 = vadd.f32 %v341_v53, %v268_v45  ;;  %v710_v2 = vstv %s4122_s28  ;;  %s4226_s28 = sld [smem:[#allocation5 + %s3092_s13]] }
 0x14b   : > { %v1219_v47 = vadd.f32 %v1217_v58, %v1145_v41  ;;  %v1438_v58 = vmul.f32 %v1437_v28, %v4639_v52  ;;  %v564_v53 = vmul.f32 %v3918_v14, %v562_v57  ;;  %v1512_v10 = vmul.f32 %v1511_v54, %v2599_v29  ;;  %s4285_s18 = sld [smem:[#allocation5 + %s595_s3]]  ;;  %s1481_s3 = sadd.s32 85, %s3092_s13 }
 0x14c   : > { %v417_v43 = vadd.f32 %v415_v34, %v342_v12  ;;  %v418_v51 = vadd.f32 %v416_v63, %v343_v3  ;;  %v784_v32 = vstv %s4128_s16  ;;  %v638_v45 = vmul.f32 %v636_v55, %v2356_v30  ;;  %s4231_s16 = sld [smem:[#allocation5 + %s1594_s19]] }
 0x14d   : > { %v1293_v39 = vadd.f32 %v1291_v38, %v1219_v47  ;;  %v637_v38 = vmul.f32 %v636_v55, %v4616_v36  ;;  %v1586_v57 = vmul.f32 %v1585_v1, %v2612_v15  ;;  %v711_v47 = vmul.f32 %v710_v2, %v4617_v5  ;;  %p191_p11 = scmp.lt.s32.totalorder %s4717_s7, 1  ;;  %s4310_s0 = sld [smem:[#allocation5 + %s817_s24]] }
 0x14e   : > { %v492_v28 = vadd.f32 %v490_v6, %v417_v43  ;;  %v493_v34 = vadd.f32 %v491_v46, %v418_v51  ;;  %v712_v12 = vmul.f32 %v710_v2, %v2390_v48  ;;  %v1660_v55 = vmul.f32 %v1659_v23, %v2625_v62 }
 0x14f   : > { %v1366_v41 = vadd.f32 %v1364_v25, %v1293_v39  ;;  %v858_v25 = vstv %s4143_s5  ;;  %v785_v46 = vmul.f32 %v784_v32, %v4618_v9  ;;  %v931_v39 = vstv %s4155_s23  ;;  %p193_p10 = scmp.lt.s32.totalorder %s4718_s26, 3  ;;  %s4737_s7 = smov (!%p191_p11, %s4717_s7), 1 }
 0x150   : > { %v565_v54 = vadd.f32 %v563_v7, %v492_v28  ;;  %v566_v6 = vadd.f32 %v564_v53, %v493_v34  ;;  %v786_v7 = vmul.f32 %v784_v32, %v2413_v56  ;;  %v859_v2 = vmul.f32 %v858_v25, %v4622_v18  ;;  %s1843_s5 = sshll.u32 %s4737_s7, 3  ;;  %s964_s7 = sadd.s32 50, %s3092_s13 }
 0x151   : > { %v1440_v63 = vadd.f32 %v1438_v58, %v1366_v41  ;;  %v1005_v23 = vstv %s4164_s6  ;;  %v860_v41 = vmul.f32 %v858_v25, %v2446_v8  ;;  %v1079_v32 = vstv %s4173_s25  ;;  %s4739_s26 = smov (!%p193_p10, %s4718_s26), 3  ;;  %s669_s25 = sadd.s32 30, %s3092_s13 }
 0x152   : > { %v639_v1 = vadd.f32 %v637_v38, %v565_v54  ;;  %v640_v58 = vadd.f32 %v638_v45, %v566_v6  ;;  %v932_v38 = vmul.f32 %v4090_v59, %v931_v39  ;;  %v4207_v45 = vld [vmem:[%s2248_s8 + $0x28] sm:$0xff]  ;;  %v1153_v54 = vstv %s4182_s11  ;;  %s1842_s23 = sshll.u32 %s4739_s26, 1  ;;  %s4291_s11 = sld [smem:[#allocation5 + %s669_s25]] }
 0x153   : > { %v1514_v3 = vadd.f32 %v1512_v10, %v1440_v63  ;;  %v933_v63 = vmul.f32 %v4207_v45, %v931_v39  ;;  %v1007_v6 = vmul.f32 %v1005_v23, %v2483_v37  ;;  %v1154_v39 = vmul.f32 %v1153_v54, %v4635_v49  ;;  %s197_s6 = sadd.s32 %s1843_s5, %s1842_s23  ;;  %s4322_s19 = sld [smem:[#allocation5 + %s964_s7]] }
 0x154   : > { %v713_v51 = vadd.f32 %v711_v47, %v639_v1  ;;  %v714_v53 = vadd.f32 %v712_v12, %v640_v58  ;;  %v1080_v12 = vmul.f32 %v1079_v32, %v4633_v24  ;;  %v1081_v1 = vmul.f32 %v1079_v32, %v2504_v44  ;;  %s1844_s20 = sshll.u32 %s197_s6, 3  ;;  %s1038_s26 = sadd.s32 55, %s3092_s13 }
 0x155   : > { %v1588_v43 = vadd.f32 %v1586_v57, %v1514_v3  ;;  %v1006_v57 = vmul.f32 %v1005_v23, %v4631_v35  ;;  %v1669_v23 = vpop.permute.xlu1 %1668  ;;  %s4364_s6 = sld [smem:[#allocation5 + %s1481_s3]] }
 0x156   : > { %v787_v28 = vadd.f32 %v785_v46, %v713_v51  ;;  %v788_v34 = vadd.f32 %v786_v7, %v714_v53  ;;  %v1300_v7 = vstv %s4197_s14  ;;  %v1155_v51 = vmul.f32 %v1153_v54, %v2521_v60  ;;  %s4719_s14 = sld [smem:[#allocation54_spill]] }
 0x157   : > { %v1662_v10 = vadd.f32 %v1660_v55, %v1588_v43  ;;  %v1227_v55 = vstv %s4191_s9  ;;  %v4233_v43 = vpop.permute.xlu0 %1664  ;;  %v1301_v32 = vmul.f32 %v4147_v50, %v1300_v7 }
 0x158   : > { %v861_v47 = vadd.f32 %v859_v2, %v787_v28  ;;  %v862_v25 = vadd.f32 %v860_v41, %v788_v34  ;;  %v1228_v53 = vmul.f32 %v1227_v55, %v4637_v31  ;;  %v1229_v28 = vmul.f32 %v1227_v55, %v2558_v33 }
 0x159   : > { %1702 = vrot.lane.b32.xlu0 %v1662_v10, %s4716_s22  ;;  %v1374_v10 = vstv %s4203_s4  ;;  %s522_s22 = sadd.s32 20, %s3092_s13  ;;  %s4301_s4 = sld [smem:[#allocation5 + %s743_s29]] }
 0x15a   : > { %v934_v3 = vadd.f32 %v932_v38, %v861_v47  ;;  %v935_v46 = vadd.f32 %v933_v63, %v862_v25  ;;  %v1448_v63 = vstv %s4214_s12  ;;  %v4247_v47 = vld [vmem:[%s2248_s8 + $0x38] sm:$0xff]  ;;  %v1375_v25 = vmul.f32 %v1374_v10, %v4639_v52  ;;  %s4264_s8 = sld [smem:[#allocation5 + %s447_s1]]  ;;  %s891_s12 = sadd.s32 45, %s3092_s13 }
 0x15b   : > { %v1302_v54 = vmul.f32 %v4247_v47, %v1300_v7  ;;  %v1376_v55 = vmul.f32 %v1374_v10, %v2591_v4  ;;  %s4277_s27 = sld [smem:[#allocation5 + %s522_s22]]  ;;  %s1260_s1 = sadd.s32 70, %s3092_s13 }
 0x15c   : > { %v1008_v58 = vadd.f32 %v1006_v57, %v934_v3  ;;  %v1009_v2 = vadd.f32 %v1007_v6, %v935_v46  ;;  %v1522_v6 = vstv %s4218_s21  ;;  %v1667_v46 = vpop.permute.xlu0 %1666  ;;  %s4297_s30 = scalar_lea.vmem %s4719_s14, %s1844_s20  ;;  %s4316_s21 = sld [smem:[#allocation5 + %s891_s12]] }
 0x15d   : > { %v1523_v10 = vmul.f32 %v1522_v6, %v2612_v15  ;;  %v1524_v52 = vmul.f32 %v1522_v6, %v2616_v19  ;;  %s1333_s22 = sadd.s32 75, %s3092_s13  ;;  %s1629_s20 = sadd.s32 95, %s3092_s13 }
 0x15e   : > { %v1082_v41 = vadd.f32 %v1080_v12, %v1008_v58  ;;  %v1083_v38 = vadd.f32 %v1081_v1, %v1009_v2  ;;  %v299_v1 = vstv %s4223_s10  ;;  %v1449_v58 = vmul.f32 %v1448_v63, %v2599_v29  ;;  %v1671_v2 = vpop.permute.xlu1 %1670  ;;  %s4328_s10 = sld [smem:[#allocation5 + %s1038_s26]] }
 0x15f   : > { %s4352_s5 = sld [smem:[#allocation5 + %s1333_s22]] }
 0x160   : > { %v1156_v34 = vadd.f32 %v1154_v39, %v1082_v41  ;;  %v1157_v57 = vadd.f32 %v1155_v51, %v1083_v38  ;;  %v232_v39 = vstv %s4226_s28  ;;  %v1596_v51 = vstv %s4231_s16  ;;  %s1112_s28 = sadd.s32 60, %s3092_s13  ;;  %s1186_s16 = sadd.s32 65, %s3092_s13 }
 0x161   : > { %v1450_v41 = vmul.f32 %v1448_v63, %v2603_v40  ;;  %s4334_s2 = sld [smem:[#allocation5 + %s1112_s28]] }
 0x162   : > { %v1230_v12 = vadd.f32 %v1228_v53, %v1156_v34  ;;  %v1231_v3 = vadd.f32 %v1229_v28, %v1157_v57  ;;  %v301_v28 = vmul.f32 %v299_v1, %v2309_v17  ;;  %v234_v34 = vmul.f32 %v4131_v42, %v232_v39  ;;  %v1673_v17 = vpop.permute.xlu0 %1672  ;;  %v1675_v42 = vpop.permute.xlu1 %1674 }
 0x164   : > { %v1303_v7 = vadd.f32 %v1301_v32, %v1230_v12  ;;  %v1304_v53 = vadd.f32 %v1302_v54, %v1231_v3  ;;  %v374_v32 = vstv %s4241_s15  ;;  %v1597_v12 = vmul.f32 %v1596_v51, %v2625_v62  ;;  %s4340_s15 = sld [smem:[#allocation5 + %s1186_s16]] }
 0x165   : > { %v303_v6 = vadd.f32 %v301_v28, %v234_v34  ;;  %v524_v34 = vstv %s4277_s27  ;;  %s1407_s27 = sadd.s32 80, %s3092_s13 }
 0x166   : > { %v1377_v38 = vadd.f32 %v1375_v25, %v1303_v7  ;;  %v1378_v57 = vadd.f32 %v1376_v55, %v1304_v53  ;;  %v1598_v25 = vmul.f32 %v1596_v51, %v2636_v11  ;;  %v376_v55 = vmul.f32 %v374_v32, %v2322_v20  ;;  %s4358_s23 = sld [smem:[#allocation5 + %s1407_s27]] }
 0x167   : > { %v449_v53 = vstv %s4264_s8  ;;  %s4346_s8 = sld [smem:[#allocation5 + %s1260_s1]] }
 0x168   : > { %v1451_v54 = vadd.f32 %v1449_v58, %v1377_v38  ;;  %v1452_v63 = vadd.f32 %v1450_v41, %v1378_v57  ;;  %v1682_v38 = vadd.f32 %v1673_v17, %v1669_v23  ;;  %v1683_v41 = vadd.f32 %v1675_v42, %v1671_v2  ;;  %v1679_v57 = vpop.permute.xlu1 %1678 }
 0x169   : > { %v378_v20 = vadd.f32 %v376_v55, %v303_v6  ;;  %v597_v2 = vstv %s4285_s18  ;;  %s1555_s18 = sadd.s32 90, %s3092_s13 }
 0x16a   : > { %v1525_v3 = vadd.f32 %v1523_v10, %v1451_v54  ;;  %v1526_v7 = vadd.f32 %v1524_v52, %v1452_v63  ;;  %v451_v10 = vmul.f32 %v449_v53, %v2330_v22  ;;  %v1677_v52 = vpop.permute.xlu0 %1676  ;;  %v233_v63 = vmul.f32 %v3978_v13, %v232_v39  ;;  %s4370_s25 = sld [smem:[#allocation5 + %s1555_s18]] }
 0x16b   : > { %v819_v39 = vstv %s4310_s0 }
 0x16c   : > { %v1599_v58 = vadd.f32 %v1597_v12, %v1525_v3  ;;  %v1600_v62 = vadd.f32 %v1598_v25, %v1526_v7  ;;  %v453_v23 = vadd.f32 %v451_v10, %v378_v20  ;;  %v300_v12 = vmul.f32 %v299_v1, %v2305_v16 }
 0x16d   : > { %v599_v25 = vmul.f32 %v3918_v14, %v597_v2  ;;  %v671_v3 = vstv %s4291_s11  ;;  %v745_v7 = vstv %s4301_s4  ;;  %v450_v16 = vmul.f32 %v449_v53, %v2326_v21  ;;  %s4376_s11 = sld [smem:[#allocation5 + %s1629_s20]] }
 0x16e   : > { %v1680_v51 = vadd.f32 %v4233_v43, %v1599_v58  ;;  %v1681_v28 = vadd.f32 %v1667_v46, %v1600_v62  ;;  %v526_v62 = vmul.f32 %v524_v34, %v2342_v26  ;;  %v375_v26 = vmul.f32 %v374_v32, %v4606_v0 }
 0x16f   : > { %v302_v42 = vadd.f32 %v300_v12, %v233_v63  ;;  %v673_v55 = vmul.f32 %v671_v3, %v2356_v30  ;;  %v747_v13 = vmul.f32 %v745_v7, %v2390_v48  ;;  %v525_v30 = vmul.f32 %v524_v34, %v4610_v61 }
 0x170   : > { %v1684_v54 = vadd.f32 %v1682_v38, %v1680_v51  ;;  %v1685_v43 = vadd.f32 %v1683_v41, %v1681_v28  ;;  %v528_v17 = vadd.f32 %v526_v62, %v453_v23  ;;  %v821_v32 = vmul.f32 %v819_v39, %v2413_v56 }
 0x171   : > { %v377_v14 = vadd.f32 %v375_v26, %v302_v42  ;;  %v893_v38 = vstv %s4316_s21  ;;  %v598_v21 = vmul.f32 %v4027_v27, %v597_v2  ;;  %v966_v51 = vstv %s4322_s19 }
 0x172   : > { %v1686_v22 = vadd.f32 %v1684_v54, %v1677_v52  ;;  %v1687_v46 = vadd.f32 %v1685_v43, %v1679_v57  ;;  %v601_v6 = vadd.f32 %v599_v25, %v528_v17  ;;  %v895_v53 = vmul.f32 %v893_v38, %v2446_v8 }
 0x173   : > { %v452_v0 = vadd.f32 %v450_v16, %v377_v14  ;;  %v672_v56 = vmul.f32 %v671_v3, %v4616_v36  ;;  %v968_v10 = vmul.f32 %v4207_v45, %v966_v51  ;;  %v1040_v28 = vstv %s4328_s10 }
 0x174   : > { %1688 = vst [vmem:[%s4297_s30] sm:$0xff] %v1686_v22  ;;  %1689 = vst [vmem:[%s4297_s30 + $0x8] sm:$0xf] %v1687_v46  ;;  %v675_v1 = vadd.f32 %v673_v55, %v601_v6  ;;  %v746_v8 = vmul.f32 %v745_v7, %v4617_v5  ;;  %v1042_v52 = vmul.f32 %v1040_v28, %v2483_v37  ;;  %v1114_v57 = vstv %s4334_s2 }
 0x175   : > { %v527_v48 = vadd.f32 %v525_v30, %v452_v0  ;;  %v820_v36 = vmul.f32 %v819_v39, %v4618_v9  ;;  %v1116_v54 = vmul.f32 %v1114_v57, %v2504_v44  ;;  %v1188_v22 = vstv %s4340_s15 }
 0x176   : > { %v749_v58 = vadd.f32 %v747_v13, %v675_v1  ;;  %v894_v37 = vmul.f32 %v893_v38, %v4622_v18  ;;  %v1190_v62 = vmul.f32 %v1188_v22, %v2521_v60  ;;  %v1262_v46 = vstv %s4346_s8 }
 0x177   : > { %v600_v61 = vadd.f32 %v598_v21, %v527_v48  ;;  %v967_v44 = vmul.f32 %v4090_v59, %v966_v51  ;;  %v1264_v2 = vmul.f32 %v1262_v46, %v2558_v33  ;;  %v1335_v63 = vstv %s4352_s5 }
 0x178   : > { %v823_v41 = vadd.f32 %v821_v32, %v749_v58  ;;  %v1041_v60 = vmul.f32 %v1040_v28, %v4631_v35  ;;  %v1337_v25 = vmul.f32 %v4247_v47, %v1335_v63  ;;  %v1409_v3 = vstv %s4358_s23  ;;  %v1693_v35 = vpop.permute.xlu1 %1692 }
 0x179   : > { %v674_v27 = vadd.f32 %v672_v56, %v600_v61  ;;  %v1115_v59 = vmul.f32 %v1114_v57, %v4633_v24  ;;  %v1411_v26 = vmul.f32 %v1409_v3, %v2591_v4  ;;  %v1483_v55 = vstv %s4364_s6 }
 0x17a   : > { %v897_v20 = vadd.f32 %v895_v53, %v823_v41  ;;  %v1189_v6 = vmul.f32 %v1188_v22, %v4635_v49  ;;  %v1485_v7 = vmul.f32 %v1483_v55, %v2603_v40  ;;  %v1557_v14 = vstv %s4370_s25  ;;  %v4720_v49 = vld [vmem:[#allocation42_spill] sm:$0xff] }
 0x17b   : > { %v748_v45 = vadd.f32 %v746_v8, %v674_v27  ;;  %v1263_v13 = vmul.f32 %v1262_v46, %v4637_v31  ;;  %v1559_v24 = vmul.f32 %v1557_v14, %v2616_v19  ;;  %v1631_v4 = vstv %s4376_s11  ;;  %v4721_v8 = vld [vmem:[#allocation44_spill] sm:$0xff] }
 0x17c   : > { %v970_v34 = vadd.f32 %v968_v10, %v897_v20  ;;  %v1336_v0 = vmul.f32 %v4147_v50, %v1335_v63  ;;  %v1633_v58 = vmul.f32 %v1631_v4, %v2636_v11  ;;  %v1410_v21 = vmul.f32 %v1409_v3, %v4720_v49 }
 0x17d   : > { %v822_v5 = vadd.f32 %v820_v36, %v748_v45  ;;  %v1691_v41 = vpop.permute.xlu0 %1690  ;;  %v1484_v51 = vmul.f32 %v1483_v55, %v2599_v29  ;;  %v1558_v50 = vmul.f32 %v1557_v14, %v2612_v15  ;;  %v1632_v27 = vmul.f32 %v1631_v4, %v4721_v8 }
 0x17e   : > { %v1044_v43 = vadd.f32 %v1042_v52, %v970_v34 }
 0x17f   : > { %v896_v9 = vadd.f32 %v894_v37, %v822_v5 }
 0x180   : > { %v1118_v23 = vadd.f32 %v1116_v54, %v1044_v43 }
 0x181   : > { %v969_v18 = vadd.f32 %v967_v44, %v896_v9 }
 0x182   : > { %v1192_v12 = vadd.f32 %v1190_v62, %v1118_v23 }
 0x183   : > { %v1043_v33 = vadd.f32 %v1041_v60, %v969_v18 }
 0x184   : > { %v1266_v17 = vadd.f32 %v1264_v2, %v1192_v12 }
 0x185   : > { %v1117_v47 = vadd.f32 %v1115_v59, %v1043_v33 }
 0x186   : > { %v1339_v42 = vadd.f32 %v1337_v25, %v1266_v17 }
 0x187   : > { %v1191_v1 = vadd.f32 %v1189_v6, %v1117_v47 }
 0x188   : > { %v1413_v16 = vadd.f32 %v1411_v26, %v1339_v42  ;;  %v1697_v30 = vpop.permute.xlu1 %1696 }
 0x189   : > { %v1265_v32 = vadd.f32 %v1263_v13, %v1191_v1 }
 0x18a   : > { %v1487_v39 = vadd.f32 %v1485_v7, %v1413_v16 }
 0x18b   : > { %v1338_v48 = vadd.f32 %v1336_v0, %v1265_v32 }
 0x18c   : > { %v1561_v38 = vadd.f32 %v1559_v24, %v1487_v39 }
 0x18d   : > { %v1412_v19 = vadd.f32 %v1410_v21, %v1338_v48 }
 0x18e   : > { %v1635_v53 = vadd.f32 %v1633_v58, %v1561_v38 }
 0x18f   : > { %v1486_v10 = vadd.f32 %v1484_v51, %v1412_v19 }
 0x190   : > { %v1707_v56 = vadd.f32 %v1693_v35, %v1635_v53 }
 0x191   : > { %v1560_v52 = vadd.f32 %v1558_v50, %v1486_v10 }
 0x193   : > { %v1634_v57 = vadd.f32 %v1632_v27, %v1560_v52 }
 0x195   : > { %v1706_v45 = vadd.f32 %v1691_v41, %v1634_v57 }
 0x199   : > { %v1695_v20 = vpop.permute.xlu0 %1694 }
 0x1a3   : > { %v1701_v40 = vpop.permute.xlu1 %1700 }
 0x1a4   : > { %v1709_v31 = vadd.f32 %v1701_v40, %v1697_v30 }
 0x1a6   : > { %v1711_v61 = vadd.f32 %v1709_v31, %v1707_v56 }
 0x1b2   : > { %v1699_v34 = vpop.permute.xlu0 %1698 }
 0x1b3   : > { %v1708_v36 = vadd.f32 %v1699_v34, %v1695_v20 }
 0x1b5   : > { %v1710_v54 = vadd.f32 %v1708_v36, %v1706_v45 }
 0x1bc   : > { %v1705_v11 = vpop.permute.xlu1 %1704 }
 0x1bd   : > { %v1713_v28 = vadd.f32 %v1711_v61, %v1705_v11 }
 0x1bf   : > { %1853 = vst [vmem:[%s4297_s30 + $0x18] sm:$0xf] %v1713_v28 }
 0x1cb   : > { %v1703_v29 = vpop.permute.xlu0 %1702 }
 0x1cc   : > { %v1712_v43 = vadd.f32 %v1710_v54, %v1703_v29 }
 0x1ce   : > { %1852 = vst [vmem:[%s4297_s30 + $0x10] sm:$0xff] %v1712_v43 }
 0x1cf PF: > { %s4722_s13 = sld [smem:[#allocation13_spill]]  ;;  %s4723_s9 = sld [smem:[#allocation8_spill]] }
 0x1d0   : > { %s4724_s10 = sld [smem:[#allocation9_spill]]  ;;  %s4725_s11 = sld [smem:[#allocation16_spill]] }
 0x1d1   : > { %s4726_s12 = sld [smem:[#allocation11_spill]]  ;;  %s4728_s14 = sld [smem:[#allocation14_spill]] }
 0x1d2   : > { %s4729_s15 = sld [smem:[#allocation15_spill]] }
 0x1d5   : > { %s16_s16 = sadd.s32 1, %s4722_s13   ;;  %s4727_s13 = sld [smem:[#allocation12_spill]] }
 0x1d6   : > { %p13_p13 = scmp.ge.s32.totalorder %s16_s16, 6  }
 0x1d8   :  { %15 = sbr.rel (!%p13_p13) target bundleno = 10 (0xa), region = 77 }
 0x1df   :  { %1749 = vsyncpa [#allocation3], 1 }
 0x1e0   :  { %1751 = vsyncpa [#allocation3 + $0x1], 1 }
 0x1e1   :  { %1752 = vsyncpa [#allocation4], 1 }
 0x1e2   :  { %1754 = vsyncpa [#allocation4 + $0x1], 1 }

</bundles_post_ra>
